<compile_context>
chip_gen: v5e
topology: v5e:2x2
jax: 0.10.0
libtpu: 0.0.40
codegen_flags: <defaults>
</compile_context>

<pallas_src>
import functools
import numpy as np
import jax
import jax.numpy as jnp
from jax import lax
from jax.experimental import pallas as pl
from jax.experimental.pallas import tpu as pltpu


def _round_up(x, m):
    return ((x + m - 1) // m) * m


def _vmem_budget_bytes():
    """~70% of this generation's physical VMEM (v5e/v6e 128 MiB -> ~90 MiB,
    v7x 64 MiB -> ~45 MiB). Falls back to a safe 48 MiB if the query fails."""
    try:
        info = pltpu.get_tpu_info()
        for name in ("vmem_capacity_bytes", "vmem_size_bytes", "vmem_bytes"):
            cap = getattr(info, name, None)
            if cap:
                return int(cap * 0.7)
    except Exception:
        pass
    return 48 * 1024 * 1024


# ----------------------------------------------------------------------------
# Kernel A: generic tiled (M, K) @ (K, N) + b matmul.
#   Used twice:
#     1) hoisted input->gates projection  (T*S, E) @ (E, 4H) + b0   (f32)
#     2) vocab projection                 (S*T, H) @ (H, V)  + bo   (bf16 in,
#        f32 accumulate) with the t==0 start-vector rows fused in.
#   Grid is (N_tiles, M_tiles): the row-tile axis is innermost so the big
#   weight block index is constant along it and Pallas skips re-DMA of W.
# ----------------------------------------------------------------------------
def _matmul_bias_kernel(x_ref, w_ref, b_ref, o_ref, *, precision, seq_len,
                        num_rows, start_col, start_value):
    acc = jnp.dot(x_ref[...], w_ref[...],
                  preferred_element_type=jnp.float32, precision=precision)
    acc = acc + b_ref[...]
    if seq_len is not None:
        # Fused predicted_seq_logits[:, 0] = start_vec: rows are story-major
        # (row = s*T + t), so t == 0 rows are exactly those with row % T == 0.
        tm = x_ref.shape[0]
        tn = o_ref.shape[1]
        j = pl.program_id(0)                    # vocab-tile axis (outer)
        i = pl.program_id(1)                    # row-tile axis (inner)
        row = i * tm + lax.broadcasted_iota(jnp.int32, (tm, tn), 0)
        col = j * tn + lax.broadcasted_iota(jnp.int32, (tm, tn), 1)
        is_t0_row = (row % seq_len == 0) & (row < num_rows)
        start_row = jnp.where(col == start_col,
                              jnp.float32(start_value), jnp.float32(0.0))
        acc = jnp.where(is_t0_row, start_row, acc)
    o_ref[...] = acc.astype(o_ref.dtype)


def matmul_bias(x, w, b, *, out_dtype=jnp.float32, precision=None,
                tm_max=512, tn_max=1024, start_overwrite=None,
                vmem_limit=None):
    M, K = x.shape
    N = w.shape[1]
    Mp = _round_up(max(M, 8), 8)
    tm = min(Mp, tm_max)
    Mp = _round_up(Mp, tm)
    Np = _round_up(max(N, 128), 128)            # lane-dense output columns
    tn = min(Np, tn_max)
    Np = _round_up(Np, tn)

    x_p = jnp.pad(x, ((0, Mp - M), (0, 0)))
    w_p = jnp.pad(w, ((0, 0), (0, Np - N)))
    b_p = jnp.pad(b.reshape(1, N).astype(jnp.float32), ((0, 0), (0, Np - N)))

    so = start_overwrite or {}
    kern = functools.partial(
        _matmul_bias_kernel, precision=precision,
        seq_len=so.get("seq_len"), num_rows=M,
        start_col=so.get("col", 0), start_value=so.get("value", 0.0))

    out = pl.pallas_call(
        kern,
        out_shape=jax.ShapeDtypeStruct((Mp, Np), out_dtype),
        grid=(Np // tn, Mp // tm),              # row tiles innermost
        in_specs=[
            pl.BlockSpec((tm, K), lambda j, i: (i, 0)),   # small, revisited
            pl.BlockSpec((K, tn), lambda j, i: (0, j)),   # big W: constant on
            pl.BlockSpec((1, tn), lambda j, i: (0, j)),   # inner axis -> no
        ],                                                # re-stream
        out_specs=pl.BlockSpec((tm, tn), lambda j, i: (i, j)),
        compiler_params=pltpu.CompilerParams(
            dimension_semantics=("parallel", "parallel"),
            vmem_limit_bytes=vmem_limit),
    )(x_p, w_p, b_p)
    return out[:M, :N]


# ----------------------------------------------------------------------------
# Kernel B: story-batched teacher-forced recurrence (2-layer LSTMCell stack +
# image attention). Grid axis over story chunks ("parallel", v7x megacore);
# the timestep loop is a fully unrolled lax.fori_loop, state lives in vregs.
# Only the state-dependent gate terms are computed here (2 fused dots/step).
# ----------------------------------------------------------------------------
def _recurrence_kernel(xg_ref,        # (T, Sc, 4H) f32: x @ Wx0 + bih0 + bhh0
                       keys_ref,      # (Sc, R, H)
                       vals_ref,      # (Sc, R, P)
                       wch0_ref,      # (P+H, 4H)  stacked [Wc0; Wh0]
                       wih1_ref,      # (2H, 4H)   stacked [Wi1; Wh1]
                       b1_ref,        # (1, 4H)
                       ih_ref,        # (2, H) init_h
                       ic_ref,        # (2, H) init_c
                       ictx_ref,      # (1, P) init_context
                       h_out_ref):    # (T, Sc, H) bf16
    T, S, _ = xg_ref.shape
    H = h_out_ref.shape[2]
    P = ictx_ref.shape[1]

    # Tiny (S, *) matmuls: latency-bound; keep f32 fidelity so errors do not
    # compound across the recurrence (the MXU-bound work lives in kernel A).
    dot = functools.partial(jnp.dot, preferred_element_type=jnp.float32,
                            precision=lax.Precision.HIGHEST)

    # Hoist all weight loads out of the timestep loop (stay vreg/VMEM-resident).
    wch0 = wch0_ref[...]
    wih1 = wih1_ref[...]
    b1 = b1_ref[...]
    keys = keys_ref[...]
    vals = vals_ref[...]

    # get_initial_decoder_states(): learned init params broadcast over stories.
    h0 = jnp.broadcast_to(ih_ref[0:1, :], (S, H))
    h1 = jnp.broadcast_to(ih_ref[1:2, :], (S, H))
    c0 = jnp.broadcast_to(ic_ref[0:1, :], (S, H))
    c1 = jnp.broadcast_to(ic_ref[1:2, :], (S, H))
    ctx = jnp.broadcast_to(ictx_ref[...], (S, P))

    # t = 0 hidden row is never consumed (start vector overwrites t=0 logits
    # in the projection kernel); zero it so every output row is defined.
    h_out_ref[0] = jnp.zeros((S, H), h_out_ref.dtype)

    def lstm(gates, c_prev):                    # PyTorch gate order: i, f, g, o
        i = jax.nn.sigmoid(gates[:, 0:H])
        f = jax.nn.sigmoid(gates[:, H:2 * H])
        g = jnp.tanh(gates[:, 2 * H:3 * H])
        o = jax.nn.sigmoid(gates[:, 3 * H:4 * H])
        c_new = f * c_prev + i * g
        h_new = o * jnp.tanh(c_new)
        return h_new, c_new

    def step(t, carry):
        h0, c0, h1, c1, ctx = carry
        # Layer 0: input->gates term precomputed (xg), one fused dot for the
        # state-dependent part.
        gates0 = xg_ref[t] + dot(jnp.concatenate([ctx, h0], axis=-1), wch0)
        h0n, c0n = lstm(gates0, c0)
        # Layer 1: one fused dot over [h0n, h1].
        gates1 = dot(jnp.concatenate([h0n, h1], axis=-1), wih1) + b1
        h1n, c1n = lstm(gates1, c1)

        # ImageAttention, batched over stories (VPU/XLU; divide -> EUP recip).
        energy = jnp.sum(keys * h1n[:, None, :], axis=-1)           # (S, R)
        energy = energy - jnp.max(energy, axis=-1, keepdims=True)
        p = jnp.exp(energy)
        attn = p * pl.reciprocal(jnp.sum(p, axis=-1, keepdims=True),
                                 approx=True)
        ctx_new = jnp.sum(attn[:, :, None] * vals, axis=1)          # (S, P)

        # Emit bf16 hidden state; logits are computed later in kernel A.
        h_out_ref[t] = h1n.astype(h_out_ref.dtype)
        return (h0n, c0n, h1n, c1n, ctx_new)

    # Short fixed trip count -> full unroll for LLO scheduling visibility.
    lax.fori_loop(1, T, step, (h0, c0, h1, c1, ctx), unroll=True)


# ----------------------------------------------------------------------------
# Wrapper: parameter glue + embedding pre-gather + three pallas_calls.
# ----------------------------------------------------------------------------
def decoder_story_forward(keys, values, captions, params):
    """Pallas implementation of DecoderStory.forward (equal-length captions,
    tf=1.0).  Returns predicted_seq_logits with shape (n_stories, T, vocab)."""
    # TODO(synk): per-sentence variable `lengths` and stochastic scheduled
    # sampling (random.random() < tf) have no clean static-kernel equivalent;
    # this implements the tf=1.0 / equal-length path used in training.
    S, R, H = keys.shape
    P = values.shape[-1]
    T = captions.shape[1]
    V, E = params["emb"].shape
    vmem_limit = _vmem_budget_bytes()

    # PyTorch-layout parameters -> matmul-friendly, fused layouts.
    wx0 = params["Wih0"][:, :E].T                          # (E, 4H)
    wch0 = jnp.concatenate([params["Wih0"][:, E:].T,       # (P, 4H)
                            params["Whh0"].T], axis=0)     # -> (P+H, 4H)
    b0 = params["bih0"] + params["bhh0"]                   # (4H,)
    wih1 = jnp.concatenate([params["Wih1"].T,
                            params["Whh1"].T], axis=0)     # (2H, 4H)
    b1 = (params["bih1"] + params["bhh1"]).reshape(1, 4 * H)
    wo_bf16 = params["Wout"].T.astype(jnp.bfloat16)        # (H, V) bf16
    bo = params["bout"]                                    # (V,)
    ih = params["init_h"]                                  # (2, H)
    ic = params["init_c"]                                  # (2, H)
    ictx = params["init_ctx"]                              # (1, P)

    # Teacher-forced words are fully known: word(t=1)=<start>=1,
    # word(t>=2)=captions[t-1]. Gather embeddings directly in (T, S) layout so
    # the (V, E) table never enters VMEM and no big transposes are needed.
    cap = captions.astype(jnp.int32)
    words = jnp.concatenate(
        [jnp.zeros((1, S), jnp.int32),                     # t = 0 slot (unused)
         jnp.ones((1, S), jnp.int32),                      # <start> at t = 1
         cap[:, 1:T - 1].T], axis=0)                       # (T, S)
    x_seq = jnp.take(params["emb"], words, axis=0)         # (T, S, E)

    # 1) Hoisted input->gates projection: ONE lane-dense batched matmul for
    #    all (t, s) instead of T tiny M=S dots inside the recurrence.
    xg = matmul_bias(x_seq.reshape(T * S, E), wx0, b0,
                     out_dtype=jnp.float32,
                     precision=lax.Precision.HIGHEST,
                     vmem_limit=vmem_limit).reshape(T, S, 4 * H)

    # 2) Recurrence -> bf16 hidden states for every (t, s).  Story-chunk grid
    #    axis lets v7x split independent stories across its two TensorCores;
    #    weight index_maps are constant so weights stay VMEM-resident.
    s_chunk = S // 2 if (S % 16 == 0) else S               # keep (8,128) rule
    n_chunks = S // s_chunk
    h_all = pl.pallas_call(
        _recurrence_kernel,
        out_shape=jax.ShapeDtypeStruct((T, S, H), jnp.bfloat16),
        grid=(n_chunks,),
        in_specs=[
            pl.BlockSpec((T, s_chunk, 4 * H), lambda s: (0, s, 0)),
            pl.BlockSpec((s_chunk, R, H), lambda s: (s, 0, 0)),
            pl.BlockSpec((s_chunk, R, P), lambda s: (s, 0, 0)),
            pl.BlockSpec((P + H, 4 * H), lambda s: (0, 0)),
            pl.BlockSpec((2 * H, 4 * H), lambda s: (0, 0)),
            pl.BlockSpec((1, 4 * H), lambda s: (0, 0)),
            pl.BlockSpec((2, H), lambda s: (0, 0)),
            pl.BlockSpec((2, H), lambda s: (0, 0)),
            pl.BlockSpec((1, P), lambda s: (0, 0)),
        ],
        out_specs=pl.BlockSpec((T, s_chunk, H), lambda s: (0, s, 0)),
        compiler_params=pltpu.CompilerParams(
            dimension_semantics=("parallel",),
            vmem_limit_bytes=vmem_limit),
    )(xg, keys, values, wch0, wih1, b1, ih, ic, ictx)

    # 3) Vocab projection over all timesteps/stories.  Transpose the SMALL
    #    bf16 hidden tensor (not the huge logits) so the output is already
    #    (S, T, V)-contiguous; the start-vector rows are fused in-kernel.
    h_flat = h_all.transpose(1, 0, 2).reshape(S * T, H)    # bf16, tiny copy
    logits = matmul_bias(h_flat, wo_bf16, bo,
                         out_dtype=jnp.float32,
                         precision=None,                   # native bf16 MXU
                         start_overwrite=dict(seq_len=T, col=1, value=10000.0),
                         vmem_limit=vmem_limit)            # (S*T, V)
    return logits.reshape(S, T, V)


# ----------------------------------------------------------------------------
# Synthetic parameters + pure-numpy reference (mirrors forward_per_sentence).
# ----------------------------------------------------------------------------
def init_params(key, V, E, H, P):
    ks = jax.random.split(key, 10)
    lim = 1.0 / np.sqrt(H)
    u = lambda k, shape: jax.random.uniform(k, shape, jnp.float32, -lim, lim)
    return {
        "emb": 0.1 * jax.random.normal(ks[0], (V, E), jnp.float32),
        "Wih0": u(ks[1], (4 * H, E + P)),
        "Whh0": u(ks[2], (4 * H, H)),
        "bih0": u(ks[3], (4 * H,)),
        "bhh0": u(ks[4], (4 * H,)),
        "Wih1": u(ks[5], (4 * H, H)),
        "Whh1": u(ks[6], (4 * H, H)),
        "bih1": u(ks[7], (4 * H,)),
        "bhh1": u(ks[8], (4 * H,)),
        "Wout": 0.1 * jax.random.normal(ks[9], (V, H), jnp.float32),
        "bout": jnp.zeros((V,), jnp.float32),
        # nn.Parameter(torch.zeros(...)) at init
        "init_h": jnp.zeros((2, H), jnp.float32),
        "init_c": jnp.zeros((2, H), jnp.float32),
        "init_ctx": jnp.zeros((1, P), jnp.float32),
    }


def reference_forward(keys, values, captions, p):
    S, R, H = keys.shape
    P = values.shape[-1]
    T = captions.shape[1]
    V, E = p["emb"].shape
    sig = lambda z: 1.0 / (1.0 + np.exp(-z))

    def lstm_cell(inp, h, c, Wih, Whh, bih, bhh):
        g = inp @ Wih.T + h @ Whh.T + bih + bhh
        i, f, gg, o = np.split(g, 4, axis=-1)
        cn = sig(f) * c + sig(i) * np.tanh(gg)
        hn = sig(o) * np.tanh(cn)
        return hn, cn

    out = np.zeros((S, T, V), np.float32)
    for s in range(S):
        h = [np.zeros((1, H), np.float32), np.zeros((1, H), np.float32)]
        c = [np.zeros((1, H), np.float32), np.zeros((1, H), np.float32)]
        ctx = np.zeros((1, P), np.float32)
        out[s, 0, 1] = 10000.0
        for t in range(1, T):
            w = 1 if t == 1 else int(captions[s, t - 1])
            x = p["emb"][w:w + 1]
            rnn_in = np.concatenate([x, ctx], axis=-1)
            h[0], c[0] = lstm_cell(rnn_in, h[0], c[0],
                                   p["Wih0"], p["Whh0"], p["bih0"], p["bhh0"])
            h[1], c[1] = lstm_cell(h[0], h[1], c[1],
                                   p["Wih1"], p["Whh1"], p["bih1"], p["bhh1"])
            e = (keys[s] @ h[1].T)[:, 0]
            a = np.exp(e - e.max())
            a = a / a.sum()
            ctx = a[None, :] @ values[s]
            logits = h[1] @ p["Wout"].T + p["bout"][None, :]
            out[s, t] = logits[0]
    return out


if __name__ == "__main__":
    S, R, T = 2, 8, 8            # stories, image regions, sequence length
    H, E, P, V = 32, 32, 16, 64  # hidden, embed, proj, vocab sizes

    key = jax.random.PRNGKey(0)
    k1, k2, k3, kp = jax.random.split(key, 4)
    keys_enc = jax.random.normal(k1, (S, R, H), jnp.float32)
    vals_enc = jax.random.normal(k2, (S, R, P), jnp.float32)
    captions = jax.random.randint(k3, (S, T), 2, V)
    params = init_params(kp, V, E, H, P)

    fwd = jax.jit(decoder_story_forward)
    out = jax.block_until_ready(fwd(keys_enc, vals_enc, captions, params))

    ref = reference_forward(np.asarray(keys_enc), np.asarray(vals_enc),
                            np.asarray(captions),
                            {k: np.asarray(v) for k, v in params.items()})
    # Tolerance reflects the deliberate bf16 hidden-state / bf16 Wout path in
    # the vocab projection (f32 accumulation) and the approx EUP reciprocal in
    # the attention softmax.
    np.testing.assert_allclose(np.asarray(out), ref, rtol=2e-2, atol=2e-2)
    print("KERNEL_OK")
</pallas_src>

<mosaic_0001>
module attributes {stable_mosaic.version = 11 : i64} {
  func.func @_matmul_bias_kernel(%arg0: i32, %arg1: i32, %arg2: memref<16x32xf32, #tpu.memory_space<vmem>>, %arg3: memref<32x128xf32, #tpu.memory_space<vmem>>, %arg4: memref<1x128xf32, #tpu.memory_space<vmem>>, %arg5: memref<16x128xf32, #tpu.memory_space<vmem>>) attributes {dimension_semantics = [#tpu.dimension_semantics<parallel>, #tpu.dimension_semantics<parallel>], iteration_bounds = array<i64: 1, 1>, scalar_prefetch = 0 : i64, scratch_operands = 0 : i64, tpu.core_type = #tpu.core_type<tc>, window_params = [{transform_indices = @transform_0, window_bounds = array<i64: 16, 32>}, {transform_indices = @transform_1, window_bounds = array<i64: 32, 128>}, {transform_indices = @transform_2, window_bounds = array<i64: 1, 128>}, {transform_indices = @transform_3, window_bounds = array<i64: 16, 128>}]} {
    %c0 = arith.constant 0 : index
    %c0_0 = arith.constant 0 : index
    %0 = vector.load %arg2[%c0, %c0_0] : memref<16x32xf32, #tpu.memory_space<vmem>>, vector<16x32xf32>
    %c0_1 = arith.constant 0 : index
    %c0_2 = arith.constant 0 : index
    %1 = vector.load %arg3[%c0_1, %c0_2] : memref<32x128xf32, #tpu.memory_space<vmem>>, vector<32x128xf32>
    %cst = arith.constant dense<0.000000e+00> : vector<16x128xf32>
    %2 = tpu.matmul %0, %1, %cst {dimension_numbers = #tpu.dot_dimension_numbers<[1], [0], [0], [1], [0, 0, 1, 1], [], []>, precision = #tpu.contract_precision<fp32>} : vector<16x32xf32>, vector<32x128xf32>, vector<16x128xf32> -> vector<16x128xf32>
    %c0_3 = arith.constant 0 : index
    %c0_4 = arith.constant 0 : index
    %3 = vector.load %arg4[%c0_3, %c0_4] : memref<1x128xf32, #tpu.memory_space<vmem>>, vector<1x128xf32>
    %4 = vector.broadcast %3 : vector<1x128xf32> to vector<16x128xf32>
    %5 = arith.addf %2, %4 : vector<16x128xf32>
    %c0_5 = arith.constant 0 : index
    %c0_6 = arith.constant 0 : index
    %6 = vector.load %arg5[%c0_5, %c0_6] : memref<16x128xf32, #tpu.memory_space<vmem>>, vector<16x128xf32>
    tpu.vector_store %arg5[%c0_5, %c0_6], %5 {strides = array<i32>} : memref<16x128xf32, #tpu.memory_space<vmem>>, vector<16x128xf32>,
    return
  }
  func.func @transform_0(%arg0: i32, %arg1: i32) -> (i32, i32) {
    %c0_i32 = arith.constant 0 : i32
    %c0_i32_0 = arith.constant 0 : i32
    return %arg1, %c0_i32 : i32, i32
  }
  func.func @transform_1(%arg0: i32, %arg1: i32) -> (i32, i32) {
    %c0_i32 = arith.constant 0 : i32
    %c0_i32_0 = arith.constant 0 : i32
    return %c0_i32, %arg0 : i32, i32
  }
  func.func @transform_2(%arg0: i32, %arg1: i32) -> (i32, i32) {
    %c0_i32 = arith.constant 0 : i32
    %c0_i32_0 = arith.constant 0 : i32
    return %c0_i32, %arg0 : i32, i32
  }
  func.func @transform_3(%arg0: i32, %arg1: i32) -> (i32, i32) {
    %c0_i32 = arith.constant 0 : i32
    return %arg1, %arg0 : i32, i32
  }
}

module attributes {stable_mosaic.version = 11 : i64} {
  func.func @_matmul_bias_kernel(%arg0: i32, %arg1: i32, %arg2: memref<16x32xbf16, #tpu.memory_space<vmem>>, %arg3: memref<32x128xbf16, #tpu.memory_space<vmem>>, %arg4: memref<1x128xf32, #tpu.memory_space<vmem>>, %arg5: memref<16x128xf32, #tpu.memory_space<vmem>>) attributes {dimension_semantics = [#tpu.dimension_semantics<parallel>, #tpu.dimension_semantics<parallel>], iteration_bounds = array<i64: 1, 1>, scalar_prefetch = 0 : i64, scratch_operands = 0 : i64, tpu.core_type = #tpu.core_type<tc>, window_params = [{transform_indices = @transform_0, window_bounds = array<i64: 16, 32>}, {transform_indices = @transform_1, window_bounds = array<i64: 32, 128>}, {transform_indices = @transform_2, window_bounds = array<i64: 1, 128>}, {transform_indices = @transform_3, window_bounds = array<i64: 16, 128>}]} {
    %c0 = arith.constant 0 : index
    %c0_0 = arith.constant 0 : index
    %0 = vector.load %arg2[%c0, %c0_0] : memref<16x32xbf16, #tpu.memory_space<vmem>>, vector<16x32xbf16>
    %c0_1 = arith.constant 0 : index
    %c0_2 = arith.constant 0 : index
    %1 = vector.load %arg3[%c0_1, %c0_2] : memref<32x128xbf16, #tpu.memory_space<vmem>>, vector<32x128xbf16>
    %cst = arith.constant dense<0.000000e+00> : vector<16x128xf32>
    %2 = tpu.matmul %0, %1, %cst {dimension_numbers = #tpu.dot_dimension_numbers<[1], [0], [0], [1], [0, 0, 1, 1], [], []>} : vector<16x32xbf16>, vector<32x128xbf16>, vector<16x128xf32> -> vector<16x128xf32>
    %c0_3 = arith.constant 0 : index
    %c0_4 = arith.constant 0 : index
    %3 = vector.load %arg4[%c0_3, %c0_4] : memref<1x128xf32, #tpu.memory_space<vmem>>, vector<1x128xf32>
    %4 = vector.broadcast %3 : vector<1x128xf32> to vector<16x128xf32>
    %5 = arith.addf %2, %4 : vector<16x128xf32>
    %c16_i32 = arith.constant 16 : i32
    %6 = arith.muli %arg1, %c16_i32 : i32
    %7 = tpu.iota {dimensions = array<i32: 0>} : vector<16x128xi32>
    %8 = vector.broadcast %6 : i32 to vector<16x128xi32>
    %9 = arith.addi %8, %7 : vector<16x128xi32>
    %c128_i32 = arith.constant 128 : i32
    %10 = arith.muli %arg0, %c128_i32 : i32
    %11 = tpu.iota {dimensions = array<i32: 1>} : vector<16x128xi32>
    %12 = vector.broadcast %10 : i32 to vector<16x128xi32>
    %13 = arith.addi %12, %11 : vector<16x128xi32>
    %c8_i32 = arith.constant 8 : i32
    %c0_i32 = arith.constant 0 : i32
    %14 = arith.cmpi eq, %c8_i32, %c0_i32 : i32
    %c1_i32 = arith.constant 1 : i32
    %15 = arith.select %14, %c1_i32, %c8_i32 : i32
    %16 = vector.broadcast %15 : i32 to vector<16x128xi32>
    %17 = arith.remsi %9, %16 : vector<16x128xi32>
    %c0_i32_5 = arith.constant 0 : i32
    %18 = vector.broadcast %c0_i32_5 : i32 to vector<16x128xi32>
    %19 = arith.cmpi ne, %17, %18 : vector<16x128xi32>
    %c0_i32_6 = arith.constant 0 : i32
    %20 = vector.broadcast %c0_i32_6 : i32 to vector<16x128xi32>
    %21 = arith.cmpi slt, %17, %20 : vector<16x128xi32>
    %c0_i32_7 = arith.constant 0 : i32
    %22 = arith.cmpi slt, %15, %c0_i32_7 : i32
    %23 = vector.broadcast %22 : i1 to vector<16x128xi1>
    %24 = vector.broadcast %23 : vector<16x128xi1> to vector<16x128xi1>
    %25 = arith.xori %21, %24 : vector<16x128xi1>
    %26 = arith.andi %25, %19 : vector<16x128xi1>
    %27 = vector.broadcast %15 : i32 to vector<16x128xi32>
    %28 = arith.addi %17, %27 : vector<16x128xi32>
    %29 = arith.select %26, %28, %17 : vector<16x128xi1>, vector<16x128xi32>
    %c0_i32_8 = arith.constant 0 : i32
    %30 = vector.broadcast %c0_i32_8 : i32 to vector<16x128xi32>
    %31 = arith.cmpi eq, %29, %30 : vector<16x128xi32>
    %c16_i32_9 = arith.constant 16 : i32
    %32 = vector.broadcast %c16_i32_9 : i32 to vector<16x128xi32>
    %33 = arith.cmpi slt, %9, %32 : vector<16x128xi32>
    %34 = arith.andi %31, %33 : vector<16x128xi1>
    %c1_i32_10 = arith.constant 1 : i32
    %35 = vector.broadcast %c1_i32_10 : i32 to vector<16x128xi32>
    %36 = arith.cmpi eq, %13, %35 : vector<16x128xi32>
    %cst_11 = arith.constant 1.000000e+04 : f32
    %cst_12 = arith.constant 0.000000e+00 : f32
    %37 = vector.broadcast %cst_11 : f32 to vector<16x128xf32>
    %38 = vector.broadcast %cst_12 : f32 to vector<16x128xf32>
    %39 = arith.select %36, %37, %38 : vector<16x128xi1>, vector<16x128xf32>
    %40 = arith.select %34, %39, %5 : vector<16x128xi1>, vector<16x128xf32>
    %c0_13 = arith.constant 0 : index
    %c0_14 = arith.constant 0 : index
    %41 = vector.load %arg5[%c0_13, %c0_14] : memref<16x128xf32, #tpu.memory_space<vmem>>, vector<16x128xf32>
    tpu.vector_store %arg5[%c0_13, %c0_14], %40 {strides = array<i32>} : memref<16x128xf32, #tpu.memory_space<vmem>>, vector<16x128xf32>,
    return
  }
  func.func @transform_0(%arg0: i32, %arg1: i32) -> (i32, i32) {
    %c0_i32 = arith.constant 0 : i32
    %c0_i32_0 = arith.constant 0 : i32
    return %arg1, %c0_i32 : i32, i32
  }
  func.func @transform_1(%arg0: i32, %arg1: i32) -> (i32, i32) {
    %c0_i32 = arith.constant 0 : i32
    %c0_i32_0 = arith.constant 0 : i32
    return %c0_i32, %arg0 : i32, i32
  }
  func.func @transform_2(%arg0: i32, %arg1: i32) -> (i32, i32) {
    %c0_i32 = arith.constant 0 : i32
    %c0_i32_0 = arith.constant 0 : i32
    return %c0_i32, %arg0 : i32, i32
  }
  func.func @transform_3(%arg0: i32, %arg1: i32) -> (i32, i32) {
    %c0_i32 = arith.constant 0 : i32
    return %arg1, %arg0 : i32, i32
  }
}

module attributes {stable_mosaic.version = 11 : i64} {
  func.func @_recurrence_kernel(%arg0: i32, %arg1: memref<8x2x128xf32, #tpu.memory_space<vmem>>, %arg2: memref<2x8x32xf32, #tpu.memory_space<vmem>>, %arg3: memref<2x8x16xf32, #tpu.memory_space<vmem>>, %arg4: memref<48x128xf32, #tpu.memory_space<vmem>>, %arg5: memref<64x128xf32, #tpu.memory_space<vmem>>, %arg6: memref<1x128xf32, #tpu.memory_space<vmem>>, %arg7: memref<2x32xf32, #tpu.memory_space<vmem>>, %arg8: memref<2x32xf32, #tpu.memory_space<vmem>>, %arg9: memref<1x16xf32, #tpu.memory_space<vmem>>, %arg10: memref<8x2x32xbf16, #tpu.memory_space<vmem>>) attributes {dimension_semantics = [#tpu.dimension_semantics<parallel>], iteration_bounds = array<i64: 1>, scalar_prefetch = 0 : i64, scratch_operands = 0 : i64, tpu.core_type = #tpu.core_type<tc>, window_params = [{transform_indices = @transform_0, window_bounds = array<i64: 8, 2, 128>}, {transform_indices = @transform_1, window_bounds = array<i64: 2, 8, 32>}, {transform_indices = @transform_2, window_bounds = array<i64: 2, 8, 16>}, {pipeline_mode = #tpu.pipeline_mode<synchronous>, transform_indices = @transform_3, window_bounds = array<i64: 48, 128>}, {pipeline_mode = #tpu.pipeline_mode<synchronous>, transform_indices = @transform_4, window_bounds = array<i64: 64, 128>}, {pipeline_mode = #tpu.pipeline_mode<synchronous>, transform_indices = @transform_5, window_bounds = array<i64: 1, 128>}, {pipeline_mode = #tpu.pipeline_mode<synchronous>, transform_indices = @transform_6, window_bounds = array<i64: 2, 32>}, {pipeline_mode = #tpu.pipeline_mode<synchronous>, transform_indices = @transform_7, window_bounds = array<i64: 2, 32>}, {pipeline_mode = #tpu.pipeline_mode<synchronous>, transform_indices = @transform_8, window_bounds = array<i64: 1, 16>}, {transform_indices = @transform_9, window_bounds = array<i64: 8, 2, 32>}]} {
    %c0 = arith.constant 0 : index
    %c0_0 = arith.constant 0 : index
    %0 = vector.load %arg4[%c0, %c0_0] : memref<48x128xf32, #tpu.memory_space<vmem>>, vector<48x128xf32>
    %c0_1 = arith.constant 0 : index
    %c0_2 = arith.constant 0 : index
    %1 = vector.load %arg5[%c0_1, %c0_2] : memref<64x128xf32, #tpu.memory_space<vmem>>, vector<64x128xf32>
    %c0_3 = arith.constant 0 : index
    %c0_4 = arith.constant 0 : index
    %2 = vector.load %arg6[%c0_3, %c0_4] : memref<1x128xf32, #tpu.memory_space<vmem>>, vector<1x128xf32>
    %c0_5 = arith.constant 0 : index
    %c0_6 = arith.constant 0 : index
    %c0_7 = arith.constant 0 : index
    %3 = vector.load %arg2[%c0_5, %c0_6, %c0_7] : memref<2x8x32xf32, #tpu.memory_space<vmem>>, vector<2x8x32xf32>
    %c0_8 = arith.constant 0 : index
    %c0_9 = arith.constant 0 : index
    %c0_10 = arith.constant 0 : index
    %4 = vector.load %arg3[%c0_8, %c0_9, %c0_10] : memref<2x8x16xf32, #tpu.memory_space<vmem>>, vector<2x8x16xf32>
    %c0_11 = arith.constant 0 : index
    %c0_12 = arith.constant 0 : index
    %5 = vector.load %arg7[%c0_11, %c0_12] : memref<2x32xf32, #tpu.memory_space<vmem>>, vector<1x32xf32>
    %6 = vector.shape_cast %5 : vector<1x32xf32> to vector<1x32xf32>
    %7 = vector.broadcast %6 : vector<1x32xf32> to vector<2x32xf32>
    %c1 = arith.constant 1 : index
    %c0_13 = arith.constant 0 : index
    %8 = vector.load %arg7[%c1, %c0_13] : memref<2x32xf32, #tpu.memory_space<vmem>>, vector<1x32xf32>
    %9 = vector.shape_cast %8 : vector<1x32xf32> to vector<1x32xf32>
    %10 = vector.broadcast %9 : vector<1x32xf32> to vector<2x32xf32>
    %c0_14 = arith.constant 0 : index
    %c0_15 = arith.constant 0 : index
    %11 = vector.load %arg8[%c0_14, %c0_15] : memref<2x32xf32, #tpu.memory_space<vmem>>, vector<1x32xf32>
    %12 = vector.shape_cast %11 : vector<1x32xf32> to vector<1x32xf32>
    %13 = vector.broadcast %12 : vector<1x32xf32> to vector<2x32xf32>
    %c1_16 = arith.constant 1 : index
    %c0_17 = arith.constant 0 : index
    %14 = vector.load %arg8[%c1_16, %c0_17] : memref<2x32xf32, #tpu.memory_space<vmem>>, vector<1x32xf32>
    %15 = vector.shape_cast %14 : vector<1x32xf32> to vector<1x32xf32>
    %16 = vector.broadcast %15 : vector<1x32xf32> to vector<2x32xf32>
    %c0_18 = arith.constant 0 : index
    %c0_19 = arith.constant 0 : index
    %17 = vector.load %arg9[%c0_18, %c0_19] : memref<1x16xf32, #tpu.memory_space<vmem>>, vector<1x16xf32>
    %18 = vector.shape_cast %17 : vector<1x16xf32> to vector<1x16xf32>
    %19 = vector.broadcast %18 : vector<1x16xf32> to vector<2x16xf32>
    %cst = arith.constant 0.000000e+00 : bf16
    %20 = vector.broadcast %cst : bf16 to vector<2x32xbf16>
    %c0_20 = arith.constant 0 : index
    %c0_21 = arith.constant 0 : index
    %c0_22 = arith.constant 0 : index
    %21 = vector.load %arg10[%c0_20, %c0_21, %c0_22] : memref<8x2x32xbf16, #tpu.memory_space<vmem>>, vector<1x2x32xbf16>
    %22 = vector.shape_cast %21 : vector<1x2x32xbf16> to vector<2x32xbf16>
    %23 = vector.shape_cast %20 : vector<2x32xbf16> to vector<1x2x32xbf16>
    tpu.vector_store %arg10[%c0_20, %c0_21, %c0_22], %23 {strides = array<i32>} : memref<8x2x32xbf16, #tpu.memory_space<vmem>>, vector<1x2x32xbf16>,
    %c1_i32 = arith.constant 1 : i32
    %24 = arith.index_cast %c1_i32 : i32 to index
    %c0_23 = arith.constant 0 : index
    %c0_24 = arith.constant 0 : index
    %25 = vector.load %arg1[%24, %c0_23, %c0_24] : memref<8x2x128xf32, #tpu.memory_space<vmem>>, vector<1x2x128xf32>
    %26 = vector.shape_cast %25 : vector<1x2x128xf32> to vector<2x128xf32>
    %27 = tpu.concatenate %19, %7 in 1 : vector<2x16xf32>, vector<2x32xf32> -> vector<2x48xf32>
    %cst_25 = arith.constant dense<0.000000e+00> : vector<2x128xf32>
    %28 = tpu.matmul %27, %0, %cst_25 {dimension_numbers = #tpu.dot_dimension_numbers<[1], [0], [0], [1], [0, 0, 1, 1], [], []>, precision = #tpu.contract_precision<fp32>} : vector<2x48xf32>, vector<48x128xf32>, vector<2x128xf32> -> vector<2x128xf32>
    %29 = arith.addf %26, %28 : vector<2x128xf32>
    %30 = vector.extract_strided_slice %29 {offsets = [0, 0], sizes = [2, 32], strides = [1, 1]} : vector<2x128xf32> to vector<2x32xf32>
    %31 = arith.negf %30 : vector<2x32xf32>
    %32 = math.exp %31 : vector<2x32xf32>
    %cst_26 = arith.constant 1.000000e+00 : f32
    %33 = vector.broadcast %cst_26 : f32 to vector<2x32xf32>
    %34 = arith.addf %33, %32 : vector<2x32xf32>
    %35 = arith.divf %33, %34 : vector<2x32xf32>
    %36 = vector.extract_strided_slice %29 {offsets = [0, 32], sizes = [2, 32], strides = [1, 1]} : vector<2x128xf32> to vector<2x32xf32>
    %37 = arith.negf %36 : vector<2x32xf32>
    %38 = math.exp %37 : vector<2x32xf32>
    %cst_27 = arith.constant 1.000000e+00 : f32
    %39 = vector.broadcast %cst_27 : f32 to vector<2x32xf32>
    %40 = arith.addf %39, %38 : vector<2x32xf32>
    %41 = arith.divf %39, %40 : vector<2x32xf32>
    %42 = vector.extract_strided_slice %29 {offsets = [0, 64], sizes = [2, 32], strides = [1, 1]} : vector<2x128xf32> to vector<2x32xf32>
    %43 = math.tanh %42 : vector<2x32xf32>
    %44 = vector.extract_strided_slice %29 {offsets = [0, 96], sizes = [2, 32], strides = [1, 1]} : vector<2x128xf32> to vector<2x32xf32>
    %45 = arith.negf %44 : vector<2x32xf32>
    %46 = math.exp %45 : vector<2x32xf32>
    %cst_28 = arith.constant 1.000000e+00 : f32
    %47 = vector.broadcast %cst_28 : f32 to vector<2x32xf32>
    %48 = arith.addf %47, %46 : vector<2x32xf32>
    %49 = arith.divf %47, %48 : vector<2x32xf32>
    %50 = arith.mulf %41, %13 : vector<2x32xf32>
    %51 = arith.mulf %35, %43 : vector<2x32xf32>
    %52 = arith.addf %50, %51 : vector<2x32xf32>
    %53 = math.tanh %52 : vector<2x32xf32>
    %54 = arith.mulf %49, %53 : vector<2x32xf32>
    %55 = tpu.concatenate %54, %10 in 1 : vector<2x32xf32>, vector<2x32xf32> -> vector<2x64xf32>
    %cst_29 = arith.constant dense<0.000000e+00> : vector<2x128xf32>
    %56 = tpu.matmul %55, %1, %cst_29 {dimension_numbers = #tpu.dot_dimension_numbers<[1], [0], [0], [1], [0, 0, 1, 1], [], []>, precision = #tpu.contract_precision<fp32>} : vector<2x64xf32>, vector<64x128xf32>, vector<2x128xf32> -> vector<2x128xf32>
    %57 = vector.broadcast %2 : vector<1x128xf32> to vector<2x128xf32>
    %58 = arith.addf %56, %57 : vector<2x128xf32>
    %59 = vector.extract_strided_slice %58 {offsets = [0, 0], sizes = [2, 32], strides = [1, 1]} : vector<2x128xf32> to vector<2x32xf32>
    %60 = arith.negf %59 : vector<2x32xf32>
    %61 = math.exp %60 : vector<2x32xf32>
    %cst_30 = arith.constant 1.000000e+00 : f32
    %62 = vector.broadcast %cst_30 : f32 to vector<2x32xf32>
    %63 = arith.addf %62, %61 : vector<2x32xf32>
    %64 = arith.divf %62, %63 : vector<2x32xf32>
    %65 = vector.extract_strided_slice %58 {offsets = [0, 32], sizes = [2, 32], strides = [1, 1]} : vector<2x128xf32> to vector<2x32xf32>
    %66 = arith.negf %65 : vector<2x32xf32>
    %67 = math.exp %66 : vector<2x32xf32>
    %cst_31 = arith.constant 1.000000e+00 : f32
    %68 = vector.broadcast %cst_31 : f32 to vector<2x32xf32>
    %69 = arith.addf %68, %67 : vector<2x32xf32>
    %70 = arith.divf %68, %69 : vector<2x32xf32>
    %71 = vector.extract_strided_slice %58 {offsets = [0, 64], sizes = [2, 32], strides = [1, 1]} : vector<2x128xf32> to vector<2x32xf32>
    %72 = math.tanh %71 : vector<2x32xf32>
    %73 = vector.extract_strided_slice %58 {offsets = [0, 96], sizes = [2, 32], strides = [1, 1]} : vector<2x128xf32> to vector<2x32xf32>
    %74 = arith.negf %73 : vector<2x32xf32>
    %75 = math.exp %74 : vector<2x32xf32>
    %cst_32 = arith.constant 1.000000e+00 : f32
    %76 = vector.broadcast %cst_32 : f32 to vector<2x32xf32>
    %77 = arith.addf %76, %75 : vector<2x32xf32>
    %78 = arith.divf %76, %77 : vector<2x32xf32>
    %79 = arith.mulf %70, %16 : vector<2x32xf32>
    %80 = arith.mulf %64, %72 : vector<2x32xf32>
    %81 = arith.addf %79, %80 : vector<2x32xf32>
    %82 = math.tanh %81 : vector<2x32xf32>
    %83 = arith.mulf %78, %82 : vector<2x32xf32>
    %84 = vector.shape_cast %83 : vector<2x32xf32> to vector<2x1x32xf32>
    %85 = vector.broadcast %84 : vector<2x1x32xf32> to vector<2x8x32xf32>
    %86 = arith.mulf %3, %85 : vector<2x8x32xf32>
    %cst_33 = arith.constant dense<0.000000e+00> : vector<2x8xf32>
    %87 = vector.multi_reduction <add>, %86, %cst_33 [2] : vector<2x8x32xf32> to vector<2x8xf32>
    %cst_34 = arith.constant dense<0xFF800000> : vector<2xf32>
    %88 = vector.multi_reduction <maximumf>, %87, %cst_34 [1] : vector<2x8xf32> to vector<2xf32>
    %89 = vector.shape_cast %88 : vector<2xf32> to vector<2x1xf32>
    %90 = vector.broadcast %89 : vector<2x1xf32> to vector<2x8xf32>
    %91 = arith.subf %87, %90 : vector<2x8xf32>
    %92 = math.exp %91 : vector<2x8xf32>
    %cst_35 = arith.constant dense<0.000000e+00> : vector<2xf32>
    %93 = vector.multi_reduction <add>, %92, %cst_35 [1] : vector<2x8xf32> to vector<2xf32>
    %94 = vector.shape_cast %93 : vector<2xf32> to vector<2x1xf32>
    %95 = tpu.reciprocal %94 {approx = true} : vector<2x1xf32> -> vector<2x1xf32>
    %96 = vector.broadcast %95 : vector<2x1xf32> to vector<2x8xf32>
    %97 = arith.mulf %92, %96 : vector<2x8xf32>
    %98 = vector.shape_cast %97 : vector<2x8xf32> to vector<2x8x1xf32>
    %99 = vector.broadcast %98 : vector<2x8x1xf32> to vector<2x8x16xf32>
    %100 = arith.mulf %99, %4 : vector<2x8x16xf32>
    %cst_36 = arith.constant dense<0.000000e+00> : vector<2x16xf32>
    %101 = vector.multi_reduction <add>, %100, %cst_36 [1] : vector<2x8x16xf32> to vector<2x16xf32>
    %102 = arith.truncf %83 : vector<2x32xf32> to vector<2x32xbf16>
    %103 = arith.index_cast %c1_i32 : i32 to index
    %c0_37 = arith.constant 0 : index
    %c0_38 = arith.constant 0 : index
    %104 = vector.load %arg10[%103, %c0_37, %c0_38] : memref<8x2x32xbf16, #tpu.memory_space<vmem>>, vector<1x2x32xbf16>
    %105 = vector.shape_cast %104 : vector<1x2x32xbf16> to vector<2x32xbf16>
    %106 = vector.shape_cast %102 : vector<2x32xbf16> to vector<1x2x32xbf16>
    tpu.vector_store %arg10[%103, %c0_37, %c0_38], %106 {strides = array<i32>} : memref<8x2x32xbf16, #tpu.memory_space<vmem>>, vector<1x2x32xbf16>,
    %c2_i32 = arith.constant 2 : i32
    %107 = arith.index_cast %c2_i32 : i32 to index
    %c0_39 = arith.constant 0 : index
    %c0_40 = arith.constant 0 : index
    %108 = vector.load %arg1[%107, %c0_39, %c0_40] : memref<8x2x128xf32, #tpu.memory_space<vmem>>, vector<1x2x128xf32>
    %109 = vector.shape_cast %108 : vector<1x2x128xf32> to vector<2x128xf32>
    %110 = tpu.concatenate %101, %54 in 1 : vector<2x16xf32>, vector<2x32xf32> -> vector<2x48xf32>
    %cst_41 = arith.constant dense<0.000000e+00> : vector<2x128xf32>
    %111 = tpu.matmul %110, %0, %cst_41 {dimension_numbers = #tpu.dot_dimension_numbers<[1], [0], [0], [1], [0, 0, 1, 1], [], []>, precision = #tpu.contract_precision<fp32>} : vector<2x48xf32>, vector<48x128xf32>, vector<2x128xf32> -> vector<2x128xf32>
    %112 = arith.addf %109, %111 : vector<2x128xf32>
    %113 = vector.extract_strided_slice %112 {offsets = [0, 0], sizes = [2, 32], strides = [1, 1]} : vector<2x128xf32> to vector<2x32xf32>
    %114 = arith.negf %113 : vector<2x32xf32>
    %115 = math.exp %114 : vector<2x32xf32>
    %cst_42 = arith.constant 1.000000e+00 : f32
    %116 = vector.broadcast %cst_42 : f32 to vector<2x32xf32>
    %117 = arith.addf %116, %115 : vector<2x32xf32>
    %118 = arith.divf %116, %117 : vector<2x32xf32>
    %119 = vector.extract_strided_slice %112 {offsets = [0, 32], sizes = [2, 32], strides = [1, 1]} : vector<2x128xf32> to vector<2x32xf32>
    %120 = arith.negf %119 : vector<2x32xf32>
    %121 = math.exp %120 : vector<2x32xf32>
    %cst_43 = arith.constant 1.000000e+00 : f32
    %122 = vector.broadcast %cst_43 : f32 to vector<2x32xf32>
    %123 = arith.addf %122, %121 : vector<2x32xf32>
    %124 = arith.divf %122, %123 : vector<2x32xf32>
    %125 = vector.extract_strided_slice %112 {offsets = [0, 64], sizes = [2, 32], strides = [1, 1]} : vector<2x128xf32> to vector<2x32xf32>
    %126 = math.tanh %125 : vector<2x32xf32>
    %127 = vector.extract_strided_slice %112 {offsets = [0, 96], sizes = [2, 32], strides = [1, 1]} : vector<2x128xf32> to vector<2x32xf32>
    %128 = arith.negf %127 : vector<2x32xf32>
    %129 = math.exp %128 : vector<2x32xf32>
    %cst_44 = arith.constant 1.000000e+00 : f32
    %130 = vector.broadcast %cst_44 : f32 to vector<2x32xf32>
    %131 = arith.addf %130, %129 : vector<2x32xf32>
    %132 = arith.divf %130, %131 : vector<2x32xf32>
    %133 = arith.mulf %124, %52 : vector<2x32xf32>
    %134 = arith.mulf %118, %126 : vector<2x32xf32>
    %135 = arith.addf %133, %134 : vector<2x32xf32>
    %136 = math.tanh %135 : vector<2x32xf32>
    %137 = arith.mulf %132, %136 : vector<2x32xf32>
    %138 = tpu.concatenate %137, %83 in 1 : vector<2x32xf32>, vector<2x32xf32> -> vector<2x64xf32>
    %cst_45 = arith.constant dense<0.000000e+00> : vector<2x128xf32>
    %139 = tpu.matmul %138, %1, %cst_45 {dimension_numbers = #tpu.dot_dimension_numbers<[1], [0], [0], [1], [0, 0, 1, 1], [], []>, precision = #tpu.contract_precision<fp32>} : vector<2x64xf32>, vector<64x128xf32>, vector<2x128xf32> -> vector<2x128xf32>
    %140 = vector.broadcast %2 : vector<1x128xf32> to vector<2x128xf32>
    %141 = arith.addf %139, %140 : vector<2x128xf32>
    %142 = vector.extract_strided_slice %141 {offsets = [0, 0], sizes = [2, 32], strides = [1, 1]} : vector<2x128xf32> to vector<2x32xf32>
    %143 = arith.negf %142 : vector<2x32xf32>
    %144 = math.exp %143 : vector<2x32xf32>
    %cst_46 = arith.constant 1.000000e+00 : f32
    %145 = vector.broadcast %cst_46 : f32 to vector<2x32xf32>
    %146 = arith.addf %145, %144 : vector<2x32xf32>
    %147 = arith.divf %145, %146 : vector<2x32xf32>
    %148 = vector.extract_strided_slice %141 {offsets = [0, 32], sizes = [2, 32], strides = [1, 1]} : vector<2x128xf32> to vector<2x32xf32>
    %149 = arith.negf %148 : vector<2x32xf32>
    %150 = math.exp %149 : vector<2x32xf32>
    %cst_47 = arith.constant 1.000000e+00 : f32
    %151 = vector.broadcast %cst_47 : f32 to vector<2x32xf32>
    %152 = arith.addf %151, %150 : vector<2x32xf32>
    %153 = arith.divf %151, %152 : vector<2x32xf32>
    %154 = vector.extract_strided_slice %141 {offsets = [0, 64], sizes = [2, 32], strides = [1, 1]} : vector<2x128xf32> to vector<2x32xf32>
    %155 = math.tanh %154 : vector<2x32xf32>
    %156 = vector.extract_strided_slice %141 {offsets = [0, 96], sizes = [2, 32], strides = [1, 1]} : vector<2x128xf32> to vector<2x32xf32>
    %157 = arith.negf %156 : vector<2x32xf32>
    %158 = math.exp %157 : vector<2x32xf32>
    %cst_48 = arith.constant 1.000000e+00 : f32
    %159 = vector.broadcast %cst_48 : f32 to vector<2x32xf32>
    %160 = arith.addf %159, %158 : vector<2x32xf32>
    %161 = arith.divf %159, %160 : vector<2x32xf32>
    %162 = arith.mulf %153, %81 : vector<2x32xf32>
    %163 = arith.mulf %147, %155 : vector<2x32xf32>
    %164 = arith.addf %162, %163 : vector<2x32xf32>
    %165 = math.tanh %164 : vector<2x32xf32>
    %166 = arith.mulf %161, %165 : vector<2x32xf32>
    %167 = vector.shape_cast %166 : vector<2x32xf32> to vector<2x1x32xf32>
    %168 = vector.broadcast %167 : vector<2x1x32xf32> to vector<2x8x32xf32>
    %169 = arith.mulf %3, %168 : vector<2x8x32xf32>
    %cst_49 = arith.constant dense<0.000000e+00> : vector<2x8xf32>
    %170 = vector.multi_reduction <add>, %169, %cst_49 [2] : vector<2x8x32xf32> to vector<2x8xf32>
    %cst_50 = arith.constant dense<0xFF800000> : vector<2xf32>
    %171 = vector.multi_reduction <maximumf>, %170, %cst_50 [1] : vector<2x8xf32> to vector<2xf32>
    %172 = vector.shape_cast %171 : vector<2xf32> to vector<2x1xf32>
    %173 = vector.broadcast %172 : vector<2x1xf32> to vector<2x8xf32>
    %174 = arith.subf %170, %173 : vector<2x8xf32>
    %175 = math.exp %174 : vector<2x8xf32>
    %cst_51 = arith.constant dense<0.000000e+00> : vector<2xf32>
    %176 = vector.multi_reduction <add>, %175, %cst_51 [1] : vector<2x8xf32> to vector<2xf32>
    %177 = vector.shape_cast %176 : vector<2xf32> to vector<2x1xf32>
    %178 = tpu.reciprocal %177 {approx = true} : vector<2x1xf32> -> vector<2x1xf32>
    %179 = vector.broadcast %178 : vector<2x1xf32> to vector<2x8xf32>
    %180 = arith.mulf %175, %179 : vector<2x8xf32>
    %181 = vector.shape_cast %180 : vector<2x8xf32> to vector<2x8x1xf32>
    %182 = vector.broadcast %181 : vector<2x8x1xf32> to vector<2x8x16xf32>
    %183 = arith.mulf %182, %4 : vector<2x8x16xf32>
    %cst_52 = arith.constant dense<0.000000e+00> : vector<2x16xf32>
    %184 = vector.multi_reduction <add>, %183, %cst_52 [1] : vector<2x8x16xf32> to vector<2x16xf32>
    %185 = arith.truncf %166 : vector<2x32xf32> to vector<2x32xbf16>
    %186 = arith.index_cast %c2_i32 : i32 to index
    %c0_53 = arith.constant 0 : index
    %c0_54 = arith.constant 0 : index
    %187 = vector.load %arg10[%186, %c0_53, %c0_54] : memref<8x2x32xbf16, #tpu.memory_space<vmem>>, vector<1x2x32xbf16>
    %188 = vector.shape_cast %187 : vector<1x2x32xbf16> to vector<2x32xbf16>
    %189 = vector.shape_cast %185 : vector<2x32xbf16> to vector<1x2x32xbf16>
    tpu.vector_store %arg10[%186, %c0_53, %c0_54], %189 {strides = array<i32>} : memref<8x2x32xbf16, #tpu.memory_space<vmem>>, vector<1x2x32xbf16>,
    %c3_i32 = arith.constant 3 : i32
    %190 = arith.index_cast %c3_i32 : i32 to index
    %c0_55 = arith.constant 0 : index
    %c0_56 = arith.constant 0 : index
    %191 = vector.load %arg1[%190, %c0_55, %c0_56] : memref<8x2x128xf32, #tpu.memory_space<vmem>>, vector<1x2x128xf32>
    %192 = vector.shape_cast %191 : vector<1x2x128xf32> to vector<2x128xf32>
    %193 = tpu.concatenate %184, %137 in 1 : vector<2x16xf32>, vector<2x32xf32> -> vector<2x48xf32>
    %cst_57 = arith.constant dense<0.000000e+00> : vector<2x128xf32>
    %194 = tpu.matmul %193, %0, %cst_57 {dimension_numbers = #tpu.dot_dimension_numbers<[1], [0], [0], [1], [0, 0, 1, 1], [], []>, precision = #tpu.contract_precision<fp32>} : vector<2x48xf32>, vector<48x128xf32>, vector<2x128xf32> -> vector<2x128xf32>
    %195 = arith.addf %192, %194 : vector<2x128xf32>
    %196 = vector.extract_strided_slice %195 {offsets = [0, 0], sizes = [2, 32], strides = [1, 1]} : vector<2x128xf32> to vector<2x32xf32>
    %197 = arith.negf %196 : vector<2x32xf32>
    %198 = math.exp %197 : vector<2x32xf32>
    %cst_58 = arith.constant 1.000000e+00 : f32
    %199 = vector.broadcast %cst_58 : f32 to vector<2x32xf32>
    %200 = arith.addf %199, %198 : vector<2x32xf32>
    %201 = arith.divf %199, %200 : vector<2x32xf32>
    %202 = vector.extract_strided_slice %195 {offsets = [0, 32], sizes = [2, 32], strides = [1, 1]} : vector<2x128xf32> to vector<2x32xf32>
    %203 = arith.negf %202 : vector<2x32xf32>
    %204 = math.exp %203 : vector<2x32xf32>
    %cst_59 = arith.constant 1.000000e+00 : f32
    %205 = vector.broadcast %cst_59 : f32 to vector<2x32xf32>
    %206 = arith.addf %205, %204 : vector<2x32xf32>
    %207 = arith.divf %205, %206 : vector<2x32xf32>
    %208 = vector.extract_strided_slice %195 {offsets = [0, 64], sizes = [2, 32], strides = [1, 1]} : vector<2x128xf32> to vector<2x32xf32>
    %209 = math.tanh %208 : vector<2x32xf32>
    %210 = vector.extract_strided_slice %195 {offsets = [0, 96], sizes = [2, 32], strides = [1, 1]} : vector<2x128xf32> to vector<2x32xf32>
    %211 = arith.negf %210 : vector<2x32xf32>
    %212 = math.exp %211 : vector<2x32xf32>
    %cst_60 = arith.constant 1.000000e+00 : f32
    %213 = vector.broadcast %cst_60 : f32 to vector<2x32xf32>
    %214 = arith.addf %213, %212 : vector<2x32xf32>
    %215 = arith.divf %213, %214 : vector<2x32xf32>
    %216 = arith.mulf %207, %135 : vector<2x32xf32>
    %217 = arith.mulf %201, %209 : vector<2x32xf32>
    %218 = arith.addf %216, %217 : vector<2x32xf32>
    %219 = math.tanh %218 : vector<2x32xf32>
    %220 = arith.mulf %215, %219 : vector<2x32xf32>
    %221 = tpu.concatenate %220, %166 in 1 : vector<2x32xf32>, vector<2x32xf32> -> vector<2x64xf32>
    %cst_61 = arith.constant dense<0.000000e+00> : vector<2x128xf32>
    %222 = tpu.matmul %221, %1, %cst_61 {dimension_numbers = #tpu.dot_dimension_numbers<[1], [0], [0], [1], [0, 0, 1, 1], [], []>, precision = #tpu.contract_precision<fp32>} : vector<2x64xf32>, vector<64x128xf32>, vector<2x128xf32> -> vector<2x128xf32>
    %223 = vector.broadcast %2 : vector<1x128xf32> to vector<2x128xf32>
    %224 = arith.addf %222, %223 : vector<2x128xf32>
    %225 = vector.extract_strided_slice %224 {offsets = [0, 0], sizes = [2, 32], strides = [1, 1]} : vector<2x128xf32> to vector<2x32xf32>
    %226 = arith.negf %225 : vector<2x32xf32>
    %227 = math.exp %226 : vector<2x32xf32>
    %cst_62 = arith.constant 1.000000e+00 : f32
    %228 = vector.broadcast %cst_62 : f32 to vector<2x32xf32>
    %229 = arith.addf %228, %227 : vector<2x32xf32>
    %230 = arith.divf %228, %229 : vector<2x32xf32>
    %231 = vector.extract_strided_slice %224 {offsets = [0, 32], sizes = [2, 32], strides = [1, 1]} : vector<2x128xf32> to vector<2x32xf32>
    %232 = arith.negf %231 : vector<2x32xf32>
    %233 = math.exp %232 : vector<2x32xf32>
    %cst_63 = arith.constant 1.000000e+00 : f32
    %234 = vector.broadcast %cst_63 : f32 to vector<2x32xf32>
    %235 = arith.addf %234, %233 : vector<2x32xf32>
    %236 = arith.divf %234, %235 : vector<2x32xf32>
    %237 = vector.extract_strided_slice %224 {offsets = [0, 64], sizes = [2, 32], strides = [1, 1]} : vector<2x128xf32> to vector<2x32xf32>
    %238 = math.tanh %237 : vector<2x32xf32>
    %239 = vector.extract_strided_slice %224 {offsets = [0, 96], sizes = [2, 32], strides = [1, 1]} : vector<2x128xf32> to vector<2x32xf32>
    %240 = arith.negf %239 : vector<2x32xf32>
    %241 = math.exp %240 : vector<2x32xf32>
    %cst_64 = arith.constant 1.000000e+00 : f32
    %242 = vector.broadcast %cst_64 : f32 to vector<2x32xf32>
    %243 = arith.addf %242, %241 : vector<2x32xf32>
    %244 = arith.divf %242, %243 : vector<2x32xf32>
    %245 = arith.mulf %236, %164 : vector<2x32xf32>
    %246 = arith.mulf %230, %238 : vector<2x32xf32>
    %247 = arith.addf %245, %246 : vector<2x32xf32>
    %248 = math.tanh %247 : vector<2x32xf32>
    %249 = arith.mulf %244, %248 : vector<2x32xf32>
    %250 = vector.shape_cast %249 : vector<2x32xf32> to vector<2x1x32xf32>
    %251 = vector.broadcast %250 : vector<2x1x32xf32> to vector<2x8x32xf32>
    %252 = arith.mulf %3, %251 : vector<2x8x32xf32>
    %cst_65 = arith.constant dense<0.000000e+00> : vector<2x8xf32>
    %253 = vector.multi_reduction <add>, %252, %cst_65 [2] : vector<2x8x32xf32> to vector<2x8xf32>
    %cst_66 = arith.constant dense<0xFF800000> : vector<2xf32>
    %254 = vector.multi_reduction <maximumf>, %253, %cst_66 [1] : vector<2x8xf32> to vector<2xf32>
    %255 = vector.shape_cast %254 : vector<2xf32> to vector<2x1xf32>
    %256 = vector.broadcast %255 : vector<2x1xf32> to vector<2x8xf32>
    %257 = arith.subf %253, %256 : vector<2x8xf32>
    %258 = math.exp %257 : vector<2x8xf32>
    %cst_67 = arith.constant dense<0.000000e+00> : vector<2xf32>
    %259 = vector.multi_reduction <add>, %258, %cst_67 [1] : vector<2x8xf32> to vector<2xf32>
    %260 = vector.shape_cast %259 : vector<2xf32> to vector<2x1xf32>
    %261 = tpu.reciprocal %260 {approx = true} : vector<2x1xf32> -> vector<2x1xf32>
    %262 = vector.broadcast %261 : vector<2x1xf32> to vector<2x8xf32>
    %263 = arith.mulf %258, %262 : vector<2x8xf32>
    %264 = vector.shape_cast %263 : vector<2x8xf32> to vector<2x8x1xf32>
    %265 = vector.broadcast %264 : vector<2x8x1xf32> to vector<2x8x16xf32>
    %266 = arith.mulf %265, %4 : vector<2x8x16xf32>
    %cst_68 = arith.constant dense<0.000000e+00> : vector<2x16xf32>
    %267 = vector.multi_reduction <add>, %266, %cst_68 [1] : vector<2x8x16xf32> to vector<2x16xf32>
    %268 = arith.truncf %249 : vector<2x32xf32> to vector<2x32xbf16>
    %269 = arith.index_cast %c3_i32 : i32 to index
    %c0_69 = arith.constant 0 : index
    %c0_70 = arith.constant 0 : index
    %270 = vector.load %arg10[%269, %c0_69, %c0_70] : memref<8x2x32xbf16, #tpu.memory_space<vmem>>, vector<1x2x32xbf16>
    %271 = vector.shape_cast %270 : vector<1x2x32xbf16> to vector<2x32xbf16>
    %272 = vector.shape_cast %268 : vector<2x32xbf16> to vector<1x2x32xbf16>
    tpu.vector_store %arg10[%269, %c0_69, %c0_70], %272 {strides = array<i32>} : memref<8x2x32xbf16, #tpu.memory_space<vmem>>, vector<1x2x32xbf16>,
    %c4_i32 = arith.constant 4 : i32
    %273 = arith.index_cast %c4_i32 : i32 to index
    %c0_71 = arith.constant 0 : index
    %c0_72 = arith.constant 0 : index
    %274 = vector.load %arg1[%273, %c0_71, %c0_72] : memref<8x2x128xf32, #tpu.memory_space<vmem>>, vector<1x2x128xf32>
    %275 = vector.shape_cast %274 : vector<1x2x128xf32> to vector<2x128xf32>
    %276 = tpu.concatenate %267, %220 in 1 : vector<2x16xf32>, vector<2x32xf32> -> vector<2x48xf32>
    %cst_73 = arith.constant dense<0.000000e+00> : vector<2x128xf32>
    %277 = tpu.matmul %276, %0, %cst_73 {dimension_numbers = #tpu.dot_dimension_numbers<[1], [0], [0], [1], [0, 0, 1, 1], [], []>, precision = #tpu.contract_precision<fp32>} : vector<2x48xf32>, vector<48x128xf32>, vector<2x128xf32> -> vector<2x128xf32>
    %278 = arith.addf %275, %277 : vector<2x128xf32>
    %279 = vector.extract_strided_slice %278 {offsets = [0, 0], sizes = [2, 32], strides = [1, 1]} : vector<2x128xf32> to vector<2x32xf32>
    %280 = arith.negf %279 : vector<2x32xf32>
    %281 = math.exp %280 : vector<2x32xf32>
    %cst_74 = arith.constant 1.000000e+00 : f32
    %282 = vector.broadcast %cst_74 : f32 to vector<2x32xf32>
    %283 = arith.addf %282, %281 : vector<2x32xf32>
    %284 = arith.divf %282, %283 : vector<2x32xf32>
    %285 = vector.extract_strided_slice %278 {offsets = [0, 32], sizes = [2, 32], strides = [1, 1]} : vector<2x128xf32> to vector<2x32xf32>
    %286 = arith.negf %285 : vector<2x32xf32>
    %287 = math.exp %286 : vector<2x32xf32>
    %cst_75 = arith.constant 1.000000e+00 : f32
    %288 = vector.broadcast %cst_75 : f32 to vector<2x32xf32>
    %289 = arith.addf %288, %287 : vector<2x32xf32>
    %290 = arith.divf %288, %289 : vector<2x32xf32>
    %291 = vector.extract_strided_slice %278 {offsets = [0, 64], sizes = [2, 32], strides = [1, 1]} : vector<2x128xf32> to vector<2x32xf32>
    %292 = math.tanh %291 : vector<2x32xf32>
    %293 = vector.extract_strided_slice %278 {offsets = [0, 96], sizes = [2, 32], strides = [1, 1]} : vector<2x128xf32> to vector<2x32xf32>
    %294 = arith.negf %293 : vector<2x32xf32>
    %295 = math.exp %294 : vector<2x32xf32>
    %cst_76 = arith.constant 1.000000e+00 : f32
    %296 = vector.broadcast %cst_76 : f32 to vector<2x32xf32>
    %297 = arith.addf %296, %295 : vector<2x32xf32>
    %298 = arith.divf %296, %297 : vector<2x32xf32>
    %299 = arith.mulf %290, %218 : vector<2x32xf32>
    %300 = arith.mulf %284, %292 : vector<2x32xf32>
    %301 = arith.addf %299, %300 : vector<2x32xf32>
    %302 = math.tanh %301 : vector<2x32xf32>
    %303 = arith.mulf %298, %302 : vector<2x32xf32>
    %304 = tpu.concatenate %303, %249 in 1 : vector<2x32xf32>, vector<2x32xf32> -> vector<2x64xf32>
    %cst_77 = arith.constant dense<0.000000e+00> : vector<2x128xf32>
    %305 = tpu.matmul %304, %1, %cst_77 {dimension_numbers = #tpu.dot_dimension_numbers<[1], [0], [0], [1], [0, 0, 1, 1], [], []>, precision = #tpu.contract_precision<fp32>} : vector<2x64xf32>, vector<64x128xf32>, vector<2x128xf32> -> vector<2x128xf32>
    %306 = vector.broadcast %2 : vector<1x128xf32> to vector<2x128xf32>
    %307 = arith.addf %305, %306 : vector<2x128xf32>
    %308 = vector.extract_strided_slice %307 {offsets = [0, 0], sizes = [2, 32], strides = [1, 1]} : vector<2x128xf32> to vector<2x32xf32>
    %309 = arith.negf %308 : vector<2x32xf32>
    %310 = math.exp %309 : vector<2x32xf32>
    %cst_78 = arith.constant 1.000000e+00 : f32
    %311 = vector.broadcast %cst_78 : f32 to vector<2x32xf32>
    %312 = arith.addf %311, %310 : vector<2x32xf32>
    %313 = arith.divf %311, %312 : vector<2x32xf32>
    %314 = vector.extract_strided_slice %307 {offsets = [0, 32], sizes = [2, 32], strides = [1, 1]} : vector<2x128xf32> to vector<2x32xf32>
    %315 = arith.negf %314 : vector<2x32xf32>
    %316 = math.exp %315 : vector<2x32xf32>
    %cst_79 = arith.constant 1.000000e+00 : f32
    %317 = vector.broadcast %cst_79 : f32 to vector<2x32xf32>
    %318 = arith.addf %317, %316 : vector<2x32xf32>
    %319 = arith.divf %317, %318 : vector<2x32xf32>
    %320 = vector.extract_strided_slice %307 {offsets = [0, 64], sizes = [2, 32], strides = [1, 1]} : vector<2x128xf32> to vector<2x32xf32>
    %321 = math.tanh %320 : vector<2x32xf32>
    %322 = vector.extract_strided_slice %307 {offsets = [0, 96], sizes = [2, 32], strides = [1, 1]} : vector<2x128xf32> to vector<2x32xf32>
    %323 = arith.negf %322 : vector<2x32xf32>
    %324 = math.exp %323 : vector<2x32xf32>
    %cst_80 = arith.constant 1.000000e+00 : f32
    %325 = vector.broadcast %cst_80 : f32 to vector<2x32xf32>
    %326 = arith.addf %325, %324 : vector<2x32xf32>
    %327 = arith.divf %325, %326 : vector<2x32xf32>
    %328 = arith.mulf %319, %247 : vector<2x32xf32>
    %329 = arith.mulf %313, %321 : vector<2x32xf32>
    %330 = arith.addf %328, %329 : vector<2x32xf32>
    %331 = math.tanh %330 : vector<2x32xf32>
    %332 = arith.mulf %327, %331 : vector<2x32xf32>
    %333 = vector.shape_cast %332 : vector<2x32xf32> to vector<2x1x32xf32>
    %334 = vector.broadcast %333 : vector<2x1x32xf32> to vector<2x8x32xf32>
    %335 = arith.mulf %3, %334 : vector<2x8x32xf32>
    %cst_81 = arith.constant dense<0.000000e+00> : vector<2x8xf32>
    %336 = vector.multi_reduction <add>, %335, %cst_81 [2] : vector<2x8x32xf32> to vector<2x8xf32>
    %cst_82 = arith.constant dense<0xFF800000> : vector<2xf32>
    %337 = vector.multi_reduction <maximumf>, %336, %cst_82 [1] : vector<2x8xf32> to vector<2xf32>
    %338 = vector.shape_cast %337 : vector<2xf32> to vector<2x1xf32>
    %339 = vector.broadcast %338 : vector<2x1xf32> to vector<2x8xf32>
    %340 = arith.subf %336, %339 : vector<2x8xf32>
    %341 = math.exp %340 : vector<2x8xf32>
    %cst_83 = arith.constant dense<0.000000e+00> : vector<2xf32>
    %342 = vector.multi_reduction <add>, %341, %cst_83 [1] : vector<2x8xf32> to vector<2xf32>
    %343 = vector.shape_cast %342 : vector<2xf32> to vector<2x1xf32>
    %344 = tpu.reciprocal %343 {approx = true} : vector<2x1xf32> -> vector<2x1xf32>
    %345 = vector.broadcast %344 : vector<2x1xf32> to vector<2x8xf32>
    %346 = arith.mulf %341, %345 : vector<2x8xf32>
    %347 = vector.shape_cast %346 : vector<2x8xf32> to vector<2x8x1xf32>
    %348 = vector.broadcast %347 : vector<2x8x1xf32> to vector<2x8x16xf32>
    %349 = arith.mulf %348, %4 : vector<2x8x16xf32>
    %cst_84 = arith.constant dense<0.000000e+00> : vector<2x16xf32>
    %350 = vector.multi_reduction <add>, %349, %cst_84 [1] : vector<2x8x16xf32> to vector<2x16xf32>
    %351 = arith.truncf %332 : vector<2x32xf32> to vector<2x32xbf16>
    %352 = arith.index_cast %c4_i32 : i32 to index
    %c0_85 = arith.constant 0 : index
    %c0_86 = arith.constant 0 : index
    %353 = vector.load %arg10[%352, %c0_85, %c0_86] : memref<8x2x32xbf16, #tpu.memory_space<vmem>>, vector<1x2x32xbf16>
    %354 = vector.shape_cast %353 : vector<1x2x32xbf16> to vector<2x32xbf16>
    %355 = vector.shape_cast %351 : vector<2x32xbf16> to vector<1x2x32xbf16>
    tpu.vector_store %arg10[%352, %c0_85, %c0_86], %355 {strides = array<i32>} : memref<8x2x32xbf16, #tpu.memory_space<vmem>>, vector<1x2x32xbf16>,
    %c5_i32 = arith.constant 5 : i32
    %356 = arith.index_cast %c5_i32 : i32 to index
    %c0_87 = arith.constant 0 : index
    %c0_88 = arith.constant 0 : index
    %357 = vector.load %arg1[%356, %c0_87, %c0_88] : memref<8x2x128xf32, #tpu.memory_space<vmem>>, vector<1x2x128xf32>
    %358 = vector.shape_cast %357 : vector<1x2x128xf32> to vector<2x128xf32>
    %359 = tpu.concatenate %350, %303 in 1 : vector<2x16xf32>, vector<2x32xf32> -> vector<2x48xf32>
    %cst_89 = arith.constant dense<0.000000e+00> : vector<2x128xf32>
    %360 = tpu.matmul %359, %0, %cst_89 {dimension_numbers = #tpu.dot_dimension_numbers<[1], [0], [0], [1], [0, 0, 1, 1], [], []>, precision = #tpu.contract_precision<fp32>} : vector<2x48xf32>, vector<48x128xf32>, vector<2x128xf32> -> vector<2x128xf32>
    %361 = arith.addf %358, %360 : vector<2x128xf32>
    %362 = vector.extract_strided_slice %361 {offsets = [0, 0], sizes = [2, 32], strides = [1, 1]} : vector<2x128xf32> to vector<2x32xf32>
    %363 = arith.negf %362 : vector<2x32xf32>
    %364 = math.exp %363 : vector<2x32xf32>
    %cst_90 = arith.constant 1.000000e+00 : f32
    %365 = vector.broadcast %cst_90 : f32 to vector<2x32xf32>
    %366 = arith.addf %365, %364 : vector<2x32xf32>
    %367 = arith.divf %365, %366 : vector<2x32xf32>
    %368 = vector.extract_strided_slice %361 {offsets = [0, 32], sizes = [2, 32], strides = [1, 1]} : vector<2x128xf32> to vector<2x32xf32>
    %369 = arith.negf %368 : vector<2x32xf32>
    %370 = math.exp %369 : vector<2x32xf32>
    %cst_91 = arith.constant 1.000000e+00 : f32
    %371 = vector.broadcast %cst_91 : f32 to vector<2x32xf32>
    %372 = arith.addf %371, %370 : vector<2x32xf32>
    %373 = arith.divf %371, %372 : vector<2x32xf32>
    %374 = vector.extract_strided_slice %361 {offsets = [0, 64], sizes = [2, 32], strides = [1, 1]} : vector<2x128xf32> to vector<2x32xf32>
    %375 = math.tanh %374 : vector<2x32xf32>
    %376 = vector.extract_strided_slice %361 {offsets = [0, 96], sizes = [2, 32], strides = [1, 1]} : vector<2x128xf32> to vector<2x32xf32>
    %377 = arith.negf %376 : vector<2x32xf32>
    %378 = math.exp %377 : vector<2x32xf32>
    %cst_92 = arith.constant 1.000000e+00 : f32
    %379 = vector.broadcast %cst_92 : f32 to vector<2x32xf32>
    %380 = arith.addf %379, %378 : vector<2x32xf32>
    %381 = arith.divf %379, %380 : vector<2x32xf32>
    %382 = arith.mulf %373, %301 : vector<2x32xf32>
    %383 = arith.mulf %367, %375 : vector<2x32xf32>
    %384 = arith.addf %382, %383 : vector<2x32xf32>
    %385 = math.tanh %384 : vector<2x32xf32>
    %386 = arith.mulf %381, %385 : vector<2x32xf32>
    %387 = tpu.concatenate %386, %332 in 1 : vector<2x32xf32>, vector<2x32xf32> -> vector<2x64xf32>
    %cst_93 = arith.constant dense<0.000000e+00> : vector<2x128xf32>
    %388 = tpu.matmul %387, %1, %cst_93 {dimension_numbers = #tpu.dot_dimension_numbers<[1], [0], [0], [1], [0, 0, 1, 1], [], []>, precision = #tpu.contract_precision<fp32>} : vector<2x64xf32>, vector<64x128xf32>, vector<2x128xf32> -> vector<2x128xf32>
    %389 = vector.broadcast %2 : vector<1x128xf32> to vector<2x128xf32>
    %390 = arith.addf %388, %389 : vector<2x128xf32>
    %391 = vector.extract_strided_slice %390 {offsets = [0, 0], sizes = [2, 32], strides = [1, 1]} : vector<2x128xf32> to vector<2x32xf32>
    %392 = arith.negf %391 : vector<2x32xf32>
    %393 = math.exp %392 : vector<2x32xf32>
    %cst_94 = arith.constant 1.000000e+00 : f32
    %394 = vector.broadcast %cst_94 : f32 to vector<2x32xf32>
    %395 = arith.addf %394, %393 : vector<2x32xf32>
    %396 = arith.divf %394, %395 : vector<2x32xf32>
    %397 = vector.extract_strided_slice %390 {offsets = [0, 32], sizes = [2, 32], strides = [1, 1]} : vector<2x128xf32> to vector<2x32xf32>
    %398 = arith.negf %397 : vector<2x32xf32>
    %399 = math.exp %398 : vector<2x32xf32>
    %cst_95 = arith.constant 1.000000e+00 : f32
    %400 = vector.broadcast %cst_95 : f32 to vector<2x32xf32>
    %401 = arith.addf %400, %399 : vector<2x32xf32>
    %402 = arith.divf %400, %401 : vector<2x32xf32>
    %403 = vector.extract_strided_slice %390 {offsets = [0, 64], sizes = [2, 32], strides = [1, 1]} : vector<2x128xf32> to vector<2x32xf32>
    %404 = math.tanh %403 : vector<2x32xf32>
    %405 = vector.extract_strided_slice %390 {offsets = [0, 96], sizes = [2, 32], strides = [1, 1]} : vector<2x128xf32> to vector<2x32xf32>
    %406 = arith.negf %405 : vector<2x32xf32>
    %407 = math.exp %406 : vector<2x32xf32>
    %cst_96 = arith.constant 1.000000e+00 : f32
    %408 = vector.broadcast %cst_96 : f32 to vector<2x32xf32>
    %409 = arith.addf %408, %407 : vector<2x32xf32>
    %410 = arith.divf %408, %409 : vector<2x32xf32>
    %411 = arith.mulf %402, %330 : vector<2x32xf32>
    %412 = arith.mulf %396, %404 : vector<2x32xf32>
    %413 = arith.addf %411, %412 : vector<2x32xf32>
    %414 = math.tanh %413 : vector<2x32xf32>
    %415 = arith.mulf %410, %414 : vector<2x32xf32>
    %416 = vector.shape_cast %415 : vector<2x32xf32> to vector<2x1x32xf32>
    %417 = vector.broadcast %416 : vector<2x1x32xf32> to vector<2x8x32xf32>
    %418 = arith.mulf %3, %417 : vector<2x8x32xf32>
    %cst_97 = arith.constant dense<0.000000e+00> : vector<2x8xf32>
    %419 = vector.multi_reduction <add>, %418, %cst_97 [2] : vector<2x8x32xf32> to vector<2x8xf32>
    %cst_98 = arith.constant dense<0xFF800000> : vector<2xf32>
    %420 = vector.multi_reduction <maximumf>, %419, %cst_98 [1] : vector<2x8xf32> to vector<2xf32>
    %421 = vector.shape_cast %420 : vector<2xf32> to vector<2x1xf32>
    %422 = vector.broadcast %421 : vector<2x1xf32> to vector<2x8xf32>
    %423 = arith.subf %419, %422 : vector<2x8xf32>
    %424 = math.exp %423 : vector<2x8xf32>
    %cst_99 = arith.constant dense<0.000000e+00> : vector<2xf32>
    %425 = vector.multi_reduction <add>, %424, %cst_99 [1] : vector<2x8xf32> to vector<2xf32>
    %426 = vector.shape_cast %425 : vector<2xf32> to vector<2x1xf32>
    %427 = tpu.reciprocal %426 {approx = true} : vector<2x1xf32> -> vector<2x1xf32>
    %428 = vector.broadcast %427 : vector<2x1xf32> to vector<2x8xf32>
    %429 = arith.mulf %424, %428 : vector<2x8xf32>
    %430 = vector.shape_cast %429 : vector<2x8xf32> to vector<2x8x1xf32>
    %431 = vector.broadcast %430 : vector<2x8x1xf32> to vector<2x8x16xf32>
    %432 = arith.mulf %431, %4 : vector<2x8x16xf32>
    %cst_100 = arith.constant dense<0.000000e+00> : vector<2x16xf32>
    %433 = vector.multi_reduction <add>, %432, %cst_100 [1] : vector<2x8x16xf32> to vector<2x16xf32>
    %434 = arith.truncf %415 : vector<2x32xf32> to vector<2x32xbf16>
    %435 = arith.index_cast %c5_i32 : i32 to index
    %c0_101 = arith.constant 0 : index
    %c0_102 = arith.constant 0 : index
    %436 = vector.load %arg10[%435, %c0_101, %c0_102] : memref<8x2x32xbf16, #tpu.memory_space<vmem>>, vector<1x2x32xbf16>
    %437 = vector.shape_cast %436 : vector<1x2x32xbf16> to vector<2x32xbf16>
    %438 = vector.shape_cast %434 : vector<2x32xbf16> to vector<1x2x32xbf16>
    tpu.vector_store %arg10[%435, %c0_101, %c0_102], %438 {strides = array<i32>} : memref<8x2x32xbf16, #tpu.memory_space<vmem>>, vector<1x2x32xbf16>,
    %c6_i32 = arith.constant 6 : i32
    %439 = arith.index_cast %c6_i32 : i32 to index
    %c0_103 = arith.constant 0 : index
    %c0_104 = arith.constant 0 : index
    %440 = vector.load %arg1[%439, %c0_103, %c0_104] : memref<8x2x128xf32, #tpu.memory_space<vmem>>, vector<1x2x128xf32>
    %441 = vector.shape_cast %440 : vector<1x2x128xf32> to vector<2x128xf32>
    %442 = tpu.concatenate %433, %386 in 1 : vector<2x16xf32>, vector<2x32xf32> -> vector<2x48xf32>
    %cst_105 = arith.constant dense<0.000000e+00> : vector<2x128xf32>
    %443 = tpu.matmul %442, %0, %cst_105 {dimension_numbers = #tpu.dot_dimension_numbers<[1], [0], [0], [1], [0, 0, 1, 1], [], []>, precision = #tpu.contract_precision<fp32>} : vector<2x48xf32>, vector<48x128xf32>, vector<2x128xf32> -> vector<2x128xf32>
    %444 = arith.addf %441, %443 : vector<2x128xf32>
    %445 = vector.extract_strided_slice %444 {offsets = [0, 0], sizes = [2, 32], strides = [1, 1]} : vector<2x128xf32> to vector<2x32xf32>
    %446 = arith.negf %445 : vector<2x32xf32>
    %447 = math.exp %446 : vector<2x32xf32>
    %cst_106 = arith.constant 1.000000e+00 : f32
    %448 = vector.broadcast %cst_106 : f32 to vector<2x32xf32>
    %449 = arith.addf %448, %447 : vector<2x32xf32>
    %450 = arith.divf %448, %449 : vector<2x32xf32>
    %451 = vector.extract_strided_slice %444 {offsets = [0, 32], sizes = [2, 32], strides = [1, 1]} : vector<2x128xf32> to vector<2x32xf32>
    %452 = arith.negf %451 : vector<2x32xf32>
    %453 = math.exp %452 : vector<2x32xf32>
    %cst_107 = arith.constant 1.000000e+00 : f32
    %454 = vector.broadcast %cst_107 : f32 to vector<2x32xf32>
    %455 = arith.addf %454, %453 : vector<2x32xf32>
    %456 = arith.divf %454, %455 : vector<2x32xf32>
    %457 = vector.extract_strided_slice %444 {offsets = [0, 64], sizes = [2, 32], strides = [1, 1]} : vector<2x128xf32> to vector<2x32xf32>
    %458 = math.tanh %457 : vector<2x32xf32>
    %459 = vector.extract_strided_slice %444 {offsets = [0, 96], sizes = [2, 32], strides = [1, 1]} : vector<2x128xf32> to vector<2x32xf32>
    %460 = arith.negf %459 : vector<2x32xf32>
    %461 = math.exp %460 : vector<2x32xf32>
    %cst_108 = arith.constant 1.000000e+00 : f32
    %462 = vector.broadcast %cst_108 : f32 to vector<2x32xf32>
    %463 = arith.addf %462, %461 : vector<2x32xf32>
    %464 = arith.divf %462, %463 : vector<2x32xf32>
    %465 = arith.mulf %456, %384 : vector<2x32xf32>
    %466 = arith.mulf %450, %458 : vector<2x32xf32>
    %467 = arith.addf %465, %466 : vector<2x32xf32>
    %468 = math.tanh %467 : vector<2x32xf32>
    %469 = arith.mulf %464, %468 : vector<2x32xf32>
    %470 = tpu.concatenate %469, %415 in 1 : vector<2x32xf32>, vector<2x32xf32> -> vector<2x64xf32>
    %cst_109 = arith.constant dense<0.000000e+00> : vector<2x128xf32>
    %471 = tpu.matmul %470, %1, %cst_109 {dimension_numbers = #tpu.dot_dimension_numbers<[1], [0], [0], [1], [0, 0, 1, 1], [], []>, precision = #tpu.contract_precision<fp32>} : vector<2x64xf32>, vector<64x128xf32>, vector<2x128xf32> -> vector<2x128xf32>
    %472 = vector.broadcast %2 : vector<1x128xf32> to vector<2x128xf32>
    %473 = arith.addf %471, %472 : vector<2x128xf32>
    %474 = vector.extract_strided_slice %473 {offsets = [0, 0], sizes = [2, 32], strides = [1, 1]} : vector<2x128xf32> to vector<2x32xf32>
    %475 = arith.negf %474 : vector<2x32xf32>
    %476 = math.exp %475 : vector<2x32xf32>
    %cst_110 = arith.constant 1.000000e+00 : f32
    %477 = vector.broadcast %cst_110 : f32 to vector<2x32xf32>
    %478 = arith.addf %477, %476 : vector<2x32xf32>
    %479 = arith.divf %477, %478 : vector<2x32xf32>
    %480 = vector.extract_strided_slice %473 {offsets = [0, 32], sizes = [2, 32], strides = [1, 1]} : vector<2x128xf32> to vector<2x32xf32>
    %481 = arith.negf %480 : vector<2x32xf32>
    %482 = math.exp %481 : vector<2x32xf32>
    %cst_111 = arith.constant 1.000000e+00 : f32
    %483 = vector.broadcast %cst_111 : f32 to vector<2x32xf32>
    %484 = arith.addf %483, %482 : vector<2x32xf32>
    %485 = arith.divf %483, %484 : vector<2x32xf32>
    %486 = vector.extract_strided_slice %473 {offsets = [0, 64], sizes = [2, 32], strides = [1, 1]} : vector<2x128xf32> to vector<2x32xf32>
    %487 = math.tanh %486 : vector<2x32xf32>
    %488 = vector.extract_strided_slice %473 {offsets = [0, 96], sizes = [2, 32], strides = [1, 1]} : vector<2x128xf32> to vector<2x32xf32>
    %489 = arith.negf %488 : vector<2x32xf32>
    %490 = math.exp %489 : vector<2x32xf32>
    %cst_112 = arith.constant 1.000000e+00 : f32
    %491 = vector.broadcast %cst_112 : f32 to vector<2x32xf32>
    %492 = arith.addf %491, %490 : vector<2x32xf32>
    %493 = arith.divf %491, %492 : vector<2x32xf32>
    %494 = arith.mulf %485, %413 : vector<2x32xf32>
    %495 = arith.mulf %479, %487 : vector<2x32xf32>
    %496 = arith.addf %494, %495 : vector<2x32xf32>
    %497 = math.tanh %496 : vector<2x32xf32>
    %498 = arith.mulf %493, %497 : vector<2x32xf32>
    %499 = vector.shape_cast %498 : vector<2x32xf32> to vector<2x1x32xf32>
    %500 = vector.broadcast %499 : vector<2x1x32xf32> to vector<2x8x32xf32>
    %501 = arith.mulf %3, %500 : vector<2x8x32xf32>
    %cst_113 = arith.constant dense<0.000000e+00> : vector<2x8xf32>
    %502 = vector.multi_reduction <add>, %501, %cst_113 [2] : vector<2x8x32xf32> to vector<2x8xf32>
    %cst_114 = arith.constant dense<0xFF800000> : vector<2xf32>
    %503 = vector.multi_reduction <maximumf>, %502, %cst_114 [1] : vector<2x8xf32> to vector<2xf32>
    %504 = vector.shape_cast %503 : vector<2xf32> to vector<2x1xf32>
    %505 = vector.broadcast %504 : vector<2x1xf32> to vector<2x8xf32>
    %506 = arith.subf %502, %505 : vector<2x8xf32>
    %507 = math.exp %506 : vector<2x8xf32>
    %cst_115 = arith.constant dense<0.000000e+00> : vector<2xf32>
    %508 = vector.multi_reduction <add>, %507, %cst_115 [1] : vector<2x8xf32> to vector<2xf32>
    %509 = vector.shape_cast %508 : vector<2xf32> to vector<2x1xf32>
    %510 = tpu.reciprocal %509 {approx = true} : vector<2x1xf32> -> vector<2x1xf32>
    %511 = vector.broadcast %510 : vector<2x1xf32> to vector<2x8xf32>
    %512 = arith.mulf %507, %511 : vector<2x8xf32>
    %513 = vector.shape_cast %512 : vector<2x8xf32> to vector<2x8x1xf32>
    %514 = vector.broadcast %513 : vector<2x8x1xf32> to vector<2x8x16xf32>
    %515 = arith.mulf %514, %4 : vector<2x8x16xf32>
    %cst_116 = arith.constant dense<0.000000e+00> : vector<2x16xf32>
    %516 = vector.multi_reduction <add>, %515, %cst_116 [1] : vector<2x8x16xf32> to vector<2x16xf32>
    %517 = arith.truncf %498 : vector<2x32xf32> to vector<2x32xbf16>
    %518 = arith.index_cast %c6_i32 : i32 to index
    %c0_117 = arith.constant 0 : index
    %c0_118 = arith.constant 0 : index
    %519 = vector.load %arg10[%518, %c0_117, %c0_118] : memref<8x2x32xbf16, #tpu.memory_space<vmem>>, vector<1x2x32xbf16>
    %520 = vector.shape_cast %519 : vector<1x2x32xbf16> to vector<2x32xbf16>
    %521 = vector.shape_cast %517 : vector<2x32xbf16> to vector<1x2x32xbf16>
    tpu.vector_store %arg10[%518, %c0_117, %c0_118], %521 {strides = array<i32>} : memref<8x2x32xbf16, #tpu.memory_space<vmem>>, vector<1x2x32xbf16>,
    %c7_i32 = arith.constant 7 : i32
    %522 = arith.index_cast %c7_i32 : i32 to index
    %c0_119 = arith.constant 0 : index
    %c0_120 = arith.constant 0 : index
    %523 = vector.load %arg1[%522, %c0_119, %c0_120] : memref<8x2x128xf32, #tpu.memory_space<vmem>>, vector<1x2x128xf32>
    %524 = vector.shape_cast %523 : vector<1x2x128xf32> to vector<2x128xf32>
    %525 = tpu.concatenate %516, %469 in 1 : vector<2x16xf32>, vector<2x32xf32> -> vector<2x48xf32>
    %cst_121 = arith.constant dense<0.000000e+00> : vector<2x128xf32>
    %526 = tpu.matmul %525, %0, %cst_121 {dimension_numbers = #tpu.dot_dimension_numbers<[1], [0], [0], [1], [0, 0, 1, 1], [], []>, precision = #tpu.contract_precision<fp32>} : vector<2x48xf32>, vector<48x128xf32>, vector<2x128xf32> -> vector<2x128xf32>
    %527 = arith.addf %524, %526 : vector<2x128xf32>
    %528 = vector.extract_strided_slice %527 {offsets = [0, 0], sizes = [2, 32], strides = [1, 1]} : vector<2x128xf32> to vector<2x32xf32>
    %529 = arith.negf %528 : vector<2x32xf32>
    %530 = math.exp %529 : vector<2x32xf32>
    %cst_122 = arith.constant 1.000000e+00 : f32
    %531 = vector.broadcast %cst_122 : f32 to vector<2x32xf32>
    %532 = arith.addf %531, %530 : vector<2x32xf32>
    %533 = arith.divf %531, %532 : vector<2x32xf32>
    %534 = vector.extract_strided_slice %527 {offsets = [0, 32], sizes = [2, 32], strides = [1, 1]} : vector<2x128xf32> to vector<2x32xf32>
    %535 = arith.negf %534 : vector<2x32xf32>
    %536 = math.exp %535 : vector<2x32xf32>
    %cst_123 = arith.constant 1.000000e+00 : f32
    %537 = vector.broadcast %cst_123 : f32 to vector<2x32xf32>
    %538 = arith.addf %537, %536 : vector<2x32xf32>
    %539 = arith.divf %537, %538 : vector<2x32xf32>
    %540 = vector.extract_strided_slice %527 {offsets = [0, 64], sizes = [2, 32], strides = [1, 1]} : vector<2x128xf32> to vector<2x32xf32>
    %541 = math.tanh %540 : vector<2x32xf32>
    %542 = vector.extract_strided_slice %527 {offsets = [0, 96], sizes = [2, 32], strides = [1, 1]} : vector<2x128xf32> to vector<2x32xf32>
    %543 = arith.negf %542 : vector<2x32xf32>
    %544 = math.exp %543 : vector<2x32xf32>
    %cst_124 = arith.constant 1.000000e+00 : f32
    %545 = vector.broadcast %cst_124 : f32 to vector<2x32xf32>
    %546 = arith.addf %545, %544 : vector<2x32xf32>
    %547 = arith.divf %545, %546 : vector<2x32xf32>
    %548 = arith.mulf %539, %467 : vector<2x32xf32>
    %549 = arith.mulf %533, %541 : vector<2x32xf32>
    %550 = arith.addf %548, %549 : vector<2x32xf32>
    %551 = math.tanh %550 : vector<2x32xf32>
    %552 = arith.mulf %547, %551 : vector<2x32xf32>
    %553 = tpu.concatenate %552, %498 in 1 : vector<2x32xf32>, vector<2x32xf32> -> vector<2x64xf32>
    %cst_125 = arith.constant dense<0.000000e+00> : vector<2x128xf32>
    %554 = tpu.matmul %553, %1, %cst_125 {dimension_numbers = #tpu.dot_dimension_numbers<[1], [0], [0], [1], [0, 0, 1, 1], [], []>, precision = #tpu.contract_precision<fp32>} : vector<2x64xf32>, vector<64x128xf32>, vector<2x128xf32> -> vector<2x128xf32>
    %555 = vector.broadcast %2 : vector<1x128xf32> to vector<2x128xf32>
    %556 = arith.addf %554, %555 : vector<2x128xf32>
    %557 = vector.extract_strided_slice %556 {offsets = [0, 0], sizes = [2, 32], strides = [1, 1]} : vector<2x128xf32> to vector<2x32xf32>
    %558 = arith.negf %557 : vector<2x32xf32>
    %559 = math.exp %558 : vector<2x32xf32>
    %cst_126 = arith.constant 1.000000e+00 : f32
    %560 = vector.broadcast %cst_126 : f32 to vector<2x32xf32>
    %561 = arith.addf %560, %559 : vector<2x32xf32>
    %562 = arith.divf %560, %561 : vector<2x32xf32>
    %563 = vector.extract_strided_slice %556 {offsets = [0, 32], sizes = [2, 32], strides = [1, 1]} : vector<2x128xf32> to vector<2x32xf32>
    %564 = arith.negf %563 : vector<2x32xf32>
    %565 = math.exp %564 : vector<2x32xf32>
    %cst_127 = arith.constant 1.000000e+00 : f32
    %566 = vector.broadcast %cst_127 : f32 to vector<2x32xf32>
    %567 = arith.addf %566, %565 : vector<2x32xf32>
    %568 = arith.divf %566, %567 : vector<2x32xf32>
    %569 = vector.extract_strided_slice %556 {offsets = [0, 64], sizes = [2, 32], strides = [1, 1]} : vector<2x128xf32> to vector<2x32xf32>
    %570 = math.tanh %569 : vector<2x32xf32>
    %571 = vector.extract_strided_slice %556 {offsets = [0, 96], sizes = [2, 32], strides = [1, 1]} : vector<2x128xf32> to vector<2x32xf32>
    %572 = arith.negf %571 : vector<2x32xf32>
    %573 = math.exp %572 : vector<2x32xf32>
    %cst_128 = arith.constant 1.000000e+00 : f32
    %574 = vector.broadcast %cst_128 : f32 to vector<2x32xf32>
    %575 = arith.addf %574, %573 : vector<2x32xf32>
    %576 = arith.divf %574, %575 : vector<2x32xf32>
    %577 = arith.mulf %568, %496 : vector<2x32xf32>
    %578 = arith.mulf %562, %570 : vector<2x32xf32>
    %579 = arith.addf %577, %578 : vector<2x32xf32>
    %580 = math.tanh %579 : vector<2x32xf32>
    %581 = arith.mulf %576, %580 : vector<2x32xf32>
    %582 = vector.shape_cast %581 : vector<2x32xf32> to vector<2x1x32xf32>
    %583 = vector.broadcast %582 : vector<2x1x32xf32> to vector<2x8x32xf32>
    %584 = arith.mulf %3, %583 : vector<2x8x32xf32>
    %cst_129 = arith.constant dense<0.000000e+00> : vector<2x8xf32>
    %585 = vector.multi_reduction <add>, %584, %cst_129 [2] : vector<2x8x32xf32> to vector<2x8xf32>
    %cst_130 = arith.constant dense<0xFF800000> : vector<2xf32>
    %586 = vector.multi_reduction <maximumf>, %585, %cst_130 [1] : vector<2x8xf32> to vector<2xf32>
    %587 = vector.shape_cast %586 : vector<2xf32> to vector<2x1xf32>
    %588 = vector.broadcast %587 : vector<2x1xf32> to vector<2x8xf32>
    %589 = arith.subf %585, %588 : vector<2x8xf32>
    %590 = math.exp %589 : vector<2x8xf32>
    %cst_131 = arith.constant dense<0.000000e+00> : vector<2xf32>
    %591 = vector.multi_reduction <add>, %590, %cst_131 [1] : vector<2x8xf32> to vector<2xf32>
    %592 = vector.shape_cast %591 : vector<2xf32> to vector<2x1xf32>
    %593 = tpu.reciprocal %592 {approx = true} : vector<2x1xf32> -> vector<2x1xf32>
    %594 = vector.broadcast %593 : vector<2x1xf32> to vector<2x8xf32>
    %595 = arith.mulf %590, %594 : vector<2x8xf32>
    %596 = vector.shape_cast %595 : vector<2x8xf32> to vector<2x8x1xf32>
    %597 = vector.broadcast %596 : vector<2x8x1xf32> to vector<2x8x16xf32>
    %598 = arith.mulf %597, %4 : vector<2x8x16xf32>
    %cst_132 = arith.constant dense<0.000000e+00> : vector<2x16xf32>
    %599 = vector.multi_reduction <add>, %598, %cst_132 [1] : vector<2x8x16xf32> to vector<2x16xf32>
    %600 = arith.truncf %581 : vector<2x32xf32> to vector<2x32xbf16>
    %601 = arith.index_cast %c7_i32 : i32 to index
    %c0_133 = arith.constant 0 : index
    %c0_134 = arith.constant 0 : index
    %602 = vector.load %arg10[%601, %c0_133, %c0_134] : memref<8x2x32xbf16, #tpu.memory_space<vmem>>, vector<1x2x32xbf16>
    %603 = vector.shape_cast %602 : vector<1x2x32xbf16> to vector<2x32xbf16>
    %604 = vector.shape_cast %600 : vector<2x32xbf16> to vector<1x2x32xbf16>
    tpu.vector_store %arg10[%601, %c0_133, %c0_134], %604 {strides = array<i32>} : memref<8x2x32xbf16, #tpu.memory_space<vmem>>, vector<1x2x32xbf16>,
    %c7_i32_135 = arith.constant 7 : i32
    return
  }
  func.func @transform_0(%arg0: i32) -> (i32, i32, i32) {
    %c0_i32 = arith.constant 0 : i32
    %c0_i32_0 = arith.constant 0 : i32
    %c0_i32_1 = arith.constant 0 : i32
    return %c0_i32, %arg0, %c0_i32_0 : i32, i32, i32
  }
  func.func @transform_1(%arg0: i32) -> (i32, i32, i32) {
    %c0_i32 = arith.constant 0 : i32
    %c0_i32_0 = arith.constant 0 : i32
    %c0_i32_1 = arith.constant 0 : i32
    return %arg0, %c0_i32, %c0_i32_0 : i32, i32, i32
  }
  func.func @transform_2(%arg0: i32) -> (i32, i32, i32) {
    %c0_i32 = arith.constant 0 : i32
    %c0_i32_0 = arith.constant 0 : i32
    %c0_i32_1 = arith.constant 0 : i32
    return %arg0, %c0_i32, %c0_i32_0 : i32, i32, i32
  }
  func.func @transform_3(%arg0: i32) -> (i32, i32) {
    %c0_i32 = arith.constant 0 : i32
    %c0_i32_0 = arith.constant 0 : i32
    %c0_i32_1 = arith.constant 0 : i32
    return %c0_i32, %c0_i32_0 : i32, i32
  }
  func.func @transform_4(%arg0: i32) -> (i32, i32) {
    %c0_i32 = arith.constant 0 : i32
    %c0_i32_0 = arith.constant 0 : i32
    %c0_i32_1 = arith.constant 0 : i32
    return %c0_i32, %c0_i32_0 : i32, i32
  }
  func.func @transform_5(%arg0: i32) -> (i32, i32) {
    %c0_i32 = arith.constant 0 : i32
    %c0_i32_0 = arith.constant 0 : i32
    %c0_i32_1 = arith.constant 0 : i32
    return %c0_i32, %c0_i32_0 : i32, i32
  }
  func.func @transform_6(%arg0: i32) -> (i32, i32) {
    %c0_i32 = arith.constant 0 : i32
    %c0_i32_0 = arith.constant 0 : i32
    %c0_i32_1 = arith.constant 0 : i32
    return %c0_i32, %c0_i32_0 : i32, i32
  }
  func.func @transform_7(%arg0: i32) -> (i32, i32) {
    %c0_i32 = arith.constant 0 : i32
    %c0_i32_0 = arith.constant 0 : i32
    %c0_i32_1 = arith.constant 0 : i32
    return %c0_i32, %c0_i32_0 : i32, i32
  }
  func.func @transform_8(%arg0: i32) -> (i32, i32) {
    %c0_i32 = arith.constant 0 : i32
    %c0_i32_0 = arith.constant 0 : i32
    %c0_i32_1 = arith.constant 0 : i32
    return %c0_i32, %c0_i32_0 : i32, i32
  }
  func.func @transform_9(%arg0: i32) -> (i32, i32, i32) {
    %c0_i32 = arith.constant 0 : i32
    %c0_i32_0 = arith.constant 0 : i32
    %c0_i32_1 = arith.constant 0 : i32
    return %c0_i32, %arg0, %c0_i32_0 : i32, i32, i32
  }
}

</mosaic_0001>

<bundles_post_ra>
// kernel: decoder_story_forward.5
= control target key start
LH: loop header
LB: loop body
LE: loop exit
PB: predicated region body
PF: predicated region fallthrough
CT: control target
= control target key end

     0   :  { %vm42_vm0 = vcmask 261120   ;;  %v61_v3 = vlaneseq  ;;  %v130_v9 = vmov 0.0   ;;  %s169_s1 = inlined_call_operand.vmem [shape: bf16[32,128], index: 1, kind: input, shape index: {}]   ;;  %s170_s2 = inlined_call_operand.vmem [shape: f32[1,128], index: 2, kind: input, shape index: {}]   ;;  %s171_s0 = inlined_call_operand.vmem [shape: bf16[16,32], index: 0, kind: input, shape index: {}]   ;;  %s172_s3 = inlined_call_operand.vmem [shape: f32[16,128], index: 3, kind: output, shape index: {}]  }
   0x1   :  { %v127_v0 = vld [vmem:[%s169_s1 + $0x8] sm:$0xff]  ;;  %v126_v1 = vld [vmem:[%s169_s1] sm:$0xff] }
   0x2   :  { %52 = vmatpush.bf16.msra.mxu0 %v127_v0  ;;  %v125_v2 = vld [vmem:[%s171_s0] sm:$0xff]  ;;  %v62_v4 = vshrl.u32 %v61_v3, 7  ;;  %v69_v5 = vand.u32 127, %v61_v3 }
   0x3   :  { %v129_v7 = vld [vmem:[%s170_s2] ss:$0 sm:$0xff] }
   0x4   :  { %v76_v6 = vand.u32 7, %v62_v4  ;;  %vm102_vm1 = vcmp.eq.s32.totalorder %v69_v5, 1  ;;  %v63_v11 = vadd.s32 8, %v62_v4 }
   0x5   :  { %v103_v10 = vsel %vm102_vm1, 10000.0, %v130_v9 }
   0x6   :  { %53 = vmatpush.bf16.msra.mxu0 %v126_v1  ;;  %vm96_vm2 = vcmp.eq.s32.totalorder %v76_v6, 0  ;;  %v83_v14 = vand.u32 7, %v63_v11 }
   0x8   :  { %vm97_vm3 = vcmp.eq.s32.totalorder %v83_v14, 0 }
   0x9   :  { %124 = vmatmul.msk.bf16.vlgmr.msra.gmra.mxu0 %vm42_vm0, %v125_v2 }
  0x86   :  { %v55_v8 = vpop.f32.mrf.mxu0 }
  0x87   :  { %v56_v12 = vadd.f32 %v129_v7, %v55_v8 }
  0x89   :  { %v104_v13 = vsel %vm96_vm2, %v103_v10, %v56_v12 }
  0x8a   :  { %106 = vst [vmem:[%s172_s3] sm:$0xff] %v104_v13 }
  0x8e   :  { %v57_v15 = vpop.f32.mrf.mxu0 }
  0x8f   :  { %v58_v16 = vadd.f32 %v129_v7, %v57_v15 }
  0x91   :  { %v105_v17 = vsel %vm97_vm3, %v103_v10, %v58_v16 }
  0x92   :  { %107 = vst [vmem:[%s172_s3 + $0x8] sm:$0xff] %v105_v17 }

// kernel: decoder_story_forward.3
= control target key start
LH: loop header
LB: loop body
LE: loop exit
PB: predicated region body
PF: predicated region fallthrough
CT: control target
= control target key end

     0   :  { %vm24_vm0 = vcmask 261120   ;;  %s343_s1 = inlined_call_operand.vmem [shape: f32[32,128], index: 1, kind: input, shape index: {}]   ;;  %s344_s0 = inlined_call_operand.vmem [shape: f32[16,32], index: 0, kind: input, shape index: {}]   ;;  %s345_s2 = inlined_call_operand.vmem [shape: f32[1,128], index: 2, kind: input, shape index: {}]   ;;  %s346_s3 = inlined_call_operand.vmem [shape: f32[16,128], index: 3, kind: output, shape index: {}]  }
   0x1   :  { %v19_v0 = vld [vmem:[%s343_s1 + $0x18] sm:$0xff]  ;;  %v18_v1 = vld [vmem:[%s343_s1 + $0x10] sm:$0xff]  ;;  %v17_v2 = vld [vmem:[%s343_s1 + $0x8] sm:$0xff] }
   0x2   :  { %v291_v3 = vand.u32 4294901760, %v19_v0  ;;  %v293_v4 = vand.u32 4294901760, %v18_v1  ;;  %v295_v5 = vand.u32 4294901760, %v17_v2  ;;  %v16_v6 = vld [vmem:[%s343_s1] sm:$0xff]  ;;  %v15_v7 = vld [vmem:[%s344_s0 + $0x8] sm:$0xff] }
   0x3   :  { %v14_v8 = vld [vmem:[%s344_s0] sm:$0xff]  ;;  %v306_v9 = vand.u32 4294901760, %v16_v6  ;;  %v29_v10 = vsel %vm24_vm0, %v15_v7, 0 }
   0x4   :  { %v26_v11 = vsel %vm24_vm0, %v14_v8, 0  ;;  %253 = vmatpush.msra.mxu2 %v291_v3  ;;  %v81_v12 = vsub.f32 %v19_v0, %v291_v3  ;;  %v310_v13 = vand.u32 4294901760, %v29_v10  ;;  %v87_v14 = vsub.f32 %v18_v1, %v293_v4  ;;  %44 = vmatpush.msra.mxu0 %v291_v3  ;;  %v261_v39 = vld [vmem:[%s345_s2] ss:$0 sm:$0xff] }
   0x5   :  { %v93_v15 = vsub.f32 %v17_v2, %v295_v5  ;;  %v99_v16 = vsub.f32 %v16_v6, %v306_v9  ;;  %v51_v17 = vand.u32 4294901760, %v26_v11 }
   0x6   :  { %254 = vmatpush.msra.mxu2 %v293_v4  ;;  %v82_v18 = vand.u32 4294901760, %v81_v12  ;;  %v60_v19 = vsub.f32 %v29_v10, %v310_v13  ;;  %v88_v20 = vand.u32 4294901760, %v87_v14  ;;  %46 = vmatpush.msra.mxu0 %v293_v4 }
   0x7   :  { %v94_v21 = vand.u32 4294901760, %v93_v15  ;;  %v100_v22 = vand.u32 4294901760, %v99_v16  ;;  %v52_v23 = vsub.f32 %v26_v11, %v51_v17 }
   0x8   :  { %255 = vmatpush.msra.mxu2 %v295_v5  ;;  %v83_v24 = vsub.f32 %v81_v12, %v82_v18  ;;  %v61_v25 = vand.u32 4294901760, %v60_v19  ;;  %v89_v26 = vsub.f32 %v87_v14, %v88_v20  ;;  %48 = vmatpush.msra.mxu0 %v295_v5 }
   0x9   :  { %v95_v27 = vsub.f32 %v93_v15, %v94_v21  ;;  %v53_v28 = vand.u32 4294901760, %v52_v23  ;;  %v101_v32 = vsub.f32 %v99_v16, %v100_v22 }
   0xa   :  { %256 = vmatpush.msra.mxu2 %v306_v9  ;;  %v84_v29 = vand.u32 4294901760, %v83_v24  ;;  %v62_v30 = vsub.f32 %v60_v19, %v61_v25  ;;  %v90_v31 = vand.u32 4294901760, %v89_v26  ;;  %50 = vmatpush.msra.mxu0 %v306_v9 }
   0xb   :  { %v54_v33 = vsub.f32 %v52_v23, %v53_v28  ;;  %v96_v35 = vand.u32 4294901760, %v95_v27  ;;  %v102_v37 = vand.u32 4294901760, %v101_v32 }
   0xc   :  { %127 = vmatpush.msrb.mxu2 %v81_v12  ;;  %196 = vmatpush.msrb.mxu0 %v82_v18  ;;  %v63_v34 = vand.u32 4294901760, %v62_v30 }
   0xd   :  { %257 = vmatpush.msra.mxu3 %v84_v29  ;;  %85 = vmatpush.msra.mxu1 %v84_v29  ;;  %v55_v36 = vand.u32 4294901760, %v54_v33 }
   0xe   :  { %130 = vmatpush.msrb.mxu2 %v87_v14  ;;  %200 = vmatpush.msrb.mxu0 %v88_v20 }
   0xf   :  { %64 = vmatmul.f32.vlgmr.msra.gmra.mxu2 %v63_v34  ;;  %258 = vmatpush.msra.mxu3 %v90_v31 }
  0x10   :  { %133 = vmatpush.msrb.mxu2 %v93_v15  ;;  %91 = vmatpush.msra.mxu1 %v90_v31 }
  0x11   :  { %259 = vmatpush.msra.mxu3 %v96_v35  ;;  %56 = vmatmul.f32.vlgmr.msra.gmra.mxu0 %v55_v36 }
  0x12   :  { %136 = vmatpush.msrb.mxu2 %v99_v16  ;;  %97 = vmatpush.msra.mxu1 %v96_v35 }
  0x13   :  { %260 = vmatpush.msra.mxu3 %v102_v37  ;;  %204 = vmatpush.msrb.mxu0 %v94_v21 }
  0x14   :  { %109 = vmatmul.f32.vlgmr.msra.gmra.mxu3 %v310_v13  ;;  %103 = vmatpush.msra.mxu1 %v102_v37 }
  0x15   :  { %161 = vmatpush.msrb.mxu3 %v291_v3  ;;  %105 = vmatmul.f32.vlgmr.msra.gmra.mxu1 %v51_v17 }
  0x16   :  { %231 = vmatpush.msrb.mxu1 %v291_v3  ;;  %208 = vmatpush.msrb.mxu0 %v100_v22 }
  0x17   :  { %139 = vmatmul.f32.vlgmr.msrb.gmra.mxu2 %v52_v23  ;;  %163 = vmatpush.msrb.mxu3 %v293_v4 }
  0x18   :  { %233 = vmatpush.msrb.mxu1 %v293_v4 }
  0x19   :  { %165 = vmatpush.msrb.mxu3 %v295_v5  ;;  %210 = vmatmul.f32.vlgmr.msrb.gmra.mxu0 %v51_v17 }
  0x1a   :  { %235 = vmatpush.msrb.mxu1 %v295_v5 }
  0x1b   :  { %167 = vmatpush.msrb.mxu3 %v306_v9 }
  0x1c   :  { %171 = vmatmul.f32.vlgmr.msrb.gmra.mxu3 %v53_v28  ;;  %237 = vmatpush.msrb.mxu1 %v306_v9 }
  0x1d   :  { %239 = vmatmul.f32.vlgmr.msrb.gmra.mxu1 %v51_v17 }
  0x1f   :  { %144 = vmatmul.f32.gmra.mxu2 %v60_v19 }
  0x21   :  { %214 = vmatmul.f32.gmra.mxu0 %v310_v13 }
  0x24   :  { %177 = vmatmul.f32.gmra.mxu3 %v61_v25 }
  0x25   :  { %243 = vmatmul.f32.gmra.mxu1 %v310_v13 }
  0x8e   :  { %v57_v38 = vpop.f32.mrf.mxu0 }
  0x8f   :  { %v58_v41 = vadd.f32 %v261_v39, %v57_v38 }
  0x92   :  { %v65_v40 = vpop.f32.mrf.mxu2  ;;  %v106_v42 = vpop.f32.mrf.mxu1 }
  0x93   :  { %v107_v44 = vadd.f32 %v106_v42, %v58_v41  ;;  %v66_v50 = vadd.f32 %v261_v39, %v65_v40 }
  0x96   :  { %v211_v47 = vpop.f32.mrf.mxu0 }
  0x97   :  { %v110_v43 = vpop.f32.mrf.mxu3 }
  0x98   :  { %v111_v54 = vadd.f32 %v110_v43, %v66_v50 }
  0x9a   :  { %v140_v45 = vpop.f32.mrf.mxu2  ;;  %v240_v49 = vpop.f32.mrf.mxu1 }
  0x9b   :  { %v141_v46 = vadd.f32 %v140_v45, %v107_v44 }
  0x9e   :  { %v215_v58 = vpop.f32.mrf.mxu0 }
  0x9f   :  { %v172_v48 = vpop.f32.mrf.mxu3 }
  0xa0   :  { %v173_v51 = vadd.f32 %v172_v48, %v141_v46 }
  0xa2   :  { %v212_v52 = vadd.f32 %v211_v47, %v173_v51  ;;  %v145_v53 = vpop.f32.mrf.mxu2  ;;  %v244_v60 = vpop.f32.mrf.mxu1 }
  0xa3   :  { %v146_v56 = vadd.f32 %v145_v53, %v111_v54 }
  0xa4   :  { %v241_v55 = vadd.f32 %v240_v49, %v212_v52 }
  0xa6   :  { %247 = vst [vmem:[%s346_s3] sm:$0xff] %v241_v55 }
  0xa7   :  { %v178_v57 = vpop.f32.mrf.mxu3 }
  0xa8   :  { %v179_v59 = vadd.f32 %v178_v57, %v146_v56 }
  0xaa   :  { %v216_v61 = vadd.f32 %v215_v58, %v179_v59 }
  0xac   :  { %v245_v62 = vadd.f32 %v244_v60, %v216_v61 }
  0xae   :  { %248 = vst [vmem:[%s346_s3 + $0x8] sm:$0xff] %v245_v62 }

// kernel: decoder_story_forward.4
= control target key start
LH: loop header
LB: loop body
LE: loop exit
PB: predicated region body
PF: predicated region fallthrough
CT: control target
= control target key end

     0   :  { %s4723_s17 = smov 16   ;;  %s4724_s25 = smov 32   ;;  %vm72_vm0 = vcmask 130048   ;;  %vm74_vm1 = vcmask 392192   ;;  %vm339_vm6 = vcmask 261120   ;;  %vm344_vm7 = vcmask 523264   ;;  %s6067_s6 = inlined_call_operand.vmem [shape: f32[2,32], index: 6, kind: input, shape index: {}]   ;;  %s6068_s3 = inlined_call_operand.vmem [shape: f32[48,128], index: 3, kind: input, shape index: {}]   ;;  %s6069_s8 = inlined_call_operand.vmem [shape: f32[1,16], index: 8, kind: input, shape index: {}]   ;;  %s6070_s7 = inlined_call_operand.vmem [shape: f32[2,32], index: 7, kind: input, shape index: {}]   ;;  %s6071_s0 = inlined_call_operand.vmem [shape: f32[8,2,128], index: 0, kind: input, shape index: {}]   ;;  %s6072_s4 = inlined_call_operand.vmem [shape: f32[64,128], index: 4, kind: input, shape index: {}]   ;;  %s6073_s5 = inlined_call_operand.vmem [shape: f32[1,128], index: 5, kind: input, shape index: {}]   ;;  %s6074_s1 = inlined_call_operand.vmem [shape: f32[2,8,32], index: 1, kind: input, shape index: {}]   ;;  %s6075_s9 = inlined_call_operand.vmem [shape: bf16[8,2,32], index: 9, kind: output, shape index: {}]   ;;  %s6076_s2 = inlined_call_operand.vmem [shape: f32[2,8,16], index: 2, kind: input, shape index: {}]  }
   0x1   :  { %v4559_v0 = vld [vmem:[%s6067_s6] ss:$0 sm:$0xff]  ;;  %v38_v1 = vld [vmem:[%s6068_s3 + $0x28] sm:$0xff]  ;;  %v36_v3 = vld [vmem:[%s6068_s3 + $0x18] sm:$0xff]  ;;  %s4725_s29 = smov 64   ;;  %vm650_vm12 = vcmask 1041409  }
   0x2   :  { %v37_v2 = vld [vmem:[%s6068_s3 + $0x20] sm:$0xff]  ;;  %69 = vrot.lane.b32.xlu0 %v4559_v0, %s4723_s17  ;;  %v4790_v4 = vand.u32 4294901760, %v38_v1  ;;  %v4794_v6 = vand.u32 4294901760, %v36_v3  ;;  %v35_v7 = vld [vmem:[%s6068_s3 + $0x10] sm:$0xff]  ;;  %v34_v8 = vld [vmem:[%s6068_s3 + $0x8] sm:$0xff]  ;;  %vm653_vm13 = vcmask 58368  }
   0x3   :  { %v4792_v5 = vand.u32 4294901760, %v37_v2  ;;  %v4802_v9 = vand.u32 4294901760, %v35_v7  ;;  %v4804_v10 = vand.u32 4294901760, %v34_v8  ;;  %v33_v31 = vld [vmem:[%s6068_s3] sm:$0xff]  ;;  %vm64_vm14 = vcmask 253952   ;;  %s4727_s13 = smov 48  }
   0x4   :  { %v4807_v11 = vsub.f32 %v38_v1, %v4790_v4  ;;  %v4813_v13 = vsub.f32 %v36_v3, %v4794_v6  ;;  %205 = vmatpush.msra.mxu3 %v4790_v4  ;;  %89 = vmatpush.msra.mxu0 %v4790_v4  ;;  %v4879_v32 = vand.u32 4294901760, %v33_v31  ;;  %v4561_v37 = vld [vmem:[%s6070_s7] ss:$0 sm:$0xff]  ;;  %v4523_v57 = vld [vmem:[%s6071_s0 + $0x2] sm:$0x3] }
   0x5   :  { %v4810_v12 = vsub.f32 %v37_v2, %v4792_v5  ;;  %v4818_v14 = vsub.f32 %v35_v7, %v4802_v9  ;;  %v4821_v15 = vsub.f32 %v34_v8, %v4804_v10  ;;  %311 = vrot.lane.b32.xlu1 %v4561_v37, %s4724_s25  ;;  %v4560_v38 = vld [vmem:[%s6069_s8] ss:$0 sm:$0xff] }
   0x6   :  { %v4824_v16 = vand.u32 4294901760, %v4807_v11  ;;  %v4830_v18 = vand.u32 4294901760, %v4813_v13  ;;  %172 = vmatpush.msra.mxu2 %v4807_v11  ;;  %207 = vmatpush.msra.mxu3 %v4792_v5  ;;  %v4882_v33 = vsub.f32 %v33_v31, %v4879_v32 }
   0x7   :  { %6172 = vst [vmem:[#allocation2_spill] sm:$0xff] %v4818_v14  ;;  %v4827_v17 = vand.u32 4294901760, %v4810_v12  ;;  %v4835_v19 = vand.u32 4294901760, %v4818_v14  ;;  %91 = vmatpush.msra.mxu0 %v4792_v5  ;;  %v4846_v23 = vand.u32 4294901760, %v4821_v15 }
   0x8   :  { %6173 = vst [vmem:[#allocation3_spill] sm:$0xff] %v4821_v15  ;;  %v122_v20 = vsub.f32 %v4807_v11, %v4824_v16  ;;  %v134_v22 = vsub.f32 %v4813_v13, %v4830_v18  ;;  %175 = vmatpush.msra.mxu2 %v4810_v12  ;;  %209 = vmatpush.msra.mxu3 %v4794_v6  ;;  %v4888_v34 = vand.u32 4294901760, %v4882_v33 }
   0x9   :  { %6174 = vst [vmem:[#allocation4_spill] sm:$0xff] %v4830_v18  ;;  %v128_v21 = vsub.f32 %v4810_v12, %v4827_v17  ;;  %93 = vmatpush.msra.mxu0 %v4794_v6  ;;  %v140_v26 = vsub.f32 %v4818_v14, %v4835_v19  ;;  %v146_v28 = vsub.f32 %v4821_v15, %v4846_v23 }
   0xa   :  { %6175 = vst [vmem:[#allocation5_spill] sm:$0xff] %v4835_v19  ;;  %v4850_v24 = vand.u32 4294901760, %v122_v20  ;;  %178 = vmatpush.msra.mxu2 %v4813_v13  ;;  %211 = vmatpush.msra.mxu3 %v4802_v9  ;;  %v4860_v27 = vand.u32 4294901760, %v134_v22  ;;  %v152_v35 = vsub.f32 %v4882_v33, %v4888_v34 }
   0xb   :  { %6176 = vst [vmem:[#allocation6_spill] sm:$0xff] %v4846_v23  ;;  %v4852_v25 = vand.u32 4294901760, %v128_v21  ;;  %95 = vmatpush.msra.mxu0 %v4802_v9  ;;  %v4868_v29 = vand.u32 4294901760, %v140_v26  ;;  %v4872_v30 = vand.u32 4294901760, %v146_v28 }
   0xc   :  { %124 = vmatpush.msra.mxu1 %v4850_v24  ;;  %181 = vmatpush.msra.mxu2 %v4818_v14  ;;  %6177 = vst [vmem:[#allocation7_spill] sm:$0xff] %v4882_v33  ;;  %v4895_v36 = vand.u32 4294901760, %v152_v35  ;;  %v4562_v35 = vld [vmem:[%s6067_s6 + $0x1] ss:$0 sm:$0xff] }
   0xd   :  { %213 = vmatpush.msra.mxu3 %v4804_v10  ;;  %97 = vmatpush.msra.mxu0 %v4804_v10  ;;  %6178 = vst [vmem:[#allocation8_spill] sm:$0xff] %v4888_v34 }
   0xe   :  { %130 = vmatpush.msra.mxu1 %v4852_v25  ;;  %184 = vmatpush.msra.mxu2 %v4821_v15  ;;  %6179 = vst [vmem:[#allocation9_spill] sm:$0xff] %v4895_v36 }
   0xf   :  { %215 = vmatpush.msra.mxu3 %v4879_v32  ;;  %99 = vmatpush.msra.mxu0 %v4879_v32 }
  0x10   :  { %136 = vmatpush.msra.mxu1 %v4860_v27  ;;  %187 = vmatpush.msra.mxu2 %v4882_v33 }
  0x11   :  { %236 = vmatpush.msrb.mxu0 %v4824_v16 }
  0x12   :  { %142 = vmatpush.msra.mxu1 %v4868_v29 }
  0x13   :  { %240 = vmatpush.msrb.mxu0 %v4827_v17 }
  0x14   :  { %148 = vmatpush.msra.mxu1 %v4872_v30 }
  0x15   :  { %244 = vmatpush.msrb.mxu0 %v4830_v18 }
  0x16   :  { %154 = vmatpush.msra.mxu1 %v4895_v36 }
  0x17   :  { %248 = vmatpush.msrb.mxu0 %v4835_v19 }
  0x18   :  { %273 = vmatpush.msrb.mxu1 %v4790_v4 }
  0x19   :  { %252 = vmatpush.msrb.mxu0 %v4846_v23 }
  0x1a   :  { %275 = vmatpush.msrb.mxu1 %v4792_v5 }
  0x1b   :  { %256 = vmatpush.msrb.mxu0 %v4888_v34 }
  0x1c   :  { %277 = vmatpush.msrb.mxu1 %v4794_v6 }
  0x1e   :  { %279 = vmatpush.msrb.mxu1 %v4802_v9 }
  0x20   :  { %281 = vmatpush.msrb.mxu1 %v4804_v10 }
  0x22   :  { %283 = vmatpush.msrb.mxu1 %v4879_v32 }
  0x74   :  { %v70_v39 = vpop.permute.xlu0 %69 }
  0x75   :  { %v73_v40 = vsel %vm72_vm0, %v4560_v38, %v70_v39 }
  0x76   :  { %v76_v41 = vsel %vm74_vm1, %v73_v40, 0 }
  0x77   :  { %v100_v42 = vand.u32 4294901760, %v76_v41  ;;  %v312_v37 = vpop.permute.xlu1 %311 }
  0x79   :  { %v101_v43 = vsub.f32 %v76_v41, %v100_v42  ;;  %156 = vmatmul.f32.vlgmr.msra.gmra.mxu1 %v100_v42 }
  0x7b   :  { %190 = vmatmul.f32.vlgmr.msra.gmra.mxu2 %v101_v43  ;;  %v102_v44 = vand.u32 4294901760, %v101_v43 }
  0x7d   :  { %219 = vmatmul.f32.vlgmr.msra.gmra.mxu3 %v102_v44  ;;  %v103_v45 = vsub.f32 %v101_v43, %v102_v44  ;;  %v45_v43 = vld [vmem:[%s6072_s4 + $0x30] sm:$0xff]  ;;  %v44_v44 = vld [vmem:[%s6072_s4 + $0x28] sm:$0xff] }
  0x7f   :  { %v104_v46 = vand.u32 4294901760, %v103_v45 }
  0x81   :  { %105 = vmatmul.f32.vlgmr.msra.gmra.mxu0 %v104_v46  ;;  %285 = vmatmul.f32.vlgmr.msrb.gmra.mxu1 %v100_v42  ;;  %v4944_v46 = vand.u32 4294901760, %v45_v43 }
  0x89   :  { %258 = vmatmul.f32.vlgmr.msrb.gmra.mxu0 %v100_v42  ;;  %v46_v42 = vld [vmem:[%s6072_s4 + $0x38] sm:$0xff] }
  0x8a   :  { %v4942_v45 = vand.u32 4294901760, %v46_v42 }
  0x8c   :  { %357 = vmatpush.msrb.mxu2 %v4942_v45  ;;  %489 = vmatpush.msra.mxu1 %v4942_v45 }
  0x8e   :  { %359 = vmatpush.msrb.mxu2 %v4944_v46  ;;  %491 = vmatpush.msra.mxu1 %v4944_v46 }
  0xf6   :  { %v157_v47 = vpop.f32.mrf.mxu1 }
  0xfe   :  { %v106_v48 = vpop.f32.mrf.mxu0  ;;  %v191_v50 = vpop.f32.mrf.mxu2 }
  0xff   :  { %v158_v49 = vadd.f32 %v157_v47, %v106_v48  ;;  %v286_v56 = vpop.f32.mrf.mxu1  ;;  %v4946_v47 = vand.u32 4294901760, %v44_v44  ;;  %v43_v48 = vld [vmem:[%s6072_s4 + $0x20] sm:$0xff] }
 0x100   :  { %v220_v52 = vpop.f32.mrf.mxu3 }
 0x101   :  { %v192_v51 = vadd.f32 %v191_v50, %v158_v49  ;;  %v42_v49 = vld [vmem:[%s6072_s4 + $0x18] sm:$0xff]  ;;  %v41_v50 = vld [vmem:[%s6072_s4 + $0x10] sm:$0xff]  ;;  %361 = vmatpush.msrb.mxu2 %v4946_v47  ;;  %493 = vmatpush.msra.mxu1 %v4946_v47 }
 0x103   :  { %v221_v53 = vadd.f32 %v220_v52, %v192_v51  ;;  %v4957_v51 = vand.u32 4294901760, %v43_v48  ;;  %v4959_v52 = vand.u32 4294901760, %v42_v49 }
 0x105   :  { %363 = vmatpush.msrb.mxu2 %v4957_v51  ;;  %495 = vmatpush.msra.mxu1 %v4957_v51 }
 0x106   :  { %v259_v54 = vpop.f32.mrf.mxu0 }
 0x107   :  { %v260_v55 = vadd.f32 %v259_v54, %v221_v53  ;;  %v4961_v53 = vand.u32 4294901760, %v41_v50  ;;  %v40_v54 = vld [vmem:[%s6072_s4 + $0x8] sm:$0xff]  ;;  %365 = vmatpush.msrb.mxu2 %v4959_v52  ;;  %497 = vmatpush.msra.mxu1 %v4959_v52 }
 0x109   :  { %v287_v58 = vadd.f32 %v286_v56, %v260_v55  ;;  %v39_v55 = vld [vmem:[%s6072_s4] sm:$0xff]  ;;  %v4970_v56 = vsub.f32 %v46_v42, %v4942_v45  ;;  %367 = vmatpush.msrb.mxu2 %v4961_v53  ;;  %499 = vmatpush.msra.mxu1 %v4961_v53 }
 0x10b   :  { %v289_v59 = vadd.f32 %v4523_v57, %v287_v58  ;;  %6181 = vst [vmem:[#allocation11_spill] sm:$0xff] %v4970_v56  ;;  %v4973_v57 = vsub.f32 %v45_v43, %v4944_v46  ;;  %v4976_v58 = vsub.f32 %v44_v44, %v4946_v47  ;;  %452 = vmatpush.msra.mxu0 %v4970_v56 }
 0x10d   :  { %4565 = vtanh.f32 %v289_v59  ;;  %v4524_v61 = vmul.f32 -1.442695, %v289_v59  ;;  %6182 = vst [vmem:[#allocation12_spill] sm:$0xff] %v4973_v57  ;;  %v4980_v59 = vand.u32 4294901760, %v40_v54  ;;  %455 = vmatpush.msra.mxu0 %v4973_v57 }
 0x10e   :  { %6183 = vst [vmem:[#allocation13_spill] sm:$0xff] %v4976_v58 }
 0x10f   :  { %4567 = vpow2.f32 %v4524_v61  ;;  %v4986_v61 = vsub.f32 %v42_v49, %v4959_v52  ;;  %458 = vmatpush.msra.mxu0 %v4976_v58  ;;  %369 = vmatpush.msrb.mxu2 %v4980_v59 }
 0x110   :  { %501 = vmatpush.msra.mxu1 %v4980_v59 }
 0x111   :  { %6185 = vst [vmem:[#allocation15_spill] sm:$0xff] %v4986_v61 }
 0x113   :  { %v4566_v60 = vpop.eup %4565 }
 0x114   :  { %316 = vrot.lane.b32.xlu0 %v4566_v60, %s4725_s29  ;;  %v4983_v60 = vsub.f32 %v43_v48, %v4957_v51 }
 0x115   :  { %v4568_v62 = vpop.eup %4567 }
 0x116   :  { %v293_v63 = vadd.f32 1.0, %v4568_v62  ;;  %6184 = vst [vmem:[#allocation14_spill] sm:$0xff] %v4983_v60  ;;  %v4989_v62 = vsub.f32 %v41_v50, %v4961_v53  ;;  %461 = vmatpush.msra.mxu0 %v4983_v60 }
 0x118   :  { %4569 = vrcp.f32 %v293_v63  ;;  %v305_v8 = vand.u32 2147483648, %v293_v63  ;;  %vm299_vm3 = vweird.f32 %v293_v63  ;;  %v303_v20 = vand.u32 2147483647, %v293_v63  ;;  %6186 = vst [vmem:[#allocation16_spill] sm:$0xff] %v4989_v62  ;;  %464 = vmatpush.msra.mxu0 %v4986_v61 }
 0x11a   :  { %v306_v22 = vor.u32 1.1754944e-38, %v305_v8  ;;  %vm304_vm5 = vcmp.eq.f32.partialorder %v303_v20, 8.507059e+37  ;;  %467 = vmatpush.msra.mxu0 %v4989_v62 }
 0x11c   :  { %336 = vrot.lane.b32.xlu0 %v4562_v35, %s4724_s25 }
 0x11e   :  { %v4570_v0 = vpop.eup %4569 }
 0x11f   :  { %v295_v1 = vmul.f32 %v4570_v0, %v293_v63  ;;  %vm300_vm2 = vweird.f32 %v4570_v0  ;;  %v4992_v63 = vand.u32 4294901760, %v4970_v56 }
 0x120   :  { %vm301_vm4 = vmor %vm299_vm3, %vm300_vm2 }
 0x121   :  { %v296_v2 = vsub.f32 1.0, %v295_v1  ;;  %v4998_v1 = vand.u32 4294901760, %v4976_v58  ;;  %v392_v8 = vsub.f32 %v4970_v56, %v4992_v63 }
 0x123   :  { %v297_v3 = vmul.f32 %v4570_v0, %v296_v2  ;;  %v5002_v2 = vand.u32 4294901760, %v39_v55 }
 0x125   :  { %v298_v7 = vadd.f32 %v4570_v0, %v297_v3  ;;  %v5005_v3 = vand.u32 4294901760, %v4983_v60  ;;  %371 = vmatpush.msrb.mxu2 %v5002_v2  ;;  %503 = vmatpush.msra.mxu1 %v5002_v2 }
 0x127   :  { %v302_v21 = vsel %vm301_vm4, %v4570_v0, %v298_v7  ;;  %v4995_v0 = vand.u32 4294901760, %v4973_v57  ;;  %6187 = vst [vmem:[#allocation17_spill] sm:$0xff] %v5005_v3  ;;  %v5008_v7 = vsub.f32 %v40_v54, %v4980_v59  ;;  %522 = vmatpush.msra.mxu2 %v4992_v63  ;;  %789 = vmatpush.msrb.mxu1 %v4850_v24 }
 0x128   :  { %v4920_v26 = vsel %vm304_vm5, %v306_v22, %v302_v21  ;;  %v404_v21 = vsub.f32 %v4976_v58, %v4998_v1  ;;  %v5018_v22 = vand.u32 4294901760, %v4986_v61 }
 0x129   :  { %v314_v38 = vmul.f32 %v312_v37, %v4920_v26  ;;  %6188 = vst [vmem:[#allocation18_spill] sm:$0xff] %v5008_v7  ;;  %v398_v20 = vsub.f32 %v4973_v57, %v4995_v0  ;;  %v410_v37 = vsub.f32 %v4983_v60, %v5005_v3  ;;  %v5044_v42 = vand.u32 4294901760, %v5008_v7  ;;  %470 = vmatpush.msra.mxu0 %v5008_v7 }
 0x12a   :  { %6189 = vst [vmem:[#allocation19_spill] sm:$0xff] %v5018_v22  ;;  %526 = vmatpush.msra.mxu2 %v4995_v0  ;;  %795 = vmatpush.msrb.mxu1 %v4852_v25 }
 0x12b   :  { %v5028_v35 = vand.u32 4294901760, %v398_v20  ;;  %6195 = vst [vmem:[#allocation25_spill] sm:$0xff] %v5044_v42  ;;  %v5050_v43 = vand.u32 4294901760, %v410_v37  ;;  %v428_v50 = vsub.f32 %v5008_v7, %v5044_v42 }
 0x12c   :  { %530 = vmatpush.msra.mxu2 %v4998_v1  ;;  %801 = vmatpush.msrb.mxu1 %v4860_v27 }
 0x12d   :  { %6192 = vst [vmem:[#allocation22_spill] sm:$0xff] %v5028_v35 }
 0x12e   :  { %6196 = vst [vmem:[#allocation26_spill] sm:$0xff] %v5050_v43  ;;  %534 = vmatpush.msra.mxu2 %v5005_v3  ;;  %807 = vmatpush.msrb.mxu1 %v4868_v29 }
 0x130   :  { %538 = vmatpush.msra.mxu2 %v5018_v22  ;;  %813 = vmatpush.msrb.mxu1 %v4872_v30 }
 0x132   :  { %819 = vmatpush.msrb.mxu1 %v4895_v36 }
 0x186   :  { %v317_v28 = vpop.permute.xlu0 %316 }
 0x187   :  { %v319_v31 = vmul.f32 %v317_v28, %v4920_v26  ;;  %v5023_v28 = vand.u32 4294901760, %v4989_v62 }
 0x189   :  { %321 = vrot.lane.b32.xlu1 %v319_v31, %s4724_s25  ;;  %6190 = vst [vmem:[#allocation20_spill] sm:$0xff] %v5023_v28  ;;  %v5026_v31 = vand.u32 4294901760, %v392_v8  ;;  %v422_v44 = vsub.f32 %v4989_v62, %v5023_v28  ;;  %v5077_v8 = vand.u32 4294901760, %v428_v50  ;;  %542 = vmatpush.msra.mxu2 %v5023_v28 }
 0x18b   :  { %6191 = vst [vmem:[#allocation21_spill] sm:$0xff] %v5026_v31  ;;  %394 = vmatpush.msrb.mxu3 %v5026_v31  ;;  %v5069_v54 = vand.u32 4294901760, %v422_v44  ;;  %546 = vmatpush.msra.mxu2 %v5044_v42 }
 0x18c   :  { %6200 = vst [vmem:[#allocation30_spill] sm:$0xff] %v5077_v8 }
 0x18d   :  { %400 = vmatpush.msrb.mxu3 %v5028_v35  ;;  %6199 = vst [vmem:[#allocation29_spill] sm:$0xff] %v5069_v54 }
 0x1fb   :  { %v322_v39 = vpop.permute.xlu1 %321 }
 0x1fc   :  { %v4929_v40 = vadd.f32 %v322_v39, %v314_v38  ;;  %v5035_v38 = vsub.f32 %v39_v55, %v5002_v2  ;;  %v5039_v39 = vand.u32 4294901760, %v404_v21 }
 0x1fe   :  { %6180 = vst [vmem:[#allocation10_spill] sm:$0xff] %v4929_v40  ;;  %4571 = vtanh.f32 %v4929_v40  ;;  %v5055_v48 = vand.u32 4294901760, %v5035_v38  ;;  %406 = vmatpush.msrb.mxu3 %v5039_v39  ;;  %473 = vmatpush.msra.mxu0 %v5035_v38 }
 0x1ff   :  { %6193 = vst [vmem:[#allocation23_spill] sm:$0xff] %v5035_v38 }
 0x200   :  { %6194 = vst [vmem:[#allocation24_spill] sm:$0xff] %v5039_v39  ;;  %412 = vmatpush.msrb.mxu3 %v5050_v43  ;;  %v434_v55 = vsub.f32 %v5035_v38, %v5055_v48  ;;  %754 = vmatpush.msrb.mxu0 %v4790_v4 }
 0x201   :  { %6197 = vst [vmem:[#allocation27_spill] sm:$0xff] %v5055_v48  ;;  %550 = vmatpush.msra.mxu2 %v5055_v48 }
 0x202   :  { %v5083_v20 = vand.u32 4294901760, %v434_v55  ;;  %756 = vmatpush.msrb.mxu0 %v4792_v5 }
 0x204   :  { %v4572_v41 = vpop.eup %4571  ;;  %6201 = vst [vmem:[#allocation31_spill] sm:$0xff] %v5083_v20  ;;  %758 = vmatpush.msrb.mxu0 %v4794_v6 }
 0x205   :  { %327 = vrot.lane.b32.xlu2 %v4572_v41, %s4725_s29  ;;  %v416_v41 = vsub.f32 %v4986_v61, %v5018_v22 }
 0x206   :  { %760 = vmatpush.msrb.mxu0 %v4802_v9 }
 0x207   :  { %v5061_v49 = vand.u32 4294901760, %v416_v41  ;;  %v337_v41 = vpop.permute.xlu0 %336 }
 0x208   :  { %762 = vmatpush.msrb.mxu0 %v4804_v10 }
 0x209   :  { %6198 = vst [vmem:[#allocation28_spill] sm:$0xff] %v5061_v49  ;;  %418 = vmatpush.msrb.mxu3 %v5061_v49 }
 0x20a   :  { %764 = vmatpush.msrb.mxu0 %v4879_v32 }
 0x20b   :  { %424 = vmatpush.msrb.mxu3 %v5069_v54 }
 0x20d   :  { %430 = vmatpush.msrb.mxu3 %v5077_v8 }
 0x20f   :  { %436 = vmatpush.msrb.mxu3 %v5083_v20 }
 0x211   :  { %565 = vmatpush.msra.mxu3 %v4942_v45 }
 0x213   :  { %567 = vmatpush.msra.mxu3 %v4944_v46 }
 0x215   :  { %569 = vmatpush.msra.mxu3 %v4946_v47 }
 0x217   :  { %571 = vmatpush.msra.mxu3 %v4957_v51 }
 0x219   :  { %573 = vmatpush.msra.mxu3 %v4959_v52 }
 0x21b   :  { %575 = vmatpush.msra.mxu3 %v4961_v53 }
 0x21d   :  { %577 = vmatpush.msra.mxu3 %v4980_v59 }
 0x21f   :  { %579 = vmatpush.msra.mxu3 %v5002_v2 }
 0x25f   :  { %v328_v21 = vpop.permute.xlu2 %327 }
 0x260   :  { %v5103_v37 = vmul.f32 %v328_v21, %v4920_v26  ;;  %v4563_v26 = vld [vmem:[%s6070_s7 + $0x1] ss:$0 sm:$0xff] }
 0x262   :  { %332 = vrot.lane.b32.xlu2 %v5103_v37, %s4724_s25 }
 0x26a   :  { %606 = vrot.lane.b32.xlu2 %v4563_v26, %s4724_s25 }
 0x2bc   :  { %v333_v44 = vpop.permute.xlu2 %332 }
 0x2bd   :  { %v340_v50 = vsel %vm339_vm6, %v333_v44, %v337_v41 }
 0x2be   :  { %v346_v55 = vsel %vm344_vm7, %v340_v50, 0 }
 0x2bf   :  { %v372_v21 = vand.u32 4294901760, %v346_v55 }
 0x2c1   :  { %v373_v40 = vsub.f32 %v346_v55, %v372_v21  ;;  %438 = vmatmul.f32.vlgmr.msrb.gmra.mxu3 %v372_v21 }
 0x2c2   :  { %870 = vmatpush.msrb.mxu3 %v4790_v4 }
 0x2c3   :  { %476 = vmatmul.f32.vlgmr.msra.gmra.mxu0 %v373_v40  ;;  %v374_v36 = vand.u32 4294901760, %v373_v40 }
 0x2c4   :  { %872 = vmatpush.msrb.mxu3 %v4792_v5  ;;  %901 = vmatpush.msra.mxu0 %v4824_v16 }
 0x2c5   :  { %507 = vmatmul.f32.vlgmr.msra.gmra.mxu1 %v374_v36  ;;  %v375_v26 = vsub.f32 %v373_v40, %v374_v36  ;;  %v5167_v36 = vld [vmem:[%s6073_s5] ss:$0 sm:$0xff] }
 0x2c6   :  { %874 = vmatpush.msrb.mxu3 %v4794_v6  ;;  %938 = vmatpush.msra.mxu1 %v4790_v4  ;;  %6202 = vst [vmem:[#allocation32_spill] sm:$0xff] %v5167_v36 }
 0x2c7   :  { %v376_v41 = vand.u32 4294901760, %v375_v26  ;;  %905 = vmatpush.msra.mxu0 %v4827_v17 }
 0x2c8   :  { %876 = vmatpush.msrb.mxu3 %v4802_v9  ;;  %940 = vmatpush.msra.mxu1 %v4792_v5 }
 0x2c9   :  { %377 = vmatmul.f32.vlgmr.msrb.gmra.mxu2 %v376_v41  ;;  %581 = vmatmul.f32.vlgmr.msra.gmra.mxu3 %v372_v21 }
 0x2ca   :  { %837 = vmatpush.msrb.mxu2 %v4807_v11  ;;  %878 = vmatpush.msrb.mxu3 %v4804_v10 }
 0x2cb   :  { %942 = vmatpush.msra.mxu1 %v4794_v6  ;;  %909 = vmatpush.msra.mxu0 %v4830_v18 }
 0x2cc   :  { %840 = vmatpush.msrb.mxu2 %v4810_v12  ;;  %880 = vmatpush.msrb.mxu3 %v4879_v32 }
 0x2cd   :  { %944 = vmatpush.msra.mxu1 %v4802_v9  ;;  %913 = vmatpush.msra.mxu0 %v4835_v19 }
 0x2ce   :  { %843 = vmatpush.msrb.mxu2 %v4813_v13  ;;  %1049 = vmatpush.msra.mxu3 %v5026_v31 }
 0x2cf   :  { %946 = vmatpush.msra.mxu1 %v4804_v10  ;;  %917 = vmatpush.msra.mxu0 %v4846_v23 }
 0x2d0   :  { %846 = vmatpush.msrb.mxu2 %v4818_v14  ;;  %1055 = vmatpush.msra.mxu3 %v5028_v35 }
 0x2d1   :  { %552 = vmatmul.f32.vlgmr.msra.gmra.mxu2 %v372_v21  ;;  %948 = vmatpush.msra.mxu1 %v4879_v32 }
 0x2d2   :  { %849 = vmatpush.msrb.mxu2 %v4821_v15  ;;  %921 = vmatpush.msra.mxu0 %v4888_v34 }
 0x2d3   :  { %1061 = vmatpush.msra.mxu3 %v5039_v39 }
 0x2d4   :  { %852 = vmatpush.msrb.mxu2 %v4882_v33 }
 0x2d5   :  { %1067 = vmatpush.msra.mxu3 %v5050_v43 }
 0x2d6   :  { %1012 = vmatpush.msra.mxu2 %v4942_v45 }
 0x2d7   :  { %1073 = vmatpush.msra.mxu3 %v5061_v49 }
 0x2d8   :  { %1014 = vmatpush.msra.mxu2 %v4944_v46 }
 0x2d9   :  { %1079 = vmatpush.msra.mxu3 %v5069_v54 }
 0x2da   :  { %1016 = vmatpush.msra.mxu2 %v4946_v47 }
 0x2db   :  { %1085 = vmatpush.msra.mxu3 %v5077_v8 }
 0x2dc   :  { %1018 = vmatpush.msra.mxu2 %v4957_v51 }
 0x2dd   :  { %1091 = vmatpush.msra.mxu3 %v5083_v20 }
 0x2de   :  { %1020 = vmatpush.msra.mxu2 %v4959_v52 }
 0x2e0   :  { %1022 = vmatpush.msra.mxu2 %v4961_v53 }
 0x2e2   :  { %1024 = vmatpush.msra.mxu2 %v4980_v59 }
 0x2e4   :  { %1026 = vmatpush.msra.mxu2 %v5002_v2 }
 0x340   :  { %v477_v21 = vpop.f32.mrf.mxu0 }
 0x342   :  { %v508_v41 = vpop.f32.mrf.mxu1 }
 0x344   :  { %v439_v40 = vpop.f32.mrf.mxu3 }
 0x34c   :  { %v378_v44 = vpop.f32.mrf.mxu2  ;;  %v582_v49 = vpop.f32.mrf.mxu3 }
 0x34d   :  { %v379_v50 = vadd.f32 %v5167_v36, %v378_v44 }
 0x34f   :  { %v440_v55 = vadd.f32 %v439_v40, %v379_v50 }
 0x351   :  { %v478_v26 = vadd.f32 %v477_v21, %v440_v55 }
 0x353   :  { %v509_v20 = vadd.f32 %v508_v41, %v478_v26 }
 0x354   :  { %v553_v8 = vpop.f32.mrf.mxu2 }
 0x355   :  { %v554_v54 = vadd.f32 %v553_v8, %v509_v20 }
 0x357   :  { %v583_v43 = vadd.f32 %v582_v49, %v554_v54 }
 0x359   :  { %4573 = vtanh.f32 %v583_v43  ;;  %v4525_v39 = vmul.f32 -1.442695, %v583_v43 }
 0x35b   :  { %4575 = vpow2.f32 %v4525_v39 }
 0x35f   :  { %v4574_v33 = vpop.eup %4573 }
 0x360   :  { %611 = vrot.lane.b32.xlu1 %v4574_v33, %s4725_s29 }
 0x361   :  { %v4576_v34 = vpop.eup %4575 }
 0x362   :  { %v588_v15 = vadd.f32 1.0, %v4576_v34  ;;  %v607_v34 = vpop.permute.xlu2 %606 }
 0x364   :  { %4577 = vrcp.f32 %v588_v15  ;;  %v600_v21 = vand.u32 2147483648, %v588_v15  ;;  %vm594_vm9 = vweird.f32 %v588_v15  ;;  %v598_v8 = vand.u32 2147483647, %v588_v15 }
 0x366   :  { %v601_v54 = vor.u32 1.1754944e-38, %v600_v21  ;;  %vm599_vm11 = vcmp.eq.f32.partialorder %v598_v8, 8.507059e+37  ;;  %v5185_v21 = vld [vmem:[%s6074_s1] sm:$0xff] }
 0x367   :  { %6205 = vst [vmem:[#allocation35_spill] sm:$0xff] %v5185_v21 }
 0x36a   :  { %v4578_v35 = vpop.eup %4577 }
 0x36b   :  { %v590_v44 = vmul.f32 %v4578_v35, %v588_v15  ;;  %vm595_vm8 = vweird.f32 %v4578_v35 }
 0x36c   :  { %vm596_vm10 = vmor %vm594_vm9, %vm595_vm8 }
 0x36d   :  { %v591_v40 = vsub.f32 1.0, %v590_v44 }
 0x36f   :  { %v592_v50 = vmul.f32 %v4578_v35, %v591_v40 }
 0x371   :  { %v593_v55 = vadd.f32 %v4578_v35, %v592_v50 }
 0x373   :  { %v597_v49 = vsel %vm596_vm10, %v4578_v35, %v593_v55 }
 0x374   :  { %v602_v20 = vsel %vm599_vm11, %v601_v54, %v597_v49 }
 0x375   :  { %v609_v39 = vmul.f32 %v607_v34, %v602_v20 }
 0x3d2   :  { %v612_v33 = vpop.permute.xlu1 %611 }
 0x3d3   :  { %v614_v43 = vmul.f32 %v612_v33, %v602_v20 }
 0x3d5   :  { %616 = vrot.lane.b32.xlu0 %v614_v43, %s4724_s25 }
 0x447   :  { %v617_v26 = vpop.permute.xlu0 %616 }
 0x448   :  { %v5172_v41 = vadd.f32 %v617_v26, %v609_v39  ;;  %v646_v39 = vlaneseq }
 0x44a   :  { %6203 = vst [vmem:[#allocation33_spill] sm:$0xff] %v5172_v41  ;;  %4579 = vtanh.f32 %v5172_v41  ;;  %v5196_v26 = vand.u32 127, %v646_v39 }
 0x44c   :  { %6207 = vst [vmem:[#allocation37_spill] sm:$0xff] %v5196_v26 }
 0x450   :  { %v4580_v44 = vpop.eup %4579 }
 0x451   :  { %622 = vrot.lane.b32.xlu1 %v4580_v44, %s4725_s29 }
 0x4c3   :  { %v623_v15 = vpop.permute.xlu1 %622 }
 0x4c4   :  { %v5176_v40 = vmul.f32 %v623_v15, %v602_v20  ;;  %v5192_v20 = vld [vmem:[%s6074_s1 + $0x8] sm:$0xff] }
 0x4c5   :  { %6206 = vst [vmem:[#allocation36_spill] sm:$0xff] %v5192_v20 }
 0x4c6   :  { %6204 = vst [vmem:[#allocation34_spill] sm:$0xff] %v5176_v40  ;;  %v628_v35 = vperm.slane %v5176_v40, 0  ;;  %v627_v50 = vrot.slane %v5176_v40, 1 }
 0x4c8   :  { %630 = vrot.lane.b32.xlu2 %v628_v35, %s4724_s25  ;;  %v629_v55 = vperm.slane %v627_v50, 0 }
 0x4ca   :  { %632 = vrot.lane.b32.xlu0 %v629_v55, %s4724_s25 }
 0x522   :  { %v631_v8 = vpop.permute.xlu2 %630 }
 0x523   :  { %v636_v49 = vmul.f32 %v631_v8, %v5185_v21 }
 0x525   :  { %v638_v54 = vsel %vm339_vm6, %v636_v49, 0.0  ;;  %v4726_v49 = vmov 0  }
 0x526   :  { %639 = vadd.xlane.f32.xlu1 %v638_v54  ;;  %65 = vst.msk [vmem:[%s6075_s9] sm:$0x1] %vm64_vm14, %v4726_v49  ;;  %4556 = vset.pattern.permute.xlu2 %v4726_v49 }
 0x527   :  { %4557 = vset.pattern.permute.xlu1 %v4726_v49  ;;  %4558 = vset.pattern.permute.xlu0 %v4726_v49 }
 0x53c   :  { %v633_v33 = vpop.permute.xlu0 %632 }
 0x53d   :  { %v637_v43 = vmul.f32 %v633_v33, %v5192_v20 }
 0x53f   :  { %v641_v34 = vsel %vm339_vm6, %v637_v43, 0.0 }
 0x540   :  { %642 = vadd.xlane.f32.xlu2 %v641_v34 }
 0x599   :  { %v640_v44 = vpop.xlane.xlu1 %639 }
 0x59a   :  { %v648_v35 = vperm.slane %v640_v44, %v5196_v26 }
 0x5b3   :  { %v643_v15 = vpop.xlane.xlu2 %642 }
 0x5b4   :  { %v649_v50 = vperm.slane %v643_v15, %v5196_v26 }
 0x5b6   :  { %v651_v55 = vsel %vm650_vm12, %v649_v50, %v648_v35 }
 0x5b7   :  { %v654_v8 = vsel %vm653_vm13, %v651_v55, -inf }
 0x5b8   :  { %655 = vmax.xlane.f32.xlu0 %v654_v8 }
 0x62b   :  { %v656_v54 = vpop.xlane.xlu0 %655 }
 0x62c   :  { %v658_v33 = vperm.slane %v656_v54, 0  ;;  %v659_v43 = vperm.slane %v656_v54, 1 }
 0x62e   :  { %v662_v34 = vsub.f32 %v640_v44, %v658_v33  ;;  %v663_v39 = vsub.f32 %v643_v15, %v659_v43 }
 0x630   :  { %v664_v21 = vmul.f32 1.442695, %v662_v34  ;;  %v666_v35 = vmul.f32 1.442695, %v663_v39 }
 0x632   :  { %4581 = vpow2.f32 %v664_v21 }
 0x633   :  { %4583 = vpow2.f32 %v666_v35 }
 0x638   :  { %v4582_v50 = vpop.eup %4581 }
 0x639   :  { %v4584_v55 = vpop.eup %4583  ;;  %671 = vperm.xlu2 %4556, %v4582_v50  }
 0x63a   :  { %674 = vperm.xlu1 %4557, %v4584_v55  }
 0x642   :  { %736 = vrot.lane.b32.xlu1 %v5103_v37, %s4727_s13  ;;  %v5215_v37 = vld [vmem:[%s6076_s2 + $0x8] sm:$0xff] }
 0x643   :  { %6208 = vst [vmem:[#allocation38_spill] sm:$0xff] %v5215_v37 }
 0x693   :  { %v672_v8 = vpop.permute.xlu2 %671 }
 0x694   :  { %v676_v49 = vperm.slane %v672_v8, %v5196_v26 }
 0x6ac   :  { %v675_v20 = vpop.permute.xlu1 %674 }
 0x6ad   :  { %v677_v54 = vperm.slane %v675_v20, %v5196_v26 }
 0x6af   :  { %v678_v44 = vsel %vm650_vm12, %v677_v54, %v676_v49 }
 0x6b0   :  { %v680_v15 = vsel %vm653_vm13, %v678_v44, 0.0 }
 0x6b1   :  { %681 = vadd.xlane.f32.xlu0 %v680_v15  ;;  %v5222_v15 = vld [vmem:[%s6076_s2] sm:$0xff] }
 0x6b2   :  { %6209 = vst [vmem:[#allocation39_spill] sm:$0xff] %v5222_v15 }
 0x724   :  { %v682_v21 = vpop.xlane.xlu0 %681 }
 0x725   :  { %4585 = vrcp.f32 %v682_v21 }
 0x72b   :  { %v4586_v33 = vpop.eup %4585 }
 0x72c   :  { %v686_v43 = vperm.slane %v4586_v33, 1  ;;  %v685_v34 = vperm.slane %v4586_v33, 0 }
 0x72e   :  { %v690_v39 = vmul.f32 %v4584_v55, %v686_v43  ;;  %v689_v35 = vmul.f32 %v4582_v50, %v685_v34 }
 0x730   :  { %698 = vperm.xlu2 %4556, %v690_v39   ;;  %693 = vperm.xlu0 %4558, %v689_v35  }
 0x78a   :  { %v699_v20 = vpop.permute.xlu2 %698 }
 0x78b   :  { %v702_v8 = vmul.f32 %v699_v20, %v5215_v37 }
 0x78d   :  { %v710_v49 = vsel %vm72_vm0, %v702_v8, 0.0 }
 0x78e   :  { %v711_v54 = vrot.slane %v710_v49, 4 }
 0x790   :  { %v712_v44 = vadd.f32 %v711_v54, %v710_v49  ;;  %v737_v54 = vpop.permute.xlu1 %736 }
 0x792   :  { %v713_v21 = vrot.slane %v712_v44, 2 }
 0x794   :  { %v714_v34 = vadd.f32 %v713_v21, %v712_v44 }
 0x796   :  { %v715_v20 = vrot.slane %v714_v34, 1 }
 0x798   :  { %v716_v26 = vadd.f32 %v715_v20, %v714_v34  ;;  %v4527_v20 = vld [vmem:[%s6071_s0 + $0x4] sm:$0x3] }
 0x7a2   :  { %v694_v50 = vpop.permute.xlu0 %693 }
 0x7a3   :  { %v701_v55 = vmul.f32 %v694_v50, %v5222_v15 }
 0x7a5   :  { %v703_v33 = vsel %vm72_vm0, %v701_v55, 0.0 }
 0x7a6   :  { %v704_v43 = vrot.slane %v703_v33, 4 }
 0x7a8   :  { %v705_v39 = vadd.f32 %v704_v43, %v703_v33 }
 0x7aa   :  { %v706_v35 = vrot.slane %v705_v39, 2 }
 0x7ac   :  { %v707_v37 = vadd.f32 %v706_v35, %v705_v39 }
 0x7ae   :  { %v708_v8 = vrot.slane %v707_v37, 1 }
 0x7b0   :  { %v709_v49 = vadd.f32 %v708_v8, %v707_v37 }
 0x7b2   :  { %v734_v41 = vsel %vm650_vm12, %v716_v26, %v709_v49 }
 0x7b3   :  { %v739_v36 = vsel %vm72_vm0, %v734_v41, %v737_v54 }
 0x7b4   :  { %v741_v14 = vsel %vm74_vm1, %v739_v36, 0 }
 0x7b5   :  { %v765_v50 = vand.u32 4294901760, %v741_v14 }
 0x7b7   :  { %821 = vmatmul.f32.vlgmr.msrb.gmra.mxu1 %v765_v50  ;;  %v766_v15 = vsub.f32 %v741_v14, %v765_v50  ;;  %v6210_v14 = vld [vmem:[#allocation9_spill] sm:$0xff] }
 0x7b8   :  { %1144 = vmatpush.msrb.mxu1 %v4942_v45 }
 0x7b9   :  { %855 = vmatmul.f32.vlgmr.msrb.gmra.mxu2 %v766_v15  ;;  %v767_v44 = vand.u32 4294901760, %v766_v15 }
 0x7ba   :  { %1146 = vmatpush.msrb.mxu1 %v4944_v46  ;;  %1177 = vmatpush.msrb.mxu2 %v4992_v63 }
 0x7bb   :  { %884 = vmatmul.f32.vlgmr.msrb.gmra.mxu3 %v767_v44  ;;  %v768_v37 = vsub.f32 %v766_v15, %v767_v44 }
 0x7bc   :  { %1148 = vmatpush.msrb.mxu1 %v4946_v47  ;;  %1220 = vmatpush.msrb.mxu3 %v4942_v45 }
 0x7bd   :  { %v769_v41 = vand.u32 4294901760, %v768_v37  ;;  %1181 = vmatpush.msrb.mxu2 %v4995_v0 }
 0x7be   :  { %1150 = vmatpush.msrb.mxu1 %v4957_v51  ;;  %1222 = vmatpush.msrb.mxu3 %v4944_v46 }
 0x7bf   :  { %770 = vmatmul.f32.vlgmr.msrb.gmra.mxu0 %v769_v41  ;;  %950 = vmatmul.f32.vlgmr.msra.gmra.mxu1 %v765_v50 }
 0x7c0   :  { %1107 = vmatpush.msrb.mxu0 %v4970_v56  ;;  %1152 = vmatpush.msrb.mxu1 %v4959_v52 }
 0x7c1   :  { %1224 = vmatpush.msrb.mxu3 %v4946_v47  ;;  %1185 = vmatpush.msrb.mxu2 %v4998_v1 }
 0x7c2   :  { %1110 = vmatpush.msrb.mxu0 %v4973_v57  ;;  %1154 = vmatpush.msrb.mxu1 %v4961_v53 }
 0x7c3   :  { %1226 = vmatpush.msrb.mxu3 %v4957_v51  ;;  %1189 = vmatpush.msrb.mxu2 %v5005_v3 }
 0x7c4   :  { %1113 = vmatpush.msrb.mxu0 %v4976_v58  ;;  %1156 = vmatpush.msrb.mxu1 %v4980_v59 }
 0x7c5   :  { %1228 = vmatpush.msrb.mxu3 %v4959_v52  ;;  %1193 = vmatpush.msrb.mxu2 %v5018_v22 }
 0x7c6   :  { %1116 = vmatpush.msrb.mxu0 %v4983_v60  ;;  %1158 = vmatpush.msrb.mxu1 %v5002_v2 }
 0x7c7   :  { %923 = vmatmul.f32.vlgmr.msra.gmra.mxu0 %v765_v50  ;;  %1230 = vmatpush.msrb.mxu3 %v4961_v53 }
 0x7c8   :  { %1119 = vmatpush.msrb.mxu0 %v4986_v61  ;;  %1197 = vmatpush.msrb.mxu2 %v5023_v28 }
 0x7c9   :  { %1232 = vmatpush.msrb.mxu3 %v4980_v59  ;;  %1435 = vmatpush.msra.mxu1 %v4850_v24 }
 0x7ca   :  { %1122 = vmatpush.msrb.mxu0 %v4989_v62  ;;  %1201 = vmatpush.msrb.mxu2 %v5044_v42 }
 0x7cb   :  { %1234 = vmatpush.msrb.mxu3 %v5002_v2  ;;  %1441 = vmatpush.msra.mxu1 %v4852_v25 }
 0x7cc   :  { %1125 = vmatpush.msrb.mxu0 %v5008_v7  ;;  %1205 = vmatpush.msrb.mxu2 %v5055_v48 }
 0x7cd   :  { %1447 = vmatpush.msra.mxu1 %v4860_v27 }
 0x7ce   :  { %1128 = vmatpush.msrb.mxu0 %v5035_v38 }
 0x7cf   :  { %1453 = vmatpush.msra.mxu1 %v4868_v29 }
 0x7d0   :  { %1400 = vmatpush.msra.mxu0 %v4790_v4 }
 0x7d1   :  { %1459 = vmatpush.msra.mxu1 %v4872_v30 }
 0x7d2   :  { %1402 = vmatpush.msra.mxu0 %v4792_v5 }
 0x7d3   :  { %1465 = vmatpush.msra.mxu1 %v6210_v14 }
 0x7d4   :  { %1404 = vmatpush.msra.mxu0 %v4794_v6 }
 0x7d6   :  { %1406 = vmatpush.msra.mxu0 %v4802_v9 }
 0x7d8   :  { %1408 = vmatpush.msra.mxu0 %v4804_v10 }
 0x7da   :  { %1410 = vmatpush.msra.mxu0 %v4879_v32 }
 0x834   :  { %v822_v36 = vpop.f32.mrf.mxu1 }
 0x83c   :  { %v771_v26 = vpop.f32.mrf.mxu0  ;;  %v856_v55 = vpop.f32.mrf.mxu2 }
 0x83d   :  { %v823_v15 = vadd.f32 %v822_v36, %v771_v26  ;;  %v951_v35 = vpop.f32.mrf.mxu1 }
 0x83e   :  { %v885_v33 = vpop.f32.mrf.mxu3 }
 0x83f   :  { %v857_v21 = vadd.f32 %v856_v55, %v823_v15 }
 0x841   :  { %v886_v43 = vadd.f32 %v885_v33, %v857_v21 }
 0x844   :  { %v924_v34 = vpop.f32.mrf.mxu0 }
 0x845   :  { %v925_v39 = vadd.f32 %v924_v34, %v886_v43 }
 0x847   :  { %v952_v8 = vadd.f32 %v951_v35, %v925_v39 }
 0x849   :  { %v954_v49 = vadd.f32 %v4527_v20, %v952_v8  ;;  %v6211_v8 = vld [vmem:[#allocation10_spill] sm:$0xff] }
 0x84b   :  { %4587 = vtanh.f32 %v954_v49  ;;  %v4528_v50 = vmul.f32 -1.442695, %v954_v49 }
 0x84d   :  { %4589 = vpow2.f32 %v4528_v50 }
 0x851   :  { %v4588_v54 = vpop.eup %4587 }
 0x852   :  { %977 = vrot.lane.b32.xlu2 %v4588_v54, %s4725_s29 }
 0x853   :  { %v4590_v44 = vpop.eup %4589 }
 0x854   :  { %v958_v37 = vadd.f32 1.0, %v4590_v44 }
 0x856   :  { %4591 = vrcp.f32 %v958_v37  ;;  %v970_v21 = vand.u32 2147483648, %v958_v37  ;;  %vm964_vm2 = vweird.f32 %v958_v37  ;;  %v968_v33 = vand.u32 2147483647, %v958_v37 }
 0x858   :  { %v971_v34 = vor.u32 1.1754944e-38, %v970_v21  ;;  %vm969_vm4 = vcmp.eq.f32.partialorder %v968_v33, 8.507059e+37 }
 0x85c   :  { %v4592_v41 = vpop.eup %4591 }
 0x85d   :  { %v960_v36 = vmul.f32 %v4592_v41, %v958_v37  ;;  %vm965_vm15 = vweird.f32 %v4592_v41 }
 0x85e   :  { %vm966_vm3 = vmor %vm964_vm2, %vm965_vm15 }
 0x85f   :  { %v961_v26 = vsub.f32 1.0, %v960_v36 }
 0x861   :  { %v962_v15 = vmul.f32 %v4592_v41, %v961_v26 }
 0x863   :  { %v963_v55 = vadd.f32 %v4592_v41, %v962_v15 }
 0x865   :  { %v967_v43 = vsel %vm966_vm3, %v4592_v41, %v963_v55 }
 0x866   :  { %v972_v35 = vsel %vm969_vm4, %v971_v34, %v967_v43 }
 0x867   :  { %v975_v49 = vmul.f32 %v972_v35, %v6211_v8  ;;  %v6214_v8 = vld [vmem:[#allocation3_spill] sm:$0xff] }
 0x8ac   :  { %v978_v39 = vpop.permute.xlu2 %977 }
 0x8ad   :  { %v980_v20 = vmul.f32 %v978_v39, %v972_v35 }
 0x8af   :  { %982 = vrot.lane.b32.xlu1 %v980_v20, %s4724_s25  ;;  %v6213_v20 = vld [vmem:[#allocation22_spill] sm:$0xff] }
 0x921   :  { %v983_v54 = vpop.permute.xlu1 %982 }
 0x922   :  { %v5279_v50 = vadd.f32 %v983_v54, %v975_v49  ;;  %v6215_v49 = vld [vmem:[#allocation8_spill] sm:$0xff] }
 0x923   :  { %v6216_v54 = vld [vmem:[#allocation24_spill] sm:$0xff] }
 0x924   :  { %4593 = vtanh.f32 %v5279_v50 }
 0x92a   :  { %v4594_v44 = vpop.eup %4593 }
 0x92b   :  { %988 = vrot.lane.b32.xlu2 %v4594_v44, %s4725_s29  ;;  %v6217_v44 = vld [vmem:[#allocation7_spill] sm:$0xff] }
 0x933   :  { %996 = vrot.lane.b32.xlu2 %v5176_v40, %s4725_s29 }
 0x985   :  { %v989_v37 = vpop.permute.xlu2 %988 }
 0x986   :  { %v5285_v41 = vmul.f32 %v989_v37, %v972_v35  ;;  %v6212_v35 = vld [vmem:[#allocation2_spill] sm:$0xff] }
 0x987   :  { %v6218_v37 = vld [vmem:[#allocation26_spill] sm:$0xff] }
 0x988   :  { %993 = vrot.lane.b32.xlu1 %v5285_v41, %s4724_s25 }
 0x98d   :  { %v997_v36 = vpop.permute.xlu2 %996 }
 0x9fa   :  { %v994_v26 = vpop.permute.xlu1 %993 }
 0x9fb   :  { %v999_v15 = vsel %vm339_vm6, %v994_v26, %v997_v36  ;;  %v6219_v36 = vld [vmem:[#allocation28_spill] sm:$0xff]  ;;  %v6220_v26 = vld [vmem:[#allocation29_spill] sm:$0xff] }
 0x9fc   :  { %v1001_v55 = vsel %vm344_vm7, %v999_v15, 0  ;;  %v6221_v15 = vld [vmem:[#allocation30_spill] sm:$0xff] }
 0x9fd   :  { %v1027_v21 = vand.u32 4294901760, %v1001_v55 }
 0x9ff   :  { %v1028_v33 = vsub.f32 %v1001_v55, %v1027_v21  ;;  %1093 = vmatmul.f32.vlgmr.msra.gmra.mxu3 %v1027_v21  ;;  %v6222_v55 = vld [vmem:[#allocation31_spill] sm:$0xff] }
 0xa00   :  { %1516 = vmatpush.msra.mxu3 %v4790_v4 }
 0xa01   :  { %1131 = vmatmul.f32.vlgmr.msrb.gmra.mxu0 %v1028_v33  ;;  %v1029_v43 = vand.u32 4294901760, %v1028_v33 }
 0xa02   :  { %1518 = vmatpush.msra.mxu3 %v4792_v5  ;;  %1547 = vmatpush.msrb.mxu0 %v4824_v16 }
 0xa03   :  { %1162 = vmatmul.f32.vlgmr.msrb.gmra.mxu1 %v1029_v43  ;;  %v1030_v34 = vsub.f32 %v1028_v33, %v1029_v43  ;;  %v6223_v43 = vld [vmem:[#allocation32_spill] sm:$0xff] }
 0xa04   :  { %1520 = vmatpush.msra.mxu3 %v4794_v6  ;;  %1584 = vmatpush.msrb.mxu1 %v4790_v4 }
 0xa05   :  { %v1031_v39 = vand.u32 4294901760, %v1030_v34  ;;  %1551 = vmatpush.msrb.mxu0 %v4827_v17 }
 0xa06   :  { %1522 = vmatpush.msra.mxu3 %v4802_v9  ;;  %1586 = vmatpush.msrb.mxu1 %v4792_v5 }
 0xa07   :  { %1032 = vmatmul.f32.vlgmr.msra.gmra.mxu2 %v1031_v39  ;;  %1236 = vmatmul.f32.vlgmr.msrb.gmra.mxu3 %v1027_v21 }
 0xa08   :  { %1483 = vmatpush.msra.mxu2 %v4807_v11  ;;  %1524 = vmatpush.msra.mxu3 %v4804_v10 }
 0xa09   :  { %1588 = vmatpush.msrb.mxu1 %v4794_v6  ;;  %1555 = vmatpush.msrb.mxu0 %v4830_v18 }
 0xa0a   :  { %1486 = vmatpush.msra.mxu2 %v4810_v12  ;;  %1526 = vmatpush.msra.mxu3 %v4879_v32 }
 0xa0b   :  { %1590 = vmatpush.msrb.mxu1 %v4802_v9  ;;  %1559 = vmatpush.msrb.mxu0 %v4835_v19 }
 0xa0c   :  { %1489 = vmatpush.msra.mxu2 %v4813_v13  ;;  %1695 = vmatpush.msrb.mxu3 %v5026_v31 }
 0xa0d   :  { %1592 = vmatpush.msrb.mxu1 %v4804_v10  ;;  %1563 = vmatpush.msrb.mxu0 %v4846_v23 }
 0xa0e   :  { %1492 = vmatpush.msra.mxu2 %v6212_v35  ;;  %1701 = vmatpush.msrb.mxu3 %v6213_v20 }
 0xa0f   :  { %1207 = vmatmul.f32.vlgmr.msrb.gmra.mxu2 %v1027_v21  ;;  %1594 = vmatpush.msrb.mxu1 %v4879_v32 }
 0xa10   :  { %1495 = vmatpush.msra.mxu2 %v6214_v8  ;;  %1567 = vmatpush.msrb.mxu0 %v6215_v49 }
 0xa11   :  { %1707 = vmatpush.msrb.mxu3 %v6216_v54 }
 0xa12   :  { %1498 = vmatpush.msra.mxu2 %v6217_v44 }
 0xa13   :  { %1713 = vmatpush.msrb.mxu3 %v6218_v37 }
 0xa14   :  { %1658 = vmatpush.msrb.mxu2 %v4942_v45 }
 0xa15   :  { %1719 = vmatpush.msrb.mxu3 %v6219_v36 }
 0xa16   :  { %1660 = vmatpush.msrb.mxu2 %v4944_v46 }
 0xa17   :  { %1725 = vmatpush.msrb.mxu3 %v6220_v26 }
 0xa18   :  { %1662 = vmatpush.msrb.mxu2 %v4946_v47 }
 0xa19   :  { %1731 = vmatpush.msrb.mxu3 %v6221_v15 }
 0xa1a   :  { %1664 = vmatpush.msrb.mxu2 %v4957_v51 }
 0xa1b   :  { %1737 = vmatpush.msrb.mxu3 %v6222_v55 }
 0xa1c   :  { %1666 = vmatpush.msrb.mxu2 %v4959_v52 }
 0xa1e   :  { %1668 = vmatpush.msrb.mxu2 %v4961_v53 }
 0xa20   :  { %1670 = vmatpush.msrb.mxu2 %v4980_v59 }
 0xa22   :  { %1672 = vmatpush.msrb.mxu2 %v5002_v2 }
 0xa7e   :  { %v1132_v40 = vpop.f32.mrf.mxu0 }
 0xa80   :  { %v1163_v15 = vpop.f32.mrf.mxu1 }
 0xa82   :  { %v1094_v21 = vpop.f32.mrf.mxu3 }
 0xa8a   :  { %v1033_v33 = vpop.f32.mrf.mxu2  ;;  %v1237_v55 = vpop.f32.mrf.mxu3 }
 0xa8b   :  { %v1034_v34 = vadd.f32 %v6223_v43, %v1033_v33 }
 0xa8d   :  { %v1095_v39 = vadd.f32 %v1094_v21, %v1034_v34 }
 0xa8f   :  { %v1133_v26 = vadd.f32 %v1132_v40, %v1095_v39 }
 0xa91   :  { %v1164_v36 = vadd.f32 %v1163_v15, %v1133_v26 }
 0xa92   :  { %v1208_v37 = vpop.f32.mrf.mxu2 }
 0xa93   :  { %v1209_v54 = vadd.f32 %v1208_v37, %v1164_v36 }
 0xa95   :  { %v1238_v20 = vadd.f32 %v1237_v55, %v1209_v54 }
 0xa97   :  { %4595 = vtanh.f32 %v1238_v20  ;;  %v4529_v49 = vmul.f32 -1.442695, %v1238_v20 }
 0xa99   :  { %4597 = vpow2.f32 %v4529_v49  ;;  %v6224_v49 = vld [vmem:[#allocation33_spill] sm:$0xff] }
 0xa9d   :  { %v4596_v31 = vpop.eup %4595 }
 0xa9e   :  { %1262 = vrot.lane.b32.xlu1 %v4596_v31, %s4725_s29 }
 0xa9f   :  { %v4598_v44 = vpop.eup %4597 }
 0xaa0   :  { %v1243_v23 = vadd.f32 1.0, %v4598_v44 }
 0xaa2   :  { %4599 = vrcp.f32 %v1243_v23  ;;  %v1255_v26 = vand.u32 2147483648, %v1243_v23  ;;  %vm1249_vm8 = vweird.f32 %v1243_v23  ;;  %v1253_v37 = vand.u32 2147483647, %v1243_v23 }
 0xaa4   :  { %v1256_v36 = vor.u32 1.1754944e-38, %v1255_v26  ;;  %vm1254_vm10 = vcmp.eq.f32.partialorder %v1253_v37, 8.507059e+37  ;;  %v6227_v26 = vld [vmem:[#allocation36_spill] sm:$0xff] }
 0xaa8   :  { %v4600_v19 = vpop.eup %4599 }
 0xaa9   :  { %v1245_v33 = vmul.f32 %v4600_v19, %v1243_v23  ;;  %vm1250_vm5 = vweird.f32 %v4600_v19 }
 0xaaa   :  { %vm1251_vm9 = vmor %vm1249_vm8, %vm1250_vm5 }
 0xaab   :  { %v1246_v21 = vsub.f32 1.0, %v1245_v33 }
 0xaad   :  { %v1247_v43 = vmul.f32 %v4600_v19, %v1246_v21 }
 0xaaf   :  { %v1248_v40 = vadd.f32 %v4600_v19, %v1247_v43 }
 0xab1   :  { %v1252_v54 = vsel %vm1251_vm9, %v4600_v19, %v1248_v40 }
 0xab2   :  { %v1257_v31 = vsel %vm1254_vm10, %v1256_v36, %v1252_v54 }
 0xab3   :  { %v1260_v44 = vmul.f32 %v1257_v31, %v6224_v49 }
 0xb10   :  { %v1263_v15 = vpop.permute.xlu1 %1262 }
 0xb11   :  { %v1265_v20 = vmul.f32 %v1263_v15, %v1257_v31  ;;  %v6228_v15 = vld [vmem:[#allocation35_spill] sm:$0xff] }
 0xb13   :  { %1267 = vrot.lane.b32.xlu2 %v1265_v20, %s4724_s25 }
 0xb6d   :  { %v1268_v55 = vpop.permute.xlu2 %1267 }
 0xb6e   :  { %v5335_v34 = vadd.f32 %v1268_v55, %v1260_v44  ;;  %v6229_v55 = vld [vmem:[#allocation37_spill] sm:$0xff] }
 0xb70   :  { %6225 = vst [vmem:[#allocation9_spill] sm:$0xff] %v5335_v34  ;;  %4601 = vtanh.f32 %v5335_v34 }
 0xb76   :  { %v4602_v39 = vpop.eup %4601 }
 0xb77   :  { %1273 = vrot.lane.b32.xlu0 %v4602_v39, %s4725_s29 }
 0xbe9   :  { %v1274_v23 = vpop.permute.xlu0 %1273 }
 0xbea   :  { %v5339_v33 = vmul.f32 %v1274_v23, %v1257_v31 }
 0xbec   :  { %6226 = vst [vmem:[#allocation10_spill] sm:$0xff] %v5339_v33  ;;  %v1279_v19 = vperm.slane %v5339_v33, 0  ;;  %v1278_v21 = vrot.slane %v5339_v33, 1 }
 0xbee   :  { %1281 = vrot.lane.b32.xlu1 %v1279_v19, %s4724_s25  ;;  %v1280_v43 = vperm.slane %v1278_v21, 0 }
 0xbf0   :  { %1283 = vrot.lane.b32.xlu2 %v1280_v43, %s4724_s25 }
 0xc4a   :  { %v1284_v40 = vpop.permute.xlu2 %1283 }
 0xc4b   :  { %v1288_v37 = vmul.f32 %v1284_v40, %v6227_v26 }
 0xc4d   :  { %v1292_v54 = vsel %vm339_vm6, %v1288_v37, 0.0 }
 0xc4e   :  { %1293 = vadd.xlane.f32.xlu1 %v1292_v54 }
 0xc60   :  { %v1282_v36 = vpop.permute.xlu1 %1281 }
 0xc61   :  { %v1287_v20 = vmul.f32 %v1282_v36, %v6228_v15 }
 0xc63   :  { %v1289_v31 = vsel %vm339_vm6, %v1287_v20, 0.0 }
 0xc64   :  { %1290 = vadd.xlane.f32.xlu0 %v1289_v31 }
 0xcc1   :  { %v1294_v49 = vpop.xlane.xlu1 %1293 }
 0xcc2   :  { %v1298_v39 = vperm.slane %v1294_v49, %v6229_v55 }
 0xcd7   :  { %v1291_v44 = vpop.xlane.xlu0 %1290 }
 0xcd8   :  { %v1297_v23 = vperm.slane %v1291_v44, %v6229_v55 }
 0xcda   :  { %v1299_v19 = vsel %vm650_vm12, %v1298_v39, %v1297_v23 }
 0xcdb   :  { %v1301_v21 = vsel %vm653_vm13, %v1299_v19, -inf }
 0xcdc   :  { %1302 = vmax.xlane.f32.xlu2 %v1301_v21 }
 0xd4f   :  { %v1303_v43 = vpop.xlane.xlu2 %1302 }
 0xd50   :  { %v1305_v40 = vperm.slane %v1303_v43, 0  ;;  %v1306_v26 = vperm.slane %v1303_v43, 1 }
 0xd52   :  { %v1309_v37 = vsub.f32 %v1291_v44, %v1305_v40  ;;  %v1310_v54 = vsub.f32 %v1294_v49, %v1306_v26 }
 0xd54   :  { %v1311_v36 = vmul.f32 1.442695, %v1309_v37  ;;  %v1313_v15 = vmul.f32 1.442695, %v1310_v54 }
 0xd56   :  { %4603 = vpow2.f32 %v1311_v36 }
 0xd57   :  { %4605 = vpow2.f32 %v1313_v15  ;;  %v6230_v15 = vld [vmem:[#allocation39_spill] sm:$0xff] }
 0xd5c   :  { %v4604_v20 = vpop.eup %4603 }
 0xd5d   :  { %v4606_v31 = vpop.eup %4605  ;;  %1318 = vperm.xlu0 %4558, %v4604_v20  }
 0xd5e   :  { %1321 = vperm.xlu1 %4557, %v4606_v31  }
 0xd66   :  { %1382 = vrot.lane.b32.xlu1 %v5285_v41, %s4727_s13 }
 0xdcf   :  { %v1319_v39 = vpop.permute.xlu0 %1318 }
 0xdd0   :  { %v1322_v23 = vpop.permute.xlu1 %1321  ;;  %v1323_v19 = vperm.slane %v1319_v39, %v6229_v55 }
 0xdd1   :  { %v1324_v21 = vperm.slane %v1322_v23, %v6229_v55 }
 0xdd3   :  { %v1325_v44 = vsel %vm650_vm12, %v1324_v21, %v1323_v19  ;;  %v6231_v21 = vld [vmem:[#allocation38_spill] sm:$0xff] }
 0xdd4   :  { %v1327_v49 = vsel %vm653_vm13, %v1325_v44, 0.0 }
 0xdd5   :  { %1328 = vadd.xlane.f32.xlu2 %v1327_v49 }
 0xe48   :  { %v1329_v43 = vpop.xlane.xlu2 %1328 }
 0xe49   :  { %4607 = vrcp.f32 %v1329_v43 }
 0xe4f   :  { %v4608_v40 = vpop.eup %4607 }
 0xe50   :  { %v1333_v26 = vperm.slane %v4608_v40, 1  ;;  %v1332_v37 = vperm.slane %v4608_v40, 0 }
 0xe52   :  { %v1337_v54 = vmul.f32 %v4606_v31, %v1333_v26  ;;  %v1336_v36 = vmul.f32 %v4604_v20, %v1332_v37 }
 0xe54   :  { %1345 = vperm.xlu0 %4558, %v1337_v54   ;;  %1340 = vperm.xlu2 %4556, %v1336_v36  }
 0xeae   :  { %v1341_v41 = vpop.permute.xlu2 %1340 }
 0xeaf   :  { %v1348_v34 = vmul.f32 %v1341_v41, %v6230_v15  ;;  %v1383_v41 = vpop.permute.xlu1 %1382 }
 0xeb1   :  { %v1350_v39 = vsel %vm72_vm0, %v1348_v34, 0.0 }
 0xeb2   :  { %v1351_v23 = vrot.slane %v1350_v39, 4 }
 0xeb4   :  { %v1352_v55 = vadd.f32 %v1351_v23, %v1350_v39 }
 0xeb6   :  { %v1353_v49 = vrot.slane %v1352_v55, 2 }
 0xeb8   :  { %v1354_v18 = vadd.f32 %v1353_v49, %v1352_v55 }
 0xeba   :  { %v1355_v20 = vrot.slane %v1354_v18, 1 }
 0xebc   :  { %v1356_v54 = vadd.f32 %v1355_v20, %v1354_v18 }
 0xec6   :  { %v1346_v19 = vpop.permute.xlu0 %1345 }
 0xec7   :  { %v1349_v44 = vmul.f32 %v1346_v19, %v6231_v21 }
 0xec9   :  { %v1357_v43 = vsel %vm72_vm0, %v1349_v44, 0.0 }
 0xeca   :  { %v1358_v8 = vrot.slane %v1357_v43, 4 }
 0xecc   :  { %v1359_v40 = vadd.f32 %v1358_v8, %v1357_v43 }
 0xece   :  { %v1360_v31 = vrot.slane %v1359_v40, 2 }
 0xed0   :  { %v1361_v26 = vadd.f32 %v1360_v31, %v1359_v40 }
 0xed2   :  { %v1362_v37 = vrot.slane %v1361_v26, 1 }
 0xed4   :  { %v1363_v36 = vadd.f32 %v1362_v37, %v1361_v26 }
 0xed6   :  { %v1380_v34 = vsel %vm650_vm12, %v1363_v36, %v1356_v54  ;;  %v4531_v36 = vld [vmem:[%s6071_s0 + $0x6] sm:$0x3] }
 0xed7   :  { %v1385_v15 = vsel %vm72_vm0, %v1380_v34, %v1383_v41 }
 0xed8   :  { %v1387_v39 = vsel %vm74_vm1, %v1385_v15, 0 }
 0xed9   :  { %v1411_v23 = vand.u32 4294901760, %v1387_v39 }
 0xedb   :  { %1467 = vmatmul.f32.vlgmr.msra.gmra.mxu1 %v1411_v23  ;;  %v1412_v19 = vsub.f32 %v1387_v39, %v1411_v23 }
 0xedc   :  { %1790 = vmatpush.msra.mxu1 %v4942_v45 }
 0xedd   :  { %1501 = vmatmul.f32.vlgmr.msra.gmra.mxu2 %v1412_v19  ;;  %v1413_v8 = vand.u32 4294901760, %v1412_v19 }
 0xede   :  { %1792 = vmatpush.msra.mxu1 %v4944_v46  ;;  %1823 = vmatpush.msra.mxu2 %v4992_v63 }
 0xedf   :  { %1530 = vmatmul.f32.vlgmr.msra.gmra.mxu3 %v1413_v8  ;;  %v1414_v18 = vsub.f32 %v1412_v19, %v1413_v8 }
 0xee0   :  { %1794 = vmatpush.msra.mxu1 %v4946_v47  ;;  %1866 = vmatpush.msra.mxu3 %v4942_v45 }
 0xee1   :  { %v1415_v55 = vand.u32 4294901760, %v1414_v18  ;;  %1827 = vmatpush.msra.mxu2 %v4995_v0 }
 0xee2   :  { %1796 = vmatpush.msra.mxu1 %v4957_v51  ;;  %1868 = vmatpush.msra.mxu3 %v4944_v46 }
 0xee3   :  { %1416 = vmatmul.f32.vlgmr.msra.gmra.mxu0 %v1415_v55  ;;  %1596 = vmatmul.f32.vlgmr.msrb.gmra.mxu1 %v1411_v23 }
 0xee4   :  { %1753 = vmatpush.msra.mxu0 %v4970_v56  ;;  %1798 = vmatpush.msra.mxu1 %v4959_v52 }
 0xee5   :  { %1870 = vmatpush.msra.mxu3 %v4946_v47  ;;  %1831 = vmatpush.msra.mxu2 %v4998_v1 }
 0xee6   :  { %1756 = vmatpush.msra.mxu0 %v4973_v57  ;;  %1800 = vmatpush.msra.mxu1 %v4961_v53 }
 0xee7   :  { %1872 = vmatpush.msra.mxu3 %v4957_v51  ;;  %1835 = vmatpush.msra.mxu2 %v5005_v3 }
 0xee8   :  { %1759 = vmatpush.msra.mxu0 %v4976_v58  ;;  %1802 = vmatpush.msra.mxu1 %v4980_v59 }
 0xee9   :  { %1874 = vmatpush.msra.mxu3 %v4959_v52  ;;  %1839 = vmatpush.msra.mxu2 %v5018_v22 }
 0xeea   :  { %1762 = vmatpush.msra.mxu0 %v4983_v60  ;;  %1804 = vmatpush.msra.mxu1 %v5002_v2 }
 0xeeb   :  { %1569 = vmatmul.f32.vlgmr.msrb.gmra.mxu0 %v1411_v23  ;;  %1876 = vmatpush.msra.mxu3 %v4961_v53 }
 0xeec   :  { %1765 = vmatpush.msra.mxu0 %v4986_v61  ;;  %1843 = vmatpush.msra.mxu2 %v5023_v28 }
 0xeed   :  { %1878 = vmatpush.msra.mxu3 %v4980_v59  ;;  %2081 = vmatpush.msrb.mxu1 %v4850_v24 }
 0xeee   :  { %1768 = vmatpush.msra.mxu0 %v4989_v62  ;;  %1847 = vmatpush.msra.mxu2 %v5044_v42 }
 0xeef   :  { %1880 = vmatpush.msra.mxu3 %v5002_v2  ;;  %2087 = vmatpush.msrb.mxu1 %v4852_v25 }
 0xef0   :  { %1771 = vmatpush.msra.mxu0 %v5008_v7  ;;  %1851 = vmatpush.msra.mxu2 %v5055_v48 }
 0xef1   :  { %2093 = vmatpush.msrb.mxu1 %v4860_v27 }
 0xef2   :  { %1774 = vmatpush.msra.mxu0 %v5035_v38 }
 0xef3   :  { %2099 = vmatpush.msrb.mxu1 %v4868_v29 }
 0xef4   :  { %2046 = vmatpush.msrb.mxu0 %v4790_v4 }
 0xef5   :  { %2105 = vmatpush.msrb.mxu1 %v4872_v30 }
 0xef6   :  { %2048 = vmatpush.msrb.mxu0 %v4792_v5 }
 0xef7   :  { %2111 = vmatpush.msrb.mxu1 %v6210_v14 }
 0xef8   :  { %2050 = vmatpush.msrb.mxu0 %v4794_v6 }
 0xefa   :  { %2052 = vmatpush.msrb.mxu0 %v4802_v9 }
 0xefc   :  { %2054 = vmatpush.msrb.mxu0 %v4804_v10 }
 0xefe   :  { %2056 = vmatpush.msrb.mxu0 %v4879_v32 }
 0xf58   :  { %v1468_v21 = vpop.f32.mrf.mxu1 }
 0xf60   :  { %v1417_v44 = vpop.f32.mrf.mxu0  ;;  %v1502_v43 = vpop.f32.mrf.mxu2 }
 0xf61   :  { %v1469_v49 = vadd.f32 %v1468_v21, %v1417_v44  ;;  %v1597_v54 = vpop.f32.mrf.mxu1 }
 0xf62   :  { %v1531_v31 = vpop.f32.mrf.mxu3 }
 0xf63   :  { %v1503_v40 = vadd.f32 %v1502_v43, %v1469_v49 }
 0xf65   :  { %v1532_v20 = vadd.f32 %v1531_v31, %v1503_v40 }
 0xf68   :  { %v1570_v26 = vpop.f32.mrf.mxu0 }
 0xf69   :  { %v1571_v37 = vadd.f32 %v1570_v26, %v1532_v20 }
 0xf6b   :  { %v1598_v41 = vadd.f32 %v1597_v54, %v1571_v37 }
 0xf6d   :  { %v1600_v34 = vadd.f32 %v4531_v36, %v1598_v41 }
 0xf6f   :  { %4609 = vtanh.f32 %v1600_v34  ;;  %v4532_v39 = vmul.f32 -1.442695, %v1600_v34 }
 0xf71   :  { %4611 = vpow2.f32 %v4532_v39 }
 0xf75   :  { %v4610_v15 = vpop.eup %4609 }
 0xf76   :  { %1623 = vrot.lane.b32.xlu0 %v4610_v15, %s4725_s29 }
 0xf77   :  { %v4612_v23 = vpop.eup %4611 }
 0xf78   :  { %v1604_v19 = vadd.f32 1.0, %v4612_v23 }
 0xf7a   :  { %4613 = vrcp.f32 %v1604_v19  ;;  %v1616_v49 = vand.u32 2147483648, %v1604_v19  ;;  %vm1610_vm15 = vweird.f32 %v1604_v19  ;;  %v1614_v43 = vand.u32 2147483647, %v1604_v19 }
 0xf7c   :  { %v1617_v31 = vor.u32 1.1754944e-38, %v1616_v49  ;;  %vm1615_vm3 = vcmp.eq.f32.partialorder %v1614_v43, 8.507059e+37  ;;  %v6232_v43 = vld [vmem:[#allocation4_spill] sm:$0xff] }
 0xf80   :  { %v4614_v8 = vpop.eup %4613 }
 0xf81   :  { %v1606_v18 = vmul.f32 %v4614_v8, %v1604_v19  ;;  %vm1611_vm11 = vweird.f32 %v4614_v8 }
 0xf82   :  { %vm1612_vm2 = vmor %vm1610_vm15, %vm1611_vm11 }
 0xf83   :  { %v1607_v55 = vsub.f32 1.0, %v1606_v18 }
 0xf85   :  { %v1608_v21 = vmul.f32 %v4614_v8, %v1607_v55 }
 0xf87   :  { %v1609_v44 = vadd.f32 %v4614_v8, %v1608_v21 }
 0xf89   :  { %v1613_v40 = vsel %vm1612_vm2, %v4614_v8, %v1609_v44 }
 0xf8a   :  { %v1618_v26 = vsel %vm1615_vm3, %v1617_v31, %v1613_v40  ;;  %v6233_v40 = vld [vmem:[#allocation3_spill] sm:$0xff]  ;;  %v6234_v31 = vld [vmem:[#allocation5_spill] sm:$0xff] }
 0xf8b   :  { %v1621_v54 = vmul.f32 %v1618_v26, %v5279_v50 }
 0xfe8   :  { %v1624_v20 = vpop.permute.xlu0 %1623 }
 0xfe9   :  { %v1626_v37 = vmul.f32 %v1624_v20, %v1618_v26  ;;  %v6235_v20 = vld [vmem:[#allocation6_spill] sm:$0xff] }
 0xfeb   :  { %1628 = vrot.lane.b32.xlu1 %v1626_v37, %s4724_s25  ;;  %v6237_v37 = vld [vmem:[#allocation8_spill] sm:$0xff] }
 0xff3   :  { %1642 = vrot.lane.b32.xlu1 %v5339_v33, %s4725_s29 }
0x105d   :  { %v1629_v36 = vpop.permute.xlu1 %1628 }
0x105e   :  { %v5418_v41 = vadd.f32 %v1629_v36, %v1621_v54 }
0x1060   :  { %4615 = vtanh.f32 %v5418_v41 }
0x1065   :  { %v1643_v23 = vpop.permute.xlu1 %1642 }
0x1066   :  { %v4616_v34 = vpop.eup %4615 }
0x1067   :  { %1634 = vrot.lane.b32.xlu0 %v4616_v34, %s4725_s29  ;;  %v5471_v34 = vld [vmem:[%s6073_s5] ss:$0 sm:$0xff] }
0x1068   :  { %6238 = vst [vmem:[#allocation2_spill] sm:$0xff] %v5471_v34 }
0x10d9   :  { %v1635_v15 = vpop.permute.xlu0 %1634 }
0x10da   :  { %v5422_v39 = vmul.f32 %v1635_v15, %v1618_v26  ;;  %v6236_v26 = vld [vmem:[#allocation7_spill] sm:$0xff] }
0x10dc   :  { %1639 = vrot.lane.b32.xlu2 %v5422_v39, %s4724_s25 }
0x1136   :  { %v1640_v19 = vpop.permute.xlu2 %1639 }
0x1137   :  { %v1645_v8 = vsel %vm339_vm6, %v1640_v19, %v1643_v23 }
0x1138   :  { %v1647_v50 = vsel %vm344_vm7, %v1645_v8, 0 }
0x1139   :  { %v1673_v18 = vand.u32 4294901760, %v1647_v50 }
0x113b   :  { %v1674_v55 = vsub.f32 %v1647_v50, %v1673_v18  ;;  %1739 = vmatmul.f32.vlgmr.msrb.gmra.mxu3 %v1673_v18 }
0x113c   :  { %2230 = vmatpush.msrb.mxu3 %v4790_v4 }
0x113d   :  { %1777 = vmatmul.f32.vlgmr.msra.gmra.mxu0 %v1674_v55  ;;  %v1675_v21 = vand.u32 4294901760, %v1674_v55 }
0x113e   :  { %2232 = vmatpush.msrb.mxu3 %v4792_v5  ;;  %2129 = vmatpush.msra.mxu0 %v4807_v11 }
0x113f   :  { %1808 = vmatmul.f32.vlgmr.msra.gmra.mxu1 %v1675_v21  ;;  %v1676_v44 = vsub.f32 %v1674_v55, %v1675_v21 }
0x1140   :  { %2234 = vmatpush.msrb.mxu3 %v4794_v6  ;;  %2162 = vmatpush.msra.mxu1 %v4790_v4 }
0x1141   :  { %v1677_v49 = vand.u32 4294901760, %v1676_v44  ;;  %2132 = vmatpush.msra.mxu0 %v4810_v12 }
0x1142   :  { %2236 = vmatpush.msrb.mxu3 %v4802_v9  ;;  %2164 = vmatpush.msra.mxu1 %v4792_v5 }
0x1143   :  { %1678 = vmatmul.f32.vlgmr.msrb.gmra.mxu2 %v1677_v49  ;;  %1882 = vmatmul.f32.vlgmr.msra.gmra.mxu3 %v1673_v18 }
0x1144   :  { %2193 = vmatpush.msrb.mxu2 %v4824_v16  ;;  %2238 = vmatpush.msrb.mxu3 %v4804_v10 }
0x1145   :  { %2166 = vmatpush.msra.mxu1 %v4794_v6  ;;  %2135 = vmatpush.msra.mxu0 %v4813_v13 }
0x1146   :  { %2197 = vmatpush.msrb.mxu2 %v4827_v17  ;;  %2240 = vmatpush.msrb.mxu3 %v4879_v32 }
0x1147   :  { %2168 = vmatpush.msra.mxu1 %v4802_v9  ;;  %2138 = vmatpush.msra.mxu0 %v6212_v35 }
0x1148   :  { %2201 = vmatpush.msrb.mxu2 %v6232_v43  ;;  %2436 = vmatpush.msra.mxu3 %v4942_v45 }
0x1149   :  { %2170 = vmatpush.msra.mxu1 %v4804_v10  ;;  %2141 = vmatpush.msra.mxu0 %v6233_v40 }
0x114a   :  { %2205 = vmatpush.msrb.mxu2 %v6234_v31  ;;  %2438 = vmatpush.msra.mxu3 %v4944_v46 }
0x114b   :  { %1853 = vmatmul.f32.vlgmr.msra.gmra.mxu2 %v1673_v18  ;;  %2172 = vmatpush.msra.mxu1 %v4879_v32 }
0x114c   :  { %2209 = vmatpush.msrb.mxu2 %v6235_v20  ;;  %2144 = vmatpush.msra.mxu0 %v6236_v26 }
0x114d   :  { %2440 = vmatpush.msra.mxu3 %v4946_v47 }
0x114e   :  { %2213 = vmatpush.msrb.mxu2 %v6237_v37 }
0x114f   :  { %2442 = vmatpush.msra.mxu3 %v4957_v51 }
0x1150   :  { %2399 = vmatpush.msra.mxu2 %v4970_v56 }
0x1151   :  { %2444 = vmatpush.msra.mxu3 %v4959_v52 }
0x1152   :  { %2402 = vmatpush.msra.mxu2 %v4973_v57 }
0x1153   :  { %2446 = vmatpush.msra.mxu3 %v4961_v53 }
0x1154   :  { %2405 = vmatpush.msra.mxu2 %v4976_v58 }
0x1155   :  { %2448 = vmatpush.msra.mxu3 %v4980_v59 }
0x1156   :  { %2408 = vmatpush.msra.mxu2 %v4983_v60 }
0x1157   :  { %2450 = vmatpush.msra.mxu3 %v5002_v2 }
0x1158   :  { %2411 = vmatpush.msra.mxu2 %v4986_v61 }
0x115a   :  { %2414 = vmatpush.msra.mxu2 %v4989_v62 }
0x115c   :  { %2417 = vmatpush.msra.mxu2 %v5008_v7 }
0x115e   :  { %2420 = vmatpush.msra.mxu2 %v5035_v38 }
0x11ba   :  { %v1778_v19 = vpop.f32.mrf.mxu0 }
0x11bc   :  { %v1809_v50 = vpop.f32.mrf.mxu1 }
0x11be   :  { %v1740_v54 = vpop.f32.mrf.mxu3 }
0x11c6   :  { %v1679_v36 = vpop.f32.mrf.mxu2  ;;  %v1883_v44 = vpop.f32.mrf.mxu3 }
0x11c7   :  { %v1680_v15 = vadd.f32 %v5471_v34, %v1679_v36 }
0x11c9   :  { %v1741_v23 = vadd.f32 %v1740_v54, %v1680_v15 }
0x11cb   :  { %v1779_v8 = vadd.f32 %v1778_v19, %v1741_v23 }
0x11cd   :  { %v1810_v18 = vadd.f32 %v1809_v50, %v1779_v8 }
0x11ce   :  { %v1854_v55 = vpop.f32.mrf.mxu2 }
0x11cf   :  { %v1855_v21 = vadd.f32 %v1854_v55, %v1810_v18 }
0x11d1   :  { %v1884_v49 = vadd.f32 %v1883_v44, %v1855_v21 }
0x11d3   :  { %4617 = vtanh.f32 %v1884_v49  ;;  %v4533_v38 = vmul.f32 -1.442695, %v1884_v49 }
0x11d5   :  { %4619 = vpow2.f32 %v4533_v38 }
0x11d9   :  { %v4618_v33 = vpop.eup %4617 }
0x11da   :  { %1908 = vrot.lane.b32.xlu0 %v4618_v33, %s4725_s29 }
0x11db   :  { %v4620_v7 = vpop.eup %4619 }
0x11dc   :  { %v1889_v62 = vadd.f32 1.0, %v4620_v7  ;;  %v6239_v7 = vld [vmem:[#allocation9_spill] sm:$0xff] }
0x11de   :  { %4621 = vrcp.f32 %v1889_v62  ;;  %v1901_v19 = vand.u32 2147483648, %v1889_v62  ;;  %vm1895_vm5 = vweird.f32 %v1889_v62  ;;  %v1899_v8 = vand.u32 2147483647, %v1889_v62 }
0x11e0   :  { %v1902_v18 = vor.u32 1.1754944e-38, %v1901_v19  ;;  %vm1900_vm9 = vcmp.eq.f32.partialorder %v1899_v8, 8.507059e+37  ;;  %v5490_v8 = vld [vmem:[%s6074_s1 + $0x8] sm:$0xff] }
0x11e1   :  { %6242 = vst [vmem:[#allocation36_spill] sm:$0xff] %v5490_v8 }
0x11e4   :  { %v4622_v61 = vpop.eup %4621 }
0x11e5   :  { %v1891_v36 = vmul.f32 %v4622_v61, %v1889_v62  ;;  %vm1896_vm4 = vweird.f32 %v4622_v61 }
0x11e6   :  { %vm1897_vm8 = vmor %vm1895_vm5, %vm1896_vm4 }
0x11e7   :  { %v1892_v54 = vsub.f32 1.0, %v1891_v36 }
0x11e9   :  { %v1893_v15 = vmul.f32 %v4622_v61, %v1892_v54 }
0x11eb   :  { %v1894_v23 = vadd.f32 %v4622_v61, %v1893_v15 }
0x11ed   :  { %v1898_v50 = vsel %vm1897_vm8, %v4622_v61, %v1894_v23 }
0x11ee   :  { %v1903_v33 = vsel %vm1900_vm9, %v1902_v18, %v1898_v50 }
0x11ef   :  { %v1906_v38 = vmul.f32 %v1903_v33, %v6239_v7 }
0x124c   :  { %v1909_v55 = vpop.permute.xlu0 %1908 }
0x124d   :  { %v1911_v21 = vmul.f32 %v1909_v55, %v1903_v33 }
0x124f   :  { %1913 = vrot.lane.b32.xlu2 %v1911_v21, %s4724_s25 }
0x12a9   :  { %v1914_v44 = vpop.permute.xlu2 %1913 }
0x12aa   :  { %v5477_v49 = vadd.f32 %v1914_v44, %v1906_v38 }
0x12ac   :  { %6240 = vst [vmem:[#allocation32_spill] sm:$0xff] %v5477_v49  ;;  %4623 = vtanh.f32 %v5477_v49 }
0x12b2   :  { %v4624_v36 = vpop.eup %4623 }
0x12b3   :  { %1919 = vrot.lane.b32.xlu1 %v4624_v36, %s4725_s29  ;;  %v6244_v36 = vld [vmem:[#allocation37_spill] sm:$0xff] }
0x1325   :  { %v1920_v62 = vpop.permute.xlu1 %1919 }
0x1326   :  { %v5481_v54 = vmul.f32 %v1920_v62, %v1903_v33  ;;  %v5497_v33 = vld [vmem:[%s6074_s1] sm:$0xff] }
0x1327   :  { %6243 = vst [vmem:[#allocation35_spill] sm:$0xff] %v5497_v33 }
0x1328   :  { %6241 = vst [vmem:[#allocation33_spill] sm:$0xff] %v5481_v54  ;;  %v1925_v61 = vperm.slane %v5481_v54, 0  ;;  %v1924_v15 = vrot.slane %v5481_v54, 1 }
0x132a   :  { %1927 = vrot.lane.b32.xlu0 %v1925_v61, %s4724_s25  ;;  %v1926_v23 = vperm.slane %v1924_v15, 0 }
0x132c   :  { %1929 = vrot.lane.b32.xlu2 %v1926_v23, %s4724_s25 }
0x1386   :  { %v1930_v19 = vpop.permute.xlu2 %1929 }
0x1387   :  { %v1934_v50 = vmul.f32 %v5490_v8, %v1930_v19 }
0x1389   :  { %v1938_v18 = vsel %vm339_vm6, %v1934_v50, 0.0 }
0x138a   :  { %1939 = vadd.xlane.f32.xlu0 %v1938_v18 }
0x139c   :  { %v1928_v55 = vpop.permute.xlu0 %1927 }
0x139d   :  { %v1933_v21 = vmul.f32 %v5497_v33, %v1928_v55 }
0x139f   :  { %v1935_v7 = vsel %vm339_vm6, %v1933_v21, 0.0 }
0x13a0   :  { %1936 = vadd.xlane.f32.xlu1 %v1935_v7 }
0x13fd   :  { %v1940_v38 = vpop.xlane.xlu0 %1939 }
0x13fe   :  { %v1944_v62 = vperm.slane %v1940_v38, %v6244_v36 }
0x1413   :  { %v1937_v44 = vpop.xlane.xlu1 %1936 }
0x1414   :  { %v1943_v61 = vperm.slane %v1937_v44, %v6244_v36 }
0x1416   :  { %v1945_v15 = vsel %vm650_vm12, %v1944_v62, %v1943_v61 }
0x1417   :  { %v1947_v23 = vsel %vm653_vm13, %v1945_v15, -inf }
0x1418   :  { %1948 = vmax.xlane.f32.xlu2 %v1947_v23 }
0x148b   :  { %v1949_v19 = vpop.xlane.xlu2 %1948 }
0x148c   :  { %v1951_v50 = vperm.slane %v1949_v19, 0  ;;  %v1952_v18 = vperm.slane %v1949_v19, 1 }
0x148e   :  { %v1955_v8 = vsub.f32 %v1937_v44, %v1951_v50  ;;  %v1956_v49 = vsub.f32 %v1940_v38, %v1952_v18 }
0x1490   :  { %v1957_v55 = vmul.f32 1.442695, %v1955_v8  ;;  %v1959_v33 = vmul.f32 1.442695, %v1956_v49 }
0x1492   :  { %4625 = vpow2.f32 %v1957_v55  ;;  %v5514_v55 = vld [vmem:[%s6076_s2] sm:$0xff] }
0x1493   :  { %4627 = vpow2.f32 %v1959_v33  ;;  %6245 = vst [vmem:[#allocation39_spill] sm:$0xff] %v5514_v55 }
0x1498   :  { %v4626_v21 = vpop.eup %4625 }
0x1499   :  { %v4628_v7 = vpop.eup %4627  ;;  %1964 = vperm.xlu1 %4557, %v4626_v21  }
0x149a   :  { %1967 = vperm.xlu0 %4558, %v4628_v7  }
0x14a1   :  { %2028 = vrot.lane.b32.xlu1 %v5422_v39, %s4727_s13 }
0x150b   :  { %v1965_v62 = vpop.permute.xlu1 %1964 }
0x150c   :  { %v1968_v61 = vpop.permute.xlu0 %1967  ;;  %v1969_v15 = vperm.slane %v1965_v62, %v6244_v36 }
0x150d   :  { %v1970_v23 = vperm.slane %v1968_v61, %v6244_v36 }
0x150f   :  { %v1971_v44 = vsel %vm650_vm12, %v1970_v23, %v1969_v15 }
0x1510   :  { %v1973_v8 = vsel %vm653_vm13, %v1971_v44, 0.0 }
0x1511   :  { %1974 = vadd.xlane.f32.xlu2 %v1973_v8 }
0x1584   :  { %v1975_v49 = vpop.xlane.xlu2 %1974 }
0x1585   :  { %4629 = vrcp.f32 %v1975_v49 }
0x158b   :  { %v4630_v33 = vpop.eup %4629 }
0x158c   :  { %v1979_v38 = vperm.slane %v4630_v33, 1  ;;  %v1978_v19 = vperm.slane %v4630_v33, 0 }
0x158e   :  { %v1983_v50 = vmul.f32 %v4628_v7, %v1979_v38  ;;  %v1982_v18 = vmul.f32 %v4626_v21, %v1978_v19  ;;  %v5521_v7 = vld [vmem:[%s6076_s2 + $0x8] sm:$0xff] }
0x158f   :  { %6246 = vst [vmem:[#allocation38_spill] sm:$0xff] %v5521_v7 }
0x1590   :  { %1991 = vperm.xlu0 %4558, %v1983_v50   ;;  %1986 = vperm.xlu2 %4556, %v1982_v18  }
0x15ea   :  { %v1987_v39 = vpop.permute.xlu2 %1986 }
0x15eb   :  { %v1994_v62 = vmul.f32 %v5514_v55, %v1987_v39 }
0x15ed   :  { %v1996_v61 = vsel %vm72_vm0, %v1994_v62, 0.0 }
0x15ee   :  { %v1997_v15 = vrot.slane %v1996_v61, 4 }
0x15f0   :  { %v1998_v23 = vadd.f32 %v1997_v15, %v1996_v61  ;;  %v2029_v15 = vpop.permute.xlu1 %2028 }
0x15f2   :  { %v1999_v8 = vrot.slane %v1998_v23, 2 }
0x15f4   :  { %v2000_v38 = vadd.f32 %v1999_v8, %v1998_v23  ;;  %v6247_v23 = vld [vmem:[#allocation21_spill] sm:$0xff]  ;;  %v6248_v8 = vld [vmem:[#allocation22_spill] sm:$0xff] }
0x15f6   :  { %v2001_v18 = vrot.slane %v2000_v38, 1 }
0x15f8   :  { %v2002_v55 = vadd.f32 %v2001_v18, %v2000_v38  ;;  %v6253_v38 = vld [vmem:[#allocation30_spill] sm:$0xff] }
0x1602   :  { %v1992_v44 = vpop.permute.xlu0 %1991 }
0x1603   :  { %v1995_v21 = vmul.f32 %v5521_v7, %v1992_v44 }
0x1605   :  { %v2003_v49 = vsel %vm72_vm0, %v1995_v21, 0.0 }
0x1606   :  { %v2004_v33 = vrot.slane %v2003_v49, 4 }
0x1608   :  { %v2005_v19 = vadd.f32 %v2004_v33, %v2003_v49  ;;  %v6252_v33 = vld [vmem:[#allocation29_spill] sm:$0xff] }
0x160a   :  { %v2006_v50 = vrot.slane %v2005_v19, 2 }
0x160c   :  { %v2007_v39 = vadd.f32 %v2006_v50, %v2005_v19  ;;  %v6254_v19 = vld [vmem:[#allocation31_spill] sm:$0xff] }
0x160e   :  { %v2008_v62 = vrot.slane %v2007_v39, 1 }
0x1610   :  { %v2009_v61 = vadd.f32 %v2008_v62, %v2007_v39 }
0x1612   :  { %v2026_v36 = vsel %vm650_vm12, %v2009_v61, %v2002_v55  ;;  %v6251_v55 = vld [vmem:[#allocation28_spill] sm:$0xff] }
0x1613   :  { %v2031_v34 = vsel %vm72_vm0, %v2026_v36, %v2029_v15  ;;  %v6250_v36 = vld [vmem:[#allocation26_spill] sm:$0xff] }
0x1614   :  { %v2033_v60 = vsel %vm74_vm1, %v2031_v34, 0  ;;  %v6249_v34 = vld [vmem:[#allocation24_spill] sm:$0xff] }
0x1615   :  { %v2057_v44 = vand.u32 4294901760, %v2033_v60 }
0x1617   :  { %v2058_v7 = vsub.f32 %v2033_v60, %v2057_v44  ;;  %2113 = vmatmul.f32.vlgmr.msrb.gmra.mxu1 %v2057_v44  ;;  %2215 = vmatmul.f32.vlgmr.msrb.gmra.mxu2 %v2057_v44 }
0x1618   :  { %2242 = vmatmul.f32.vlgmr.msrb.gmra.mxu3 %v2057_v44  ;;  %2341 = vmatpush.msrb.mxu1 %v6247_v23 }
0x1619   :  { %v2059_v21 = vand.u32 4294901760, %v2058_v7  ;;  %2727 = vmatpush.msrb.mxu3 %v4850_v24  ;;  %2692 = vmatpush.msrb.mxu2 %v4790_v4 }
0x161a   :  { %2347 = vmatpush.msrb.mxu1 %v6248_v8 }
0x161b   :  { %v2060_v49 = vsub.f32 %v2058_v7, %v2059_v21  ;;  %2733 = vmatpush.msrb.mxu3 %v4852_v25  ;;  %2694 = vmatpush.msrb.mxu2 %v4792_v5 }
0x161c   :  { %2353 = vmatpush.msrb.mxu1 %v6249_v34 }
0x161d   :  { %v2061_v60 = vand.u32 4294901760, %v2060_v49  ;;  %2739 = vmatpush.msrb.mxu3 %v4860_v27  ;;  %2696 = vmatpush.msrb.mxu2 %v4794_v6 }
0x161e   :  { %2359 = vmatpush.msrb.mxu1 %v6250_v36 }
0x161f   :  { %2062 = vmatmul.f32.vlgmr.msrb.gmra.mxu0 %v2061_v60  ;;  %2176 = vmatmul.f32.vlgmr.msra.gmra.mxu1 %v2059_v21  ;;  %v4535_v60 = vld [vmem:[%s6071_s0 + $0x8] sm:$0x3] }
0x1620   :  { %2304 = vmatpush.msrb.mxu0 %v4942_v45  ;;  %2365 = vmatpush.msrb.mxu1 %v6251_v55 }
0x1621   :  { %2745 = vmatpush.msrb.mxu3 %v4868_v29  ;;  %2698 = vmatpush.msrb.mxu2 %v4802_v9 }
0x1622   :  { %2306 = vmatpush.msrb.mxu0 %v4944_v46  ;;  %2371 = vmatpush.msrb.mxu1 %v6252_v33 }
0x1623   :  { %2751 = vmatpush.msrb.mxu3 %v4872_v30  ;;  %2700 = vmatpush.msrb.mxu2 %v4804_v10 }
0x1624   :  { %2308 = vmatpush.msrb.mxu0 %v4946_v47  ;;  %2377 = vmatpush.msrb.mxu1 %v6253_v38 }
0x1625   :  { %2757 = vmatpush.msrb.mxu3 %v6210_v14  ;;  %2702 = vmatpush.msrb.mxu2 %v4879_v32 }
0x1626   :  { %2310 = vmatpush.msrb.mxu0 %v4957_v51  ;;  %2383 = vmatpush.msrb.mxu1 %v6254_v19 }
0x1627   :  { %2147 = vmatmul.f32.vlgmr.msra.gmra.mxu0 %v2058_v7 }
0x1628   :  { %2512 = vmatpush.msra.mxu1 %v4942_v45  ;;  %2312 = vmatpush.msrb.mxu0 %v4959_v52 }
0x162a   :  { %2514 = vmatpush.msra.mxu1 %v4944_v46  ;;  %2314 = vmatpush.msrb.mxu0 %v4961_v53 }
0x162c   :  { %2516 = vmatpush.msra.mxu1 %v4946_v47  ;;  %2316 = vmatpush.msrb.mxu0 %v4980_v59 }
0x162e   :  { %2518 = vmatpush.msra.mxu1 %v4957_v51  ;;  %2318 = vmatpush.msrb.mxu0 %v5002_v2 }
0x1630   :  { %2469 = vmatpush.msra.mxu0 %v4992_v63  ;;  %2520 = vmatpush.msra.mxu1 %v4959_v52 }
0x1632   :  { %2473 = vmatpush.msra.mxu0 %v4995_v0  ;;  %2522 = vmatpush.msra.mxu1 %v4961_v53 }
0x1634   :  { %2477 = vmatpush.msra.mxu0 %v4998_v1  ;;  %2524 = vmatpush.msra.mxu1 %v4980_v59 }
0x1636   :  { %2481 = vmatpush.msra.mxu0 %v5005_v3  ;;  %2526 = vmatpush.msra.mxu1 %v5002_v2 }
0x1638   :  { %2485 = vmatpush.msra.mxu0 %v5018_v22 }
0x163a   :  { %2489 = vmatpush.msra.mxu0 %v5023_v28 }
0x163c   :  { %2493 = vmatpush.msra.mxu0 %v5044_v42 }
0x163e   :  { %2497 = vmatpush.msra.mxu0 %v5055_v48 }
0x1694   :  { %v2114_v7 = vpop.f32.mrf.mxu1 }
0x169a   :  { %v2216_v44 = vpop.f32.mrf.mxu2 }
0x169b   :  { %v2243_v49 = vpop.f32.mrf.mxu3 }
0x169c   :  { %v2063_v50 = vpop.f32.mrf.mxu0  ;;  %v2177_v61 = vpop.f32.mrf.mxu1 }
0x169d   :  { %v2115_v18 = vadd.f32 %v2114_v7, %v2063_v50 }
0x16a4   :  { %v2148_v39 = vpop.f32.mrf.mxu0 }
0x16a5   :  { %v2149_v62 = vadd.f32 %v2148_v39, %v2115_v18 }
0x16a7   :  { %v2178_v15 = vadd.f32 %v2177_v61, %v2149_v62 }
0x16a9   :  { %v2217_v21 = vadd.f32 %v2216_v44, %v2178_v15 }
0x16ab   :  { %v2244_v22 = vadd.f32 %v2243_v49, %v2217_v21 }
0x16ad   :  { %v2246_v28 = vadd.f32 %v4535_v60, %v2244_v22 }
0x16af   :  { %4631 = vtanh.f32 %v2246_v28  ;;  %v4536_v48 = vmul.f32 -1.442695, %v2246_v28 }
0x16b1   :  { %4633 = vpow2.f32 %v4536_v48 }
0x16b5   :  { %v4632_v42 = vpop.eup %4631 }
0x16b6   :  { %2269 = vrot.lane.b32.xlu0 %v4632_v42, %s4725_s29 }
0x16b7   :  { %v4634_v7 = vpop.eup %4633 }
0x16b8   :  { %v2250_v50 = vadd.f32 1.0, %v4634_v7 }
0x16ba   :  { %4635 = vrcp.f32 %v2250_v50  ;;  %v2262_v44 = vand.u32 2147483648, %v2250_v50  ;;  %vm2256_vm11 = vweird.f32 %v2250_v50  ;;  %v2260_v3 = vand.u32 2147483647, %v2250_v50 }
0x16bc   :  { %v2263_v21 = vor.u32 1.1754944e-38, %v2262_v44  ;;  %vm2261_vm2 = vcmp.eq.f32.partialorder %v2260_v3, 8.507059e+37 }
0x16c0   :  { %v4636_v18 = vpop.eup %4635 }
0x16c1   :  { %v2252_v39 = vmul.f32 %v4636_v18, %v2250_v50  ;;  %vm2257_vm10 = vweird.f32 %v4636_v18 }
0x16c2   :  { %vm2258_vm15 = vmor %vm2256_vm11, %vm2257_vm10 }
0x16c3   :  { %v2253_v62 = vsub.f32 1.0, %v2252_v39 }
0x16c5   :  { %v2254_v61 = vmul.f32 %v4636_v18, %v2253_v62 }
0x16c7   :  { %v2255_v15 = vadd.f32 %v4636_v18, %v2254_v61 }
0x16c9   :  { %v2259_v22 = vsel %vm2258_vm15, %v4636_v18, %v2255_v15 }
0x16ca   :  { %v2264_v42 = vsel %vm2261_vm2, %v2263_v21, %v2259_v22 }
0x16cb   :  { %v2267_v48 = vmul.f32 %v2264_v42, %v5418_v41 }
0x1728   :  { %v2270_v49 = vpop.permute.xlu0 %2269 }
0x1729   :  { %v2272_v28 = vmul.f32 %v2270_v49, %v2264_v42 }
0x172b   :  { %2274 = vrot.lane.b32.xlu1 %v2272_v28, %s4724_s25  ;;  %v6256_v28 = vld [vmem:[#allocation15_spill] sm:$0xff] }
0x1733   :  { %2288 = vrot.lane.b32.xlu1 %v5481_v54, %s4725_s29 }
0x179d   :  { %v2275_v60 = vpop.permute.xlu1 %2274 }
0x179e   :  { %v5580_v7 = vadd.f32 %v2275_v60, %v2267_v48  ;;  %v6257_v48 = vld [vmem:[#allocation16_spill] sm:$0xff]  ;;  %v6258_v60 = vld [vmem:[#allocation18_spill] sm:$0xff] }
0x17a0   :  { %4637 = vtanh.f32 %v5580_v7 }
0x17a5   :  { %v2289_v39 = vpop.permute.xlu1 %2288 }
0x17a6   :  { %v4638_v50 = vpop.eup %4637 }
0x17a7   :  { %2280 = vrot.lane.b32.xlu2 %v4638_v50, %s4725_s29  ;;  %v6259_v50 = vld [vmem:[#allocation23_spill] sm:$0xff] }
0x1801   :  { %v2281_v18 = vpop.permute.xlu2 %2280 }
0x1802   :  { %v5584_v3 = vmul.f32 %v2281_v18, %v2264_v42  ;;  %v6255_v42 = vld [vmem:[#allocation14_spill] sm:$0xff] }
0x1804   :  { %2285 = vrot.lane.b32.xlu0 %v5584_v3, %s4724_s25 }
0x1876   :  { %v2286_v62 = vpop.permute.xlu0 %2285 }
0x1877   :  { %v2291_v61 = vsel %vm339_vm6, %v2286_v62, %v2289_v39  ;;  %v6260_v62 = vld [vmem:[#allocation2_spill] sm:$0xff] }
0x1878   :  { %v2293_v41 = vsel %vm344_vm7, %v2291_v61, 0 }
0x1879   :  { %v2319_v15 = vand.u32 4294901760, %v2293_v41 }
0x187b   :  { %v2320_v44 = vsub.f32 %v2293_v41, %v2319_v15  ;;  %2385 = vmatmul.f32.vlgmr.msrb.gmra.mxu1 %v2319_v15 }
0x187c   :  { %2876 = vmatpush.msrb.mxu1 %v4790_v4 }
0x187d   :  { %2423 = vmatmul.f32.vlgmr.msra.gmra.mxu2 %v2320_v44  ;;  %v2321_v22 = vand.u32 4294901760, %v2320_v44 }
0x187e   :  { %2878 = vmatpush.msrb.mxu1 %v4792_v5  ;;  %2775 = vmatpush.msra.mxu2 %v4807_v11 }
0x187f   :  { %2454 = vmatmul.f32.vlgmr.msra.gmra.mxu3 %v2321_v22  ;;  %v2322_v21 = vsub.f32 %v2320_v44, %v2321_v22 }
0x1880   :  { %2880 = vmatpush.msrb.mxu1 %v4794_v6  ;;  %2808 = vmatpush.msra.mxu3 %v4790_v4 }
0x1881   :  { %v2323_v49 = vand.u32 4294901760, %v2322_v21  ;;  %2778 = vmatpush.msra.mxu2 %v4810_v12 }
0x1882   :  { %2882 = vmatpush.msrb.mxu1 %v4802_v9  ;;  %2810 = vmatpush.msra.mxu3 %v4792_v5 }
0x1883   :  { %2324 = vmatmul.f32.vlgmr.msrb.gmra.mxu0 %v2323_v49  ;;  %2528 = vmatmul.f32.vlgmr.msra.gmra.mxu1 %v2319_v15 }
0x1884   :  { %2839 = vmatpush.msrb.mxu0 %v4824_v16  ;;  %2884 = vmatpush.msrb.mxu1 %v4804_v10 }
0x1885   :  { %2812 = vmatpush.msra.mxu3 %v4794_v6  ;;  %2781 = vmatpush.msra.mxu2 %v4813_v13 }
0x1886   :  { %2843 = vmatpush.msrb.mxu0 %v4827_v17  ;;  %2886 = vmatpush.msrb.mxu1 %v4879_v32 }
0x1887   :  { %2814 = vmatpush.msra.mxu3 %v4802_v9  ;;  %2784 = vmatpush.msra.mxu2 %v6212_v35 }
0x1888   :  { %2847 = vmatpush.msrb.mxu0 %v6232_v43  ;;  %3082 = vmatpush.msra.mxu1 %v4942_v45 }
0x1889   :  { %2816 = vmatpush.msra.mxu3 %v4804_v10  ;;  %2787 = vmatpush.msra.mxu2 %v6233_v40 }
0x188a   :  { %2851 = vmatpush.msrb.mxu0 %v6234_v31  ;;  %3084 = vmatpush.msra.mxu1 %v4944_v46 }
0x188b   :  { %2499 = vmatmul.f32.vlgmr.msra.gmra.mxu0 %v2319_v15  ;;  %2818 = vmatpush.msra.mxu3 %v4879_v32 }
0x188c   :  { %2855 = vmatpush.msrb.mxu0 %v6235_v20  ;;  %2790 = vmatpush.msra.mxu2 %v6236_v26 }
0x188d   :  { %3086 = vmatpush.msra.mxu1 %v4946_v47 }
0x188e   :  { %2859 = vmatpush.msrb.mxu0 %v6237_v37 }
0x188f   :  { %3088 = vmatpush.msra.mxu1 %v4957_v51 }
0x1890   :  { %3045 = vmatpush.msra.mxu0 %v4970_v56  ;;  %v6268_v56 = vld [vmem:[#allocation39_spill] sm:$0xff] }
0x1891   :  { %3090 = vmatpush.msra.mxu1 %v4959_v52 }
0x1892   :  { %3048 = vmatpush.msra.mxu0 %v4973_v57 }
0x1893   :  { %3092 = vmatpush.msra.mxu1 %v4961_v53 }
0x1894   :  { %3051 = vmatpush.msra.mxu0 %v4976_v58 }
0x1895   :  { %3094 = vmatpush.msra.mxu1 %v4980_v59 }
0x1896   :  { %3054 = vmatpush.msra.mxu0 %v6255_v42 }
0x1897   :  { %3096 = vmatpush.msra.mxu1 %v5002_v2 }
0x1898   :  { %3057 = vmatpush.msra.mxu0 %v6256_v28 }
0x189a   :  { %3060 = vmatpush.msra.mxu0 %v6257_v48 }
0x189c   :  { %3063 = vmatpush.msra.mxu0 %v6258_v60 }
0x189e   :  { %3066 = vmatpush.msra.mxu0 %v6259_v50 }
0x18f8   :  { %v2386_v18 = vpop.f32.mrf.mxu1 }
0x1900   :  { %v2325_v39 = vpop.f32.mrf.mxu0  ;;  %v2424_v15 = vpop.f32.mrf.mxu2 }
0x1901   :  { %v2326_v61 = vadd.f32 %v6260_v62, %v2325_v39  ;;  %v2529_v28 = vpop.f32.mrf.mxu1 }
0x1902   :  { %v2455_v22 = vpop.f32.mrf.mxu3 }
0x1903   :  { %v2387_v41 = vadd.f32 %v2386_v18, %v2326_v61 }
0x1905   :  { %v2425_v44 = vadd.f32 %v2424_v15, %v2387_v41 }
0x1907   :  { %v2456_v21 = vadd.f32 %v2455_v22, %v2425_v44 }
0x1908   :  { %v2500_v49 = vpop.f32.mrf.mxu0 }
0x1909   :  { %v2501_v54 = vadd.f32 %v2500_v49, %v2456_v21 }
0x190b   :  { %v2530_v42 = vadd.f32 %v2529_v28, %v2501_v54 }
0x190d   :  { %4639 = vtanh.f32 %v2530_v42  ;;  %v4537_v60 = vmul.f32 -1.442695, %v2530_v42 }
0x190f   :  { %4641 = vpow2.f32 %v4537_v60  ;;  %v6261_v60 = vld [vmem:[#allocation32_spill] sm:$0xff] }
0x1913   :  { %v4640_v58 = vpop.eup %4639 }
0x1914   :  { %2554 = vrot.lane.b32.xlu2 %v4640_v58, %s4725_s29 }
0x1915   :  { %v4642_v50 = vpop.eup %4641 }
0x1916   :  { %v2535_v48 = vadd.f32 1.0, %v4642_v50 }
0x1918   :  { %4643 = vrcp.f32 %v2535_v48  ;;  %v2547_v41 = vand.u32 2147483648, %v2535_v48  ;;  %vm2541_vm4 = vweird.f32 %v2535_v48  ;;  %v2545_v15 = vand.u32 2147483647, %v2535_v48 }
0x191a   :  { %v2548_v28 = vor.u32 1.1754944e-38, %v2547_v41  ;;  %vm2546_vm8 = vcmp.eq.f32.partialorder %v2545_v15, 8.507059e+37  ;;  %v6264_v41 = vld [vmem:[#allocation35_spill] sm:$0xff] }
0x191e   :  { %v4644_v57 = vpop.eup %4643 }
0x191f   :  { %v2537_v39 = vmul.f32 %v4644_v57, %v2535_v48  ;;  %vm2542_vm3 = vweird.f32 %v4644_v57 }
0x1920   :  { %vm2543_vm5 = vmor %vm2541_vm4, %vm2542_vm3 }
0x1921   :  { %v2538_v18 = vsub.f32 1.0, %v2537_v39 }
0x1923   :  { %v2539_v62 = vmul.f32 %v4644_v57, %v2538_v18 }
0x1925   :  { %v2540_v61 = vadd.f32 %v4644_v57, %v2539_v62 }
0x1927   :  { %v2544_v54 = vsel %vm2543_vm5, %v4644_v57, %v2540_v61 }
0x1928   :  { %v2549_v58 = vsel %vm2546_vm8, %v2548_v28, %v2544_v54 }
0x1929   :  { %v2552_v50 = vmul.f32 %v2549_v58, %v6261_v60 }
0x196e   :  { %v2555_v44 = vpop.permute.xlu2 %2554 }
0x196f   :  { %v2557_v42 = vmul.f32 %v2555_v44, %v2549_v58  ;;  %v6265_v44 = vld [vmem:[#allocation36_spill] sm:$0xff] }
0x1971   :  { %2559 = vrot.lane.b32.xlu0 %v2557_v42, %s4724_s25 }
0x19e3   :  { %v2560_v22 = vpop.permute.xlu0 %2559 }
0x19e4   :  { %v5634_v21 = vadd.f32 %v2560_v22, %v2552_v50  ;;  %v6266_v22 = vld [vmem:[#allocation37_spill] sm:$0xff] }
0x19e6   :  { %6262 = vst [vmem:[#allocation4_spill] sm:$0xff] %v5634_v21  ;;  %4645 = vtanh.f32 %v5634_v21  ;;  %v6267_v21 = vld [vmem:[#allocation38_spill] sm:$0xff] }
0x19ec   :  { %v4646_v49 = vpop.eup %4645 }
0x19ed   :  { %2565 = vrot.lane.b32.xlu1 %v4646_v49, %s4725_s29 }
0x1a5f   :  { %v2566_v48 = vpop.permute.xlu1 %2565 }
0x1a60   :  { %v5638_v39 = vmul.f32 %v2566_v48, %v2549_v58 }
0x1a62   :  { %6263 = vst [vmem:[#allocation9_spill] sm:$0xff] %v5638_v39  ;;  %v2571_v57 = vperm.slane %v5638_v39, 0  ;;  %v2570_v18 = vrot.slane %v5638_v39, 1 }
0x1a64   :  { %2573 = vrot.lane.b32.xlu2 %v2571_v57, %s4724_s25  ;;  %v2572_v62 = vperm.slane %v2570_v18, 0 }
0x1a66   :  { %2575 = vrot.lane.b32.xlu0 %v2572_v62, %s4724_s25 }
0x1abe   :  { %v2574_v61 = vpop.permute.xlu2 %2573 }
0x1abf   :  { %v2579_v15 = vmul.f32 %v6264_v41, %v2574_v61 }
0x1ac1   :  { %v2581_v54 = vsel %vm339_vm6, %v2579_v15, 0.0 }
0x1ac2   :  { %2582 = vadd.xlane.f32.xlu1 %v2581_v54 }
0x1ad8   :  { %v2576_v28 = vpop.permute.xlu0 %2575 }
0x1ad9   :  { %v2580_v42 = vmul.f32 %v6265_v44, %v2576_v28 }
0x1adb   :  { %v2584_v58 = vsel %vm339_vm6, %v2580_v42, 0.0 }
0x1adc   :  { %2585 = vadd.xlane.f32.xlu2 %v2584_v58 }
0x1b35   :  { %v2583_v60 = vpop.xlane.xlu1 %2582 }
0x1b36   :  { %v2589_v49 = vperm.slane %v2583_v60, %v6266_v22 }
0x1b4f   :  { %v2586_v50 = vpop.xlane.xlu2 %2585 }
0x1b50   :  { %v2590_v48 = vperm.slane %v2586_v50, %v6266_v22 }
0x1b52   :  { %v2591_v57 = vsel %vm650_vm12, %v2590_v48, %v2589_v49 }
0x1b53   :  { %v2593_v18 = vsel %vm653_vm13, %v2591_v57, -inf }
0x1b54   :  { %2594 = vmax.xlane.f32.xlu0 %v2593_v18 }
0x1bc7   :  { %v2595_v62 = vpop.xlane.xlu0 %2594 }
0x1bc8   :  { %v2597_v61 = vperm.slane %v2595_v62, 0  ;;  %v2598_v41 = vperm.slane %v2595_v62, 1 }
0x1bca   :  { %v2601_v15 = vsub.f32 %v2583_v60, %v2597_v61  ;;  %v2602_v54 = vsub.f32 %v2586_v50, %v2598_v41 }
0x1bcc   :  { %v2603_v28 = vmul.f32 1.442695, %v2601_v15  ;;  %v2605_v44 = vmul.f32 1.442695, %v2602_v54 }
0x1bce   :  { %4647 = vpow2.f32 %v2603_v28 }
0x1bcf   :  { %4649 = vpow2.f32 %v2605_v44 }
0x1bd4   :  { %v4648_v42 = vpop.eup %4647 }
0x1bd5   :  { %v4650_v58 = vpop.eup %4649  ;;  %2610 = vperm.xlu1 %4557, %v4648_v42  }
0x1bd6   :  { %2613 = vperm.xlu2 %4556, %v4650_v58  }
0x1bde   :  { %2674 = vrot.lane.b32.xlu2 %v5584_v3, %s4727_s13 }
0x1c30   :  { %v2614_v49 = vpop.permute.xlu2 %2613 }
0x1c31   :  { %v2616_v57 = vperm.slane %v2614_v49, %v6266_v22 }
0x1c38   :  { %v2675_v26 = vpop.permute.xlu2 %2674 }
0x1c47   :  { %v2611_v48 = vpop.permute.xlu1 %2610 }
0x1c48   :  { %v2615_v18 = vperm.slane %v2611_v48, %v6266_v22 }
0x1c4a   :  { %v2617_v60 = vsel %vm650_vm12, %v2616_v57, %v2615_v18 }
0x1c4b   :  { %v2619_v50 = vsel %vm653_vm13, %v2617_v60, 0.0 }
0x1c4c   :  { %2620 = vadd.xlane.f32.xlu0 %v2619_v50 }
0x1cbf   :  { %v2621_v62 = vpop.xlane.xlu0 %2620 }
0x1cc0   :  { %4651 = vrcp.f32 %v2621_v62 }
0x1cc6   :  { %v4652_v61 = vpop.eup %4651 }
0x1cc7   :  { %v2625_v41 = vperm.slane %v4652_v61, 1  ;;  %v2624_v15 = vperm.slane %v4652_v61, 0 }
0x1cc9   :  { %v2629_v54 = vmul.f32 %v4650_v58, %v2625_v41  ;;  %v2628_v28 = vmul.f32 %v4648_v42, %v2624_v15 }
0x1ccb   :  { %2637 = vperm.xlu1 %4557, %v2629_v54   ;;  %2632 = vperm.xlu0 %4558, %v2628_v28  }
0x1d3d   :  { %v2638_v3 = vpop.permute.xlu1 %2637  ;;  %v2633_v44 = vpop.permute.xlu0 %2632 }
0x1d3e   :  { %v2641_v49 = vmul.f32 %v6267_v21, %v2638_v3  ;;  %v2640_v48 = vmul.f32 %v6268_v56, %v2633_v44 }
0x1d40   :  { %v2649_v57 = vsel %vm72_vm0, %v2641_v49, 0.0  ;;  %v2642_v18 = vsel %vm72_vm0, %v2640_v48, 0.0  ;;  %v6269_v48 = vld [vmem:[#allocation17_spill] sm:$0xff] }
0x1d41   :  { %v2650_v60 = vrot.slane %v2649_v57, 4  ;;  %v2643_v50 = vrot.slane %v2642_v18, 4 }
0x1d43   :  { %v2651_v62 = vadd.f32 %v2650_v60, %v2649_v57  ;;  %v2644_v22 = vadd.f32 %v2643_v50, %v2642_v18  ;;  %v6270_v57 = vld [vmem:[#allocation19_spill] sm:$0xff]  ;;  %v6271_v18 = vld [vmem:[#allocation20_spill] sm:$0xff]  ;;  %v6272_v60 = vld [vmem:[#allocation25_spill] sm:$0xff] }
0x1d44   :  { %v6273_v50 = vld [vmem:[#allocation27_spill] sm:$0xff] }
0x1d45   :  { %v2652_v37 = vrot.slane %v2651_v62, 2  ;;  %v2645_v61 = vrot.slane %v2644_v22, 2 }
0x1d47   :  { %v2653_v58 = vadd.f32 %v2652_v37, %v2651_v62  ;;  %v2646_v42 = vadd.f32 %v2645_v61, %v2644_v22 }
0x1d49   :  { %v2654_v41 = vrot.slane %v2653_v58, 1  ;;  %v2647_v15 = vrot.slane %v2646_v42, 1 }
0x1d4b   :  { %v2655_v54 = vadd.f32 %v2654_v41, %v2653_v58  ;;  %v2648_v28 = vadd.f32 %v2647_v15, %v2646_v42 }
0x1d4d   :  { %v2672_v21 = vsel %vm650_vm12, %v2655_v54, %v2648_v28 }
0x1d4e   :  { %v2677_v56 = vsel %vm72_vm0, %v2672_v21, %v2675_v26 }
0x1d4f   :  { %v2679_v3 = vsel %vm74_vm1, %v2677_v56, 0 }
0x1d50   :  { %v2703_v44 = vand.u32 4294901760, %v2679_v3 }
0x1d52   :  { %v2704_v49 = vsub.f32 %v2679_v3, %v2703_v44  ;;  %2759 = vmatmul.f32.vlgmr.msrb.gmra.mxu3 %v2703_v44  ;;  %2861 = vmatmul.f32.vlgmr.msrb.gmra.mxu0 %v2703_v44  ;;  %v4539_v3 = vld [vmem:[%s6071_s0 + $0xa] sm:$0x3] }
0x1d53   :  { %2888 = vmatmul.f32.vlgmr.msrb.gmra.mxu1 %v2703_v44  ;;  %2987 = vmatpush.msrb.mxu3 %v6247_v23 }
0x1d54   :  { %v2705_v37 = vand.u32 4294901760, %v2704_v49  ;;  %3373 = vmatpush.msrb.mxu1 %v4850_v24  ;;  %3338 = vmatpush.msrb.mxu0 %v4790_v4 }
0x1d55   :  { %2993 = vmatpush.msrb.mxu3 %v6248_v8 }
0x1d56   :  { %v2706_v22 = vsub.f32 %v2704_v49, %v2705_v37  ;;  %3379 = vmatpush.msrb.mxu1 %v4852_v25  ;;  %3340 = vmatpush.msrb.mxu0 %v4792_v5 }
0x1d57   :  { %2999 = vmatpush.msrb.mxu3 %v6249_v34 }
0x1d58   :  { %v2707_v26 = vand.u32 4294901760, %v2706_v22  ;;  %3385 = vmatpush.msrb.mxu1 %v4860_v27  ;;  %3342 = vmatpush.msrb.mxu0 %v4794_v6 }
0x1d59   :  { %3005 = vmatpush.msrb.mxu3 %v6250_v36 }
0x1d5a   :  { %2708 = vmatmul.f32.vlgmr.msrb.gmra.mxu2 %v2707_v26  ;;  %2822 = vmatmul.f32.vlgmr.msra.gmra.mxu3 %v2705_v37 }
0x1d5b   :  { %2950 = vmatpush.msrb.mxu2 %v4942_v45  ;;  %3011 = vmatpush.msrb.mxu3 %v6251_v55 }
0x1d5c   :  { %3391 = vmatpush.msrb.mxu1 %v4868_v29  ;;  %3344 = vmatpush.msrb.mxu0 %v4802_v9 }
0x1d5d   :  { %2952 = vmatpush.msrb.mxu2 %v4944_v46  ;;  %3017 = vmatpush.msrb.mxu3 %v6252_v33 }
0x1d5e   :  { %3397 = vmatpush.msrb.mxu1 %v4872_v30  ;;  %3346 = vmatpush.msrb.mxu0 %v4804_v10 }
0x1d5f   :  { %2954 = vmatpush.msrb.mxu2 %v4946_v47  ;;  %3023 = vmatpush.msrb.mxu3 %v6253_v38 }
0x1d60   :  { %3403 = vmatpush.msrb.mxu1 %v6210_v14  ;;  %3348 = vmatpush.msrb.mxu0 %v4879_v32 }
0x1d61   :  { %2956 = vmatpush.msrb.mxu2 %v4957_v51  ;;  %3029 = vmatpush.msrb.mxu3 %v6254_v19 }
0x1d62   :  { %2793 = vmatmul.f32.vlgmr.msra.gmra.mxu2 %v2704_v49 }
0x1d63   :  { %3158 = vmatpush.msra.mxu3 %v4942_v45  ;;  %2958 = vmatpush.msrb.mxu2 %v4959_v52 }
0x1d65   :  { %3160 = vmatpush.msra.mxu3 %v4944_v46  ;;  %2960 = vmatpush.msrb.mxu2 %v4961_v53 }
0x1d67   :  { %3162 = vmatpush.msra.mxu3 %v4946_v47  ;;  %2962 = vmatpush.msrb.mxu2 %v4980_v59 }
0x1d69   :  { %3164 = vmatpush.msra.mxu3 %v4957_v51  ;;  %2964 = vmatpush.msrb.mxu2 %v5002_v2 }
0x1d6b   :  { %3115 = vmatpush.msra.mxu2 %v4992_v63  ;;  %3166 = vmatpush.msra.mxu3 %v4959_v52 }
0x1d6d   :  { %3119 = vmatpush.msra.mxu2 %v4995_v0  ;;  %3168 = vmatpush.msra.mxu3 %v4961_v53 }
0x1d6f   :  { %3123 = vmatpush.msra.mxu2 %v4998_v1  ;;  %3170 = vmatpush.msra.mxu3 %v4980_v59 }
0x1d71   :  { %3127 = vmatpush.msra.mxu2 %v6269_v48  ;;  %3172 = vmatpush.msra.mxu3 %v5002_v2 }
0x1d73   :  { %3131 = vmatpush.msra.mxu2 %v6270_v57 }
0x1d75   :  { %3135 = vmatpush.msra.mxu2 %v6271_v18 }
0x1d77   :  { %3139 = vmatpush.msra.mxu2 %v6272_v60 }
0x1d79   :  { %3143 = vmatpush.msra.mxu2 %v6273_v50 }
0x1dcf   :  { %v2862_v28 = vpop.f32.mrf.mxu0 }
0x1dd0   :  { %v2889_v56 = vpop.f32.mrf.mxu1 }
0x1dd5   :  { %v2760_v62 = vpop.f32.mrf.mxu3 }
0x1ddd   :  { %v2709_v61 = vpop.f32.mrf.mxu2  ;;  %v2823_v15 = vpop.f32.mrf.mxu3 }
0x1dde   :  { %v2761_v58 = vadd.f32 %v2760_v62, %v2709_v61 }
0x1de5   :  { %v2794_v42 = vpop.f32.mrf.mxu2 }
0x1de6   :  { %v2795_v41 = vadd.f32 %v2794_v42, %v2761_v58 }
0x1de8   :  { %v2824_v54 = vadd.f32 %v2823_v15, %v2795_v41 }
0x1dea   :  { %v2863_v21 = vadd.f32 %v2862_v28, %v2824_v54 }
0x1dec   :  { %v2890_v44 = vadd.f32 %v2889_v56, %v2863_v21 }
0x1dee   :  { %v2892_v49 = vadd.f32 %v4539_v3, %v2890_v44 }
0x1df0   :  { %4653 = vtanh.f32 %v2892_v49  ;;  %v4540_v22 = vmul.f32 -1.442695, %v2892_v49 }
0x1df2   :  { %4655 = vpow2.f32 %v4540_v22 }
0x1df6   :  { %v4654_v37 = vpop.eup %4653 }
0x1df7   :  { %2915 = vrot.lane.b32.xlu0 %v4654_v37, %s4725_s29 }
0x1df8   :  { %v4656_v26 = vpop.eup %4655 }
0x1df9   :  { %v2896_v62 = vadd.f32 1.0, %v4656_v26 }
0x1dfb   :  { %4657 = vrcp.f32 %v2896_v62  ;;  %v2908_v54 = vand.u32 2147483648, %v2896_v62  ;;  %vm2902_vm10 = vweird.f32 %v2896_v62  ;;  %v2906_v28 = vand.u32 2147483647, %v2896_v62 }
0x1dfd   :  { %v2909_v56 = vor.u32 1.1754944e-38, %v2908_v54  ;;  %vm2907_vm15 = vcmp.eq.f32.partialorder %v2906_v28, 8.507059e+37 }
0x1e01   :  { %v4658_v61 = vpop.eup %4657 }
0x1e02   :  { %v2898_v58 = vmul.f32 %v4658_v61, %v2896_v62  ;;  %vm2903_vm9 = vweird.f32 %v4658_v61 }
0x1e03   :  { %vm2904_vm11 = vmor %vm2902_vm10, %vm2903_vm9 }
0x1e04   :  { %v2899_v42 = vsub.f32 1.0, %v2898_v58 }
0x1e06   :  { %v2900_v41 = vmul.f32 %v4658_v61, %v2899_v42 }
0x1e08   :  { %v2901_v15 = vadd.f32 %v4658_v61, %v2900_v41 }
0x1e0a   :  { %v2905_v21 = vsel %vm2904_vm11, %v4658_v61, %v2901_v15 }
0x1e0b   :  { %v2910_v44 = vsel %vm2907_vm15, %v2909_v56, %v2905_v21 }
0x1e0c   :  { %v2913_v37 = vmul.f32 %v2910_v44, %v5580_v7 }
0x1e69   :  { %v2916_v3 = vpop.permute.xlu0 %2915 }
0x1e6a   :  { %v2918_v49 = vmul.f32 %v2916_v3, %v2910_v44 }
0x1e6c   :  { %2920 = vrot.lane.b32.xlu1 %v2918_v49, %s4724_s25  ;;  %v6275_v49 = vld [vmem:[#allocation8_spill] sm:$0xff] }
0x1e74   :  { %2934 = vrot.lane.b32.xlu1 %v5638_v39, %s4725_s29 }
0x1ede   :  { %v2921_v22 = vpop.permute.xlu1 %2920 }
0x1edf   :  { %v5717_v26 = vadd.f32 %v2921_v22, %v2913_v37  ;;  %v6276_v37 = vld [vmem:[#allocation11_spill] sm:$0xff]  ;;  %v6277_v22 = vld [vmem:[#allocation12_spill] sm:$0xff] }
0x1ee1   :  { %4659 = vtanh.f32 %v5717_v26 }
0x1ee6   :  { %v2935_v42 = vpop.permute.xlu1 %2934 }
0x1ee7   :  { %v4660_v62 = vpop.eup %4659 }
0x1ee8   :  { %2926 = vrot.lane.b32.xlu2 %v4660_v62, %s4725_s29  ;;  %v6278_v62 = vld [vmem:[#allocation13_spill] sm:$0xff] }
0x1f42   :  { %v2927_v61 = vpop.permute.xlu2 %2926 }
0x1f43   :  { %v5721_v58 = vmul.f32 %v2927_v61, %v2910_v44  ;;  %v6274_v44 = vld [vmem:[#allocation7_spill] sm:$0xff]  ;;  %v6279_v61 = vld [vmem:[#allocation14_spill] sm:$0xff] }
0x1f45   :  { %2931 = vrot.lane.b32.xlu0 %v5721_v58, %s4724_s25 }
0x1fb7   :  { %v2932_v41 = vpop.permute.xlu0 %2931 }
0x1fb8   :  { %v2937_v15 = vsel %vm339_vm6, %v2932_v41, %v2935_v42  ;;  %v6280_v42 = vld [vmem:[#allocation15_spill] sm:$0xff]  ;;  %v6281_v41 = vld [vmem:[#allocation16_spill] sm:$0xff] }
0x1fb9   :  { %v2939_v7 = vsel %vm344_vm7, %v2937_v15, 0  ;;  %v6282_v15 = vld [vmem:[#allocation18_spill] sm:$0xff] }
0x1fba   :  { %v2965_v54 = vand.u32 4294901760, %v2939_v7 }
0x1fbc   :  { %v2966_v28 = vsub.f32 %v2939_v7, %v2965_v54  ;;  %3031 = vmatmul.f32.vlgmr.msrb.gmra.mxu3 %v2965_v54  ;;  %v6283_v7 = vld [vmem:[#allocation23_spill] sm:$0xff] }
0x1fbd   :  { %3522 = vmatpush.msrb.mxu3 %v4790_v4 }
0x1fbe   :  { %3069 = vmatmul.f32.vlgmr.msra.gmra.mxu0 %v2966_v28  ;;  %v2967_v21 = vand.u32 4294901760, %v2966_v28 }
0x1fbf   :  { %3524 = vmatpush.msrb.mxu3 %v4792_v5  ;;  %3421 = vmatpush.msra.mxu0 %v4807_v11 }
0x1fc0   :  { %3100 = vmatmul.f32.vlgmr.msra.gmra.mxu1 %v2967_v21  ;;  %v2968_v56 = vsub.f32 %v2966_v28, %v2967_v21  ;;  %v5770_v21 = vld [vmem:[%s6073_s5] ss:$0 sm:$0xff] }
0x1fc1   :  { %3526 = vmatpush.msrb.mxu3 %v4794_v6  ;;  %3454 = vmatpush.msra.mxu1 %v4790_v4  ;;  %6284 = vst [vmem:[#allocation21_spill] sm:$0xff] %v5770_v21 }
0x1fc2   :  { %v2969_v3 = vand.u32 4294901760, %v2968_v56  ;;  %3424 = vmatpush.msra.mxu0 %v4810_v12 }
0x1fc3   :  { %3528 = vmatpush.msrb.mxu3 %v4802_v9  ;;  %3456 = vmatpush.msra.mxu1 %v4792_v5 }
0x1fc4   :  { %2970 = vmatmul.f32.vlgmr.msrb.gmra.mxu2 %v2969_v3  ;;  %3174 = vmatmul.f32.vlgmr.msra.gmra.mxu3 %v2965_v54 }
0x1fc5   :  { %3485 = vmatpush.msrb.mxu2 %v4824_v16  ;;  %3530 = vmatpush.msrb.mxu3 %v4804_v10 }
0x1fc6   :  { %3458 = vmatpush.msra.mxu1 %v4794_v6  ;;  %3427 = vmatpush.msra.mxu0 %v4813_v13 }
0x1fc7   :  { %3489 = vmatpush.msrb.mxu2 %v4827_v17  ;;  %3532 = vmatpush.msrb.mxu3 %v4879_v32 }
0x1fc8   :  { %3460 = vmatpush.msra.mxu1 %v4802_v9  ;;  %3430 = vmatpush.msra.mxu0 %v6212_v35 }
0x1fc9   :  { %3493 = vmatpush.msrb.mxu2 %v6232_v43  ;;  %3728 = vmatpush.msra.mxu3 %v4942_v45 }
0x1fca   :  { %3462 = vmatpush.msra.mxu1 %v4804_v10  ;;  %3433 = vmatpush.msra.mxu0 %v6233_v40 }
0x1fcb   :  { %3497 = vmatpush.msrb.mxu2 %v6234_v31  ;;  %3730 = vmatpush.msra.mxu3 %v4944_v46 }
0x1fcc   :  { %3145 = vmatmul.f32.vlgmr.msra.gmra.mxu2 %v2965_v54  ;;  %3464 = vmatpush.msra.mxu1 %v4879_v32 }
0x1fcd   :  { %3501 = vmatpush.msrb.mxu2 %v6235_v20  ;;  %3436 = vmatpush.msra.mxu0 %v6274_v44 }
0x1fce   :  { %3732 = vmatpush.msra.mxu3 %v4946_v47 }
0x1fcf   :  { %3505 = vmatpush.msrb.mxu2 %v6275_v49 }
0x1fd0   :  { %3734 = vmatpush.msra.mxu3 %v4957_v51 }
0x1fd1   :  { %3691 = vmatpush.msra.mxu2 %v6276_v37 }
0x1fd2   :  { %3736 = vmatpush.msra.mxu3 %v4959_v52 }
0x1fd3   :  { %3694 = vmatpush.msra.mxu2 %v6277_v22 }
0x1fd4   :  { %3738 = vmatpush.msra.mxu3 %v4961_v53 }
0x1fd5   :  { %3697 = vmatpush.msra.mxu2 %v6278_v62 }
0x1fd6   :  { %3740 = vmatpush.msra.mxu3 %v4980_v59 }
0x1fd7   :  { %3700 = vmatpush.msra.mxu2 %v6279_v61 }
0x1fd8   :  { %3742 = vmatpush.msra.mxu3 %v5002_v2 }
0x1fd9   :  { %3703 = vmatpush.msra.mxu2 %v6280_v42 }
0x1fdb   :  { %3706 = vmatpush.msra.mxu2 %v6281_v41 }
0x1fdd   :  { %3709 = vmatpush.msra.mxu2 %v6282_v15 }
0x1fdf   :  { %3712 = vmatpush.msra.mxu2 %v6283_v7 }
0x203b   :  { %v3070_v39 = vpop.f32.mrf.mxu0 }
0x203d   :  { %v3101_v61 = vpop.f32.mrf.mxu1 }
0x203f   :  { %v3032_v54 = vpop.f32.mrf.mxu3 }
0x2047   :  { %v2971_v28 = vpop.f32.mrf.mxu2  ;;  %v3175_v37 = vpop.f32.mrf.mxu3 }
0x2048   :  { %v2972_v56 = vadd.f32 %v5770_v21, %v2971_v28 }
0x204a   :  { %v3033_v3 = vadd.f32 %v3032_v54, %v2972_v56 }
0x204c   :  { %v3071_v42 = vadd.f32 %v3070_v39, %v3033_v3 }
0x204e   :  { %v3102_v62 = vadd.f32 %v3101_v61, %v3071_v42 }
0x204f   :  { %v3146_v22 = vpop.f32.mrf.mxu2 }
0x2050   :  { %v3147_v41 = vadd.f32 %v3146_v22, %v3102_v62 }
0x2052   :  { %v3176_v15 = vadd.f32 %v3175_v37, %v3147_v41 }
0x2054   :  { %4661 = vtanh.f32 %v3176_v15  ;;  %v4541_v49 = vmul.f32 -1.442695, %v3176_v15 }
0x2056   :  { %4663 = vpow2.f32 %v4541_v49 }
0x205a   :  { %v4662_v7 = vpop.eup %4661 }
0x205b   :  { %3200 = vrot.lane.b32.xlu2 %v4662_v7, %s4725_s29 }
0x205c   :  { %v4664_v44 = vpop.eup %4663 }
0x205d   :  { %v3181_v20 = vadd.f32 1.0, %v4664_v44  ;;  %v6285_v44 = vld [vmem:[#allocation4_spill] sm:$0xff] }
0x205f   :  { %4665 = vrcp.f32 %v3181_v20  ;;  %v3193_v61 = vand.u32 2147483648, %v3181_v20  ;;  %vm3187_vm3 = vweird.f32 %v3181_v20  ;;  %v3191_v22 = vand.u32 2147483647, %v3181_v20 }
0x2061   :  { %v3194_v62 = vor.u32 1.1754944e-38, %v3193_v61  ;;  %vm3192_vm5 = vcmp.eq.f32.partialorder %v3191_v22, 8.507059e+37  ;;  %v5789_v22 = vld [vmem:[%s6074_s1] sm:$0xff] }
0x2062   :  { %6287 = vst [vmem:[#allocation24_spill] sm:$0xff] %v5789_v22 }
0x2065   :  { %v4666_v31 = vpop.eup %4665 }
0x2066   :  { %v3183_v28 = vmul.f32 %v4666_v31, %v3181_v20  ;;  %vm3188_vm2 = vweird.f32 %v4666_v31 }
0x2067   :  { %vm3189_vm4 = vmor %vm3187_vm3, %vm3188_vm2 }
0x2068   :  { %v3184_v54 = vsub.f32 1.0, %v3183_v28 }
0x206a   :  { %v3185_v56 = vmul.f32 %v4666_v31, %v3184_v54 }
0x206c   :  { %v3186_v39 = vadd.f32 %v4666_v31, %v3185_v56 }
0x206e   :  { %v3190_v37 = vsel %vm3189_vm4, %v4666_v31, %v3186_v39 }
0x206f   :  { %v3195_v41 = vsel %vm3192_vm5, %v3194_v62, %v3190_v37 }
0x2070   :  { %v3198_v49 = vmul.f32 %v3195_v41, %v6285_v44 }
0x20b5   :  { %v3201_v42 = vpop.permute.xlu2 %3200 }
0x20b6   :  { %v3203_v15 = vmul.f32 %v3201_v42, %v3195_v41 }
0x20b8   :  { %3205 = vrot.lane.b32.xlu0 %v3203_v15, %s4724_s25 }
0x212a   :  { %v3206_v7 = vpop.permute.xlu0 %3205 }
0x212b   :  { %v5776_v3 = vadd.f32 %v3206_v7, %v3198_v49 }
0x212d   :  { %6286 = vst [vmem:[#allocation22_spill] sm:$0xff] %v5776_v3  ;;  %4667 = vtanh.f32 %v5776_v3 }
0x2133   :  { %v4668_v28 = vpop.eup %4667 }
0x2134   :  { %3211 = vrot.lane.b32.xlu1 %v4668_v28, %s4725_s29  ;;  %v6289_v28 = vld [vmem:[#allocation37_spill] sm:$0xff] }
0x21a6   :  { %v3212_v20 = vpop.permute.xlu1 %3211 }
0x21a7   :  { %v5780_v54 = vmul.f32 %v3212_v20, %v3195_v41  ;;  %v5796_v41 = vld [vmem:[%s6074_s1 + $0x8] sm:$0xff] }
0x21a8   :  { %6288 = vst [vmem:[#allocation26_spill] sm:$0xff] %v5796_v41 }
0x21a9   :  { %v3217_v31 = vperm.slane %v5780_v54, 0  ;;  %v3216_v56 = vrot.slane %v5780_v54, 1 }
0x21ab   :  { %3219 = vrot.lane.b32.xlu2 %v3217_v31, %s4724_s25  ;;  %v3218_v39 = vperm.slane %v3216_v56, 0 }
0x21ad   :  { %3221 = vrot.lane.b32.xlu0 %v3218_v39, %s4724_s25 }
0x2205   :  { %v3220_v61 = vpop.permute.xlu2 %3219 }
0x2206   :  { %v3225_v37 = vmul.f32 %v5789_v22, %v3220_v61 }
0x2208   :  { %v3227_v62 = vsel %vm339_vm6, %v3225_v37, 0.0 }
0x2209   :  { %3228 = vadd.xlane.f32.xlu1 %v3227_v62 }
0x221f   :  { %v3222_v42 = vpop.permute.xlu0 %3221 }
0x2220   :  { %v3226_v15 = vmul.f32 %v5796_v41, %v3222_v42 }
0x2222   :  { %v3230_v44 = vsel %vm339_vm6, %v3226_v15, 0.0 }
0x2223   :  { %3231 = vadd.xlane.f32.xlu2 %v3230_v44 }
0x227c   :  { %v3229_v49 = vpop.xlane.xlu1 %3228 }
0x227d   :  { %v3235_v20 = vperm.slane %v3229_v49, %v6289_v28 }
0x2296   :  { %v3232_v7 = vpop.xlane.xlu2 %3231 }
0x2297   :  { %v3236_v31 = vperm.slane %v3232_v7, %v6289_v28 }
0x2299   :  { %v3237_v56 = vsel %vm650_vm12, %v3236_v31, %v3235_v20 }
0x229a   :  { %v3239_v39 = vsel %vm653_vm13, %v3237_v56, -inf }
0x229b   :  { %3240 = vmax.xlane.f32.xlu0 %v3239_v39 }
0x230e   :  { %v3241_v61 = vpop.xlane.xlu0 %3240 }
0x230f   :  { %v3243_v37 = vperm.slane %v3241_v61, 0  ;;  %v3244_v62 = vperm.slane %v3241_v61, 1 }
0x2311   :  { %v3247_v22 = vsub.f32 %v3229_v49, %v3243_v37  ;;  %v3248_v3 = vsub.f32 %v3232_v7, %v3244_v62 }
0x2313   :  { %v3249_v42 = vmul.f32 1.442695, %v3247_v22  ;;  %v3251_v41 = vmul.f32 1.442695, %v3248_v3 }
0x2315   :  { %4669 = vpow2.f32 %v3249_v42  ;;  %v5813_v42 = vld [vmem:[%s6076_s2 + $0x8] sm:$0xff] }
0x2316   :  { %4671 = vpow2.f32 %v3251_v41  ;;  %6290 = vst [vmem:[#allocation28_spill] sm:$0xff] %v5813_v42 }
0x231b   :  { %v4670_v15 = vpop.eup %4669 }
0x231c   :  { %v4672_v44 = vpop.eup %4671  ;;  %3256 = vperm.xlu2 %4556, %v4670_v15  }
0x231d   :  { %3259 = vperm.xlu1 %4557, %v4672_v44  }
0x2325   :  { %3320 = vrot.lane.b32.xlu1 %v5721_v58, %s4727_s13 }
0x2376   :  { %v3257_v20 = vpop.permute.xlu2 %3256 }
0x2377   :  { %v3261_v56 = vperm.slane %v3257_v20, %v6289_v28 }
0x238f   :  { %v3260_v31 = vpop.permute.xlu1 %3259 }
0x2390   :  { %v3262_v39 = vperm.slane %v3260_v31, %v6289_v28 }
0x2392   :  { %v3263_v49 = vsel %vm650_vm12, %v3262_v39, %v3261_v56 }
0x2393   :  { %v3265_v22 = vsel %vm653_vm13, %v3263_v49, 0.0 }
0x2394   :  { %3266 = vadd.xlane.f32.xlu0 %v3265_v22 }
0x2407   :  { %v3267_v3 = vpop.xlane.xlu0 %3266 }
0x2408   :  { %4673 = vrcp.f32 %v3267_v3 }
0x240e   :  { %v4674_v41 = vpop.eup %4673 }
0x240f   :  { %v3271_v7 = vperm.slane %v4674_v41, 1  ;;  %v3270_v61 = vperm.slane %v4674_v41, 0 }
0x2411   :  { %v3275_v37 = vmul.f32 %v4672_v44, %v3271_v7  ;;  %v3274_v62 = vmul.f32 %v4670_v15, %v3270_v61  ;;  %v5820_v44 = vld [vmem:[%s6076_s2] sm:$0xff] }
0x2412   :  { %6291 = vst [vmem:[#allocation29_spill] sm:$0xff] %v5820_v44 }
0x2413   :  { %3283 = vperm.xlu2 %4556, %v3275_v37   ;;  %3278 = vperm.xlu0 %4558, %v3274_v62  }
0x246d   :  { %v3284_v58 = vpop.permute.xlu2 %3283 }
0x246e   :  { %v3287_v20 = vmul.f32 %v5813_v42, %v3284_v58 }
0x2470   :  { %v3295_v31 = vsel %vm72_vm0, %v3287_v20, 0.0 }
0x2471   :  { %v3296_v56 = vrot.slane %v3295_v31, 4 }
0x2473   :  { %v3297_v39 = vadd.f32 %v3296_v56, %v3295_v31  ;;  %v3321_v56 = vpop.permute.xlu1 %3320 }
0x2475   :  { %v3298_v22 = vrot.slane %v3297_v39, 2 }
0x2477   :  { %v3299_v7 = vadd.f32 %v3298_v22, %v3297_v39  ;;  %v4543_v22 = vld [vmem:[%s6071_s0 + $0xc] sm:$0x3] }
0x2479   :  { %v3300_v62 = vrot.slane %v3299_v7, 1 }
0x247b   :  { %v3301_v42 = vadd.f32 %v3300_v62, %v3299_v7 }
0x2485   :  { %v3279_v49 = vpop.permute.xlu0 %3278 }
0x2486   :  { %v3286_v15 = vmul.f32 %v5820_v44, %v3279_v49 }
0x2488   :  { %v3288_v3 = vsel %vm72_vm0, %v3286_v15, 0.0 }
0x2489   :  { %v3289_v41 = vrot.slane %v3288_v3, 4 }
0x248b   :  { %v3290_v61 = vadd.f32 %v3289_v41, %v3288_v3 }
0x248d   :  { %v3291_v37 = vrot.slane %v3290_v61, 2 }
0x248f   :  { %v3292_v58 = vadd.f32 %v3291_v37, %v3290_v61 }
0x2491   :  { %v3293_v20 = vrot.slane %v3292_v58, 1 }
0x2493   :  { %v3294_v31 = vadd.f32 %v3293_v20, %v3292_v58 }
0x2495   :  { %v3318_v28 = vsel %vm650_vm12, %v3301_v42, %v3294_v31 }
0x2496   :  { %v3323_v21 = vsel %vm72_vm0, %v3318_v28, %v3321_v56 }
0x2497   :  { %v3325_v40 = vsel %vm74_vm1, %v3323_v21, 0 }
0x2498   :  { %v3349_v49 = vand.u32 4294901760, %v3325_v40 }
0x249a   :  { %v3350_v44 = vsub.f32 %v3325_v40, %v3349_v49  ;;  %3405 = vmatmul.f32.vlgmr.msrb.gmra.mxu1 %v3349_v49  ;;  %3507 = vmatmul.f32.vlgmr.msrb.gmra.mxu2 %v3349_v49 }
0x249b   :  { %3534 = vmatmul.f32.vlgmr.msrb.gmra.mxu3 %v3349_v49  ;;  %3633 = vmatpush.msrb.mxu1 %v6247_v23 }
0x249c   :  { %v3351_v39 = vand.u32 4294901760, %v3350_v44  ;;  %4019 = vmatpush.msrb.mxu3 %v4850_v24  ;;  %3984 = vmatpush.msrb.mxu2 %v4790_v4 }
0x249d   :  { %3639 = vmatpush.msrb.mxu1 %v6248_v8 }
0x249e   :  { %v3352_v15 = vsub.f32 %v3350_v44, %v3351_v39  ;;  %4025 = vmatpush.msrb.mxu3 %v4852_v25  ;;  %3986 = vmatpush.msrb.mxu2 %v4792_v5 }
0x249f   :  { %3645 = vmatpush.msrb.mxu1 %v6249_v34 }
0x24a0   :  { %v3353_v40 = vand.u32 4294901760, %v3352_v15  ;;  %4031 = vmatpush.msrb.mxu3 %v4860_v27  ;;  %3988 = vmatpush.msrb.mxu2 %v4794_v6 }
0x24a1   :  { %3651 = vmatpush.msrb.mxu1 %v6250_v36 }
0x24a2   :  { %3354 = vmatmul.f32.vlgmr.msrb.gmra.mxu0 %v3353_v40  ;;  %3468 = vmatmul.f32.vlgmr.msra.gmra.mxu1 %v3351_v39 }
0x24a3   :  { %3596 = vmatpush.msrb.mxu0 %v4942_v45  ;;  %3657 = vmatpush.msrb.mxu1 %v6251_v55 }
0x24a4   :  { %4037 = vmatpush.msrb.mxu3 %v4868_v29  ;;  %3990 = vmatpush.msrb.mxu2 %v4802_v9 }
0x24a5   :  { %3598 = vmatpush.msrb.mxu0 %v4944_v46  ;;  %3663 = vmatpush.msrb.mxu1 %v6252_v33 }
0x24a6   :  { %4043 = vmatpush.msrb.mxu3 %v4872_v30  ;;  %3992 = vmatpush.msrb.mxu2 %v4804_v10 }
0x24a7   :  { %3600 = vmatpush.msrb.mxu0 %v4946_v47  ;;  %3669 = vmatpush.msrb.mxu1 %v6253_v38 }
0x24a8   :  { %4049 = vmatpush.msrb.mxu3 %v6210_v14  ;;  %3994 = vmatpush.msrb.mxu2 %v4879_v32 }
0x24a9   :  { %3602 = vmatpush.msrb.mxu0 %v4957_v51  ;;  %3675 = vmatpush.msrb.mxu1 %v6254_v19 }
0x24aa   :  { %3439 = vmatmul.f32.vlgmr.msra.gmra.mxu0 %v3350_v44 }
0x24ab   :  { %3804 = vmatpush.msra.mxu1 %v4942_v45  ;;  %3604 = vmatpush.msrb.mxu0 %v4959_v52 }
0x24ad   :  { %3806 = vmatpush.msra.mxu1 %v4944_v46  ;;  %3606 = vmatpush.msrb.mxu0 %v4961_v53 }
0x24af   :  { %3808 = vmatpush.msra.mxu1 %v4946_v47  ;;  %3608 = vmatpush.msrb.mxu0 %v4980_v59 }
0x24b1   :  { %3810 = vmatpush.msra.mxu1 %v4957_v51  ;;  %3610 = vmatpush.msrb.mxu0 %v5002_v2 }
0x24b3   :  { %3761 = vmatpush.msra.mxu0 %v4992_v63  ;;  %3812 = vmatpush.msra.mxu1 %v4959_v52 }
0x24b5   :  { %3765 = vmatpush.msra.mxu0 %v4995_v0  ;;  %3814 = vmatpush.msra.mxu1 %v4961_v53 }
0x24b7   :  { %3769 = vmatpush.msra.mxu0 %v4998_v1  ;;  %3816 = vmatpush.msra.mxu1 %v4980_v59 }
0x24b9   :  { %3773 = vmatpush.msra.mxu0 %v6269_v48  ;;  %3818 = vmatpush.msra.mxu1 %v5002_v2 }
0x24bb   :  { %3777 = vmatpush.msra.mxu0 %v6270_v57 }
0x24bd   :  { %3781 = vmatpush.msra.mxu0 %v6271_v18 }
0x24bf   :  { %3785 = vmatpush.msra.mxu0 %v6272_v60 }
0x24c1   :  { %3789 = vmatpush.msra.mxu0 %v6273_v50 }
0x2517   :  { %v3406_v24 = vpop.f32.mrf.mxu1 }
0x251d   :  { %v3508_v28 = vpop.f32.mrf.mxu2 }
0x251e   :  { %v3535_v44 = vpop.f32.mrf.mxu3 }
0x251f   :  { %v3355_v25 = vpop.f32.mrf.mxu0  ;;  %v3469_v14 = vpop.f32.mrf.mxu1 }
0x2520   :  { %v3407_v27 = vadd.f32 %v3406_v24, %v3355_v25 }
0x2527   :  { %v3440_v29 = vpop.f32.mrf.mxu0 }
0x2528   :  { %v3441_v30 = vadd.f32 %v3440_v29, %v3407_v27 }
0x252a   :  { %v3470_v21 = vadd.f32 %v3469_v14, %v3441_v30 }
0x252c   :  { %v3509_v42 = vadd.f32 %v3508_v28, %v3470_v21 }
0x252e   :  { %v3536_v3 = vadd.f32 %v3535_v44, %v3509_v42 }
0x2530   :  { %v3538_v41 = vadd.f32 %v4543_v22, %v3536_v3 }
0x2532   :  { %4675 = vtanh.f32 %v3538_v41  ;;  %v4544_v61 = vmul.f32 -1.442695, %v3538_v41 }
0x2534   :  { %4677 = vpow2.f32 %v4544_v61 }
0x2538   :  { %v4676_v7 = vpop.eup %4675 }
0x2539   :  { %3561 = vrot.lane.b32.xlu2 %v4676_v7, %s4725_s29 }
0x253a   :  { %v4678_v37 = vpop.eup %4677 }
0x253b   :  { %v3542_v62 = vadd.f32 1.0, %v4678_v37 }
0x253d   :  { %4679 = vrcp.f32 %v3542_v62  ;;  %v3554_v39 = vand.u32 2147483648, %v3542_v62  ;;  %vm3548_vm9 = vweird.f32 %v3542_v62  ;;  %v3552_v15 = vand.u32 2147483647, %v3542_v62 }
0x253f   :  { %v3555_v24 = vor.u32 1.1754944e-38, %v3554_v39  ;;  %vm3553_vm11 = vcmp.eq.f32.partialorder %v3552_v15, 8.507059e+37 }
0x2543   :  { %v4680_v58 = vpop.eup %4679 }
0x2544   :  { %v3544_v20 = vmul.f32 %v4680_v58, %v3542_v62  ;;  %vm3549_vm8 = vweird.f32 %v4680_v58 }
0x2545   :  { %vm3550_vm10 = vmor %vm3548_vm9, %vm3549_vm8 }
0x2546   :  { %v3545_v31 = vsub.f32 1.0, %v3544_v20 }
0x2548   :  { %v3546_v56 = vmul.f32 %v4680_v58, %v3545_v31 }
0x254a   :  { %v3547_v49 = vadd.f32 %v4680_v58, %v3546_v56  ;;  %v6305_v56 = vld [vmem:[#allocation21_spill] sm:$0xff] }
0x254c   :  { %v3551_v40 = vsel %vm3550_vm10, %v4680_v58, %v3547_v49 }
0x254d   :  { %v3556_v27 = vsel %vm3553_vm11, %v3555_v24, %v3551_v40 }
0x254e   :  { %v3559_v30 = vmul.f32 %v3556_v27, %v5717_v26 }
0x2593   :  { %v3562_v25 = vpop.permute.xlu2 %3561 }
0x2594   :  { %v3564_v29 = vmul.f32 %v3562_v25, %v3556_v27 }
0x2596   :  { %3566 = vrot.lane.b32.xlu1 %v3564_v29, %s4724_s25 }
0x259e   :  { %3580 = vrot.lane.b32.xlu1 %v5780_v54, %s4725_s29 }
0x2608   :  { %v3567_v14 = vpop.permute.xlu1 %3566 }
0x2609   :  { %v5879_v21 = vadd.f32 %v3567_v14, %v3559_v30 }
0x260b   :  { %4681 = vtanh.f32 %v5879_v21 }
0x2610   :  { %v3581_v22 = vpop.permute.xlu1 %3580 }
0x2611   :  { %v4682_v28 = vpop.eup %4681 }
0x2612   :  { %3572 = vrot.lane.b32.xlu0 %v4682_v28, %s4725_s29 }
0x2684   :  { %v3573_v42 = vpop.permute.xlu0 %3572 }
0x2685   :  { %v5883_v44 = vmul.f32 %v3573_v42, %v3556_v27 }
0x2687   :  { %3577 = vrot.lane.b32.xlu2 %v5883_v44, %s4724_s25 }
0x26e1   :  { %v3578_v3 = vpop.permute.xlu2 %3577 }
0x26e2   :  { %v3583_v41 = vsel %vm339_vm6, %v3578_v3, %v3581_v22 }
0x26e3   :  { %v3585_v26 = vsel %vm344_vm7, %v3583_v41, 0 }
0x26e4   :  { %v3611_v7 = vand.u32 4294901760, %v3585_v26 }
0x26e6   :  { %v3612_v61 = vsub.f32 %v3585_v26, %v3611_v7  ;;  %3677 = vmatmul.f32.vlgmr.msrb.gmra.mxu1 %v3611_v7 }
0x26e7   :  { %4168 = vmatpush.msrb.mxu1 %v4790_v4 }
0x26e8   :  { %3715 = vmatmul.f32.vlgmr.msra.gmra.mxu2 %v3612_v61  ;;  %v3613_v37 = vand.u32 4294901760, %v3612_v61 }
0x26e9   :  { %4170 = vmatpush.msrb.mxu1 %v4792_v5  ;;  %4067 = vmatpush.msra.mxu2 %v4807_v11  ;;  %v6296_v11 = vld [vmem:[#allocation8_spill] sm:$0xff] }
0x26ea   :  { %3746 = vmatmul.f32.vlgmr.msra.gmra.mxu3 %v3613_v37  ;;  %v3614_v62 = vsub.f32 %v3612_v61, %v3613_v37 }
0x26eb   :  { %4172 = vmatpush.msrb.mxu1 %v4794_v6  ;;  %4100 = vmatpush.msra.mxu3 %v4790_v4  ;;  %v6292_v4 = vld [vmem:[#allocation3_spill] sm:$0xff] }
0x26ec   :  { %v3615_v58 = vand.u32 4294901760, %v3614_v62  ;;  %4070 = vmatpush.msra.mxu2 %v4810_v12  ;;  %v6297_v12 = vld [vmem:[#allocation11_spill] sm:$0xff] }
0x26ed   :  { %4174 = vmatpush.msrb.mxu1 %v4802_v9  ;;  %4102 = vmatpush.msra.mxu3 %v4792_v5  ;;  %v6293_v5 = vld [vmem:[#allocation5_spill] sm:$0xff] }
0x26ee   :  { %3616 = vmatmul.f32.vlgmr.msrb.gmra.mxu0 %v3615_v58  ;;  %3820 = vmatmul.f32.vlgmr.msra.gmra.mxu1 %v3611_v7 }
0x26ef   :  { %4131 = vmatpush.msrb.mxu0 %v4824_v16  ;;  %4176 = vmatpush.msrb.mxu1 %v4804_v10  ;;  %v6300_v16 = vld [vmem:[#allocation14_spill] sm:$0xff] }
0x26f0   :  { %4104 = vmatpush.msra.mxu3 %v4794_v6  ;;  %4073 = vmatpush.msra.mxu2 %v4813_v13  ;;  %v6294_v6 = vld [vmem:[#allocation6_spill] sm:$0xff]  ;;  %v6299_v13 = vld [vmem:[#allocation13_spill] sm:$0xff] }
0x26f1   :  { %4135 = vmatpush.msrb.mxu0 %v4827_v17  ;;  %4178 = vmatpush.msrb.mxu1 %v4879_v32  ;;  %v6301_v17 = vld [vmem:[#allocation15_spill] sm:$0xff] }
0x26f2   :  { %4106 = vmatpush.msra.mxu3 %v4802_v9  ;;  %4076 = vmatpush.msra.mxu2 %v6212_v35  ;;  %v6295_v9 = vld [vmem:[#allocation7_spill] sm:$0xff]  ;;  %v6303_v35 = vld [vmem:[#allocation18_spill] sm:$0xff] }
0x26f3   :  { %4139 = vmatpush.msrb.mxu0 %v6232_v43  ;;  %4374 = vmatpush.msra.mxu1 %v4942_v45  ;;  %v6304_v43 = vld [vmem:[#allocation23_spill] sm:$0xff] }
0x26f4   :  { %4108 = vmatpush.msra.mxu3 %v4804_v10  ;;  %4079 = vmatpush.msra.mxu2 %v6292_v4  ;;  %v6298_v10 = vld [vmem:[#allocation12_spill] sm:$0xff] }
0x26f5   :  { %4143 = vmatpush.msrb.mxu0 %v6293_v5  ;;  %4376 = vmatpush.msra.mxu1 %v4944_v46 }
0x26f6   :  { %3791 = vmatmul.f32.vlgmr.msra.gmra.mxu0 %v3611_v7  ;;  %4110 = vmatpush.msra.mxu3 %v4879_v32  ;;  %v6302_v32 = vld [vmem:[#allocation16_spill] sm:$0xff] }
0x26f7   :  { %4147 = vmatpush.msrb.mxu0 %v6294_v6  ;;  %4082 = vmatpush.msra.mxu2 %v6295_v9 }
0x26f8   :  { %4378 = vmatpush.msra.mxu1 %v4946_v47 }
0x26f9   :  { %4151 = vmatpush.msrb.mxu0 %v6296_v11 }
0x26fa   :  { %4380 = vmatpush.msra.mxu1 %v4957_v51 }
0x26fb   :  { %4337 = vmatpush.msra.mxu0 %v6297_v12  ;;  %v6306_v12 = vld [vmem:[#allocation22_spill] sm:$0xff] }
0x26fc   :  { %4382 = vmatpush.msra.mxu1 %v4959_v52 }
0x26fd   :  { %4340 = vmatpush.msra.mxu0 %v6298_v10 }
0x26fe   :  { %4384 = vmatpush.msra.mxu1 %v4961_v53 }
0x26ff   :  { %4343 = vmatpush.msra.mxu0 %v6299_v13 }
0x2700   :  { %4386 = vmatpush.msra.mxu1 %v4980_v59 }
0x2701   :  { %4346 = vmatpush.msra.mxu0 %v6300_v16 }
0x2702   :  { %4388 = vmatpush.msra.mxu1 %v5002_v2 }
0x2703   :  { %4349 = vmatpush.msra.mxu0 %v6301_v17 }
0x2705   :  { %4352 = vmatpush.msra.mxu0 %v6302_v32 }
0x2707   :  { %4355 = vmatpush.msra.mxu0 %v6303_v35 }
0x2709   :  { %4358 = vmatpush.msra.mxu0 %v6304_v43 }
0x2763   :  { %v3678_v20 = vpop.f32.mrf.mxu1 }
0x276b   :  { %v3617_v31 = vpop.f32.mrf.mxu0  ;;  %v3716_v15 = vpop.f32.mrf.mxu2 }
0x276c   :  { %v3618_v49 = vadd.f32 %v6305_v56, %v3617_v31  ;;  %v3821_v30 = vpop.f32.mrf.mxu1 }
0x276d   :  { %v3747_v24 = vpop.f32.mrf.mxu3 }
0x276e   :  { %v3679_v39 = vadd.f32 %v3678_v20, %v3618_v49 }
0x2770   :  { %v3717_v40 = vadd.f32 %v3716_v15, %v3679_v39  ;;  %v6307_v39 = vld [vmem:[#allocation26_spill] sm:$0xff] }
0x2772   :  { %v3748_v25 = vadd.f32 %v3747_v24, %v3717_v40 }
0x2773   :  { %v3792_v27 = vpop.f32.mrf.mxu0 }
0x2774   :  { %v3793_v29 = vadd.f32 %v3792_v27, %v3748_v25  ;;  %v6308_v25 = vld [vmem:[#allocation24_spill] sm:$0xff] }
0x2776   :  { %v3822_v14 = vadd.f32 %v3821_v30, %v3793_v29 }
0x2778   :  { %4683 = vtanh.f32 %v3822_v14  ;;  %v4545_v42 = vmul.f32 -1.442695, %v3822_v14 }
0x277a   :  { %4685 = vpow2.f32 %v4545_v42 }
0x277e   :  { %v4684_v28 = vpop.eup %4683 }
0x277f   :  { %3846 = vrot.lane.b32.xlu0 %v4684_v28, %s4725_s29  ;;  %v6309_v28 = vld [vmem:[#allocation37_spill] sm:$0xff] }
0x2780   :  { %v4686_v22 = vpop.eup %4685 }
0x2781   :  { %v3827_v3 = vadd.f32 1.0, %v4686_v22 }
0x2783   :  { %4687 = vrcp.f32 %v3827_v3  ;;  %v3839_v62 = vand.u32 2147483648, %v3827_v3  ;;  %vm3833_vm2 = vweird.f32 %v3827_v3  ;;  %v3837_v58 = vand.u32 2147483647, %v3827_v3 }
0x2785   :  { %v3840_v5 = vor.u32 1.1754944e-38, %v3839_v62  ;;  %vm3838_vm4 = vcmp.eq.f32.partialorder %v3837_v58, 8.507059e+37 }
0x2789   :  { %v4688_v41 = vpop.eup %4687 }
0x278a   :  { %v3829_v26 = vmul.f32 %v4688_v41, %v3827_v3  ;;  %vm3834_vm15 = vweird.f32 %v4688_v41 }
0x278b   :  { %vm3835_vm3 = vmor %vm3833_vm2, %vm3834_vm15 }
0x278c   :  { %v3830_v7 = vsub.f32 1.0, %v3829_v26 }
0x278e   :  { %v3831_v61 = vmul.f32 %v4688_v41, %v3830_v7 }
0x2790   :  { %v3832_v37 = vadd.f32 %v4688_v41, %v3831_v61 }
0x2792   :  { %v3836_v4 = vsel %vm3835_vm3, %v4688_v41, %v3832_v37 }
0x2793   :  { %v3841_v9 = vsel %vm3838_vm4, %v3840_v5, %v3836_v4 }
0x2794   :  { %v3844_v10 = vmul.f32 %v3841_v9, %v6306_v12 }
0x27f1   :  { %v3847_v6 = vpop.permute.xlu0 %3846 }
0x27f2   :  { %v3849_v11 = vmul.f32 %v3847_v6, %v3841_v9 }
0x27f4   :  { %3851 = vrot.lane.b32.xlu2 %v3849_v11, %s4724_s25 }
0x284e   :  { %v3852_v13 = vpop.permute.xlu2 %3851 }
0x284f   :  { %v5933_v16 = vadd.f32 %v3852_v13, %v3844_v10 }
0x2851   :  { %4689 = vtanh.f32 %v5933_v16 }
0x2857   :  { %v4690_v17 = vpop.eup %4689 }
0x2858   :  { %3857 = vrot.lane.b32.xlu1 %v4690_v17, %s4725_s29 }
0x28ca   :  { %v3858_v32 = vpop.permute.xlu1 %3857 }
0x28cb   :  { %v5937_v35 = vmul.f32 %v3858_v32, %v3841_v9 }
0x28cd   :  { %v3863_v43 = vperm.slane %v5937_v35, 0  ;;  %v3862_v20 = vrot.slane %v5937_v35, 1 }
0x28cf   :  { %3865 = vrot.lane.b32.xlu0 %v3863_v43, %s4724_s25  ;;  %v3864_v31 = vperm.slane %v3862_v20, 0 }
0x28d1   :  { %3867 = vrot.lane.b32.xlu2 %v3864_v31, %s4724_s25 }
0x292b   :  { %v3868_v49 = vpop.permute.xlu2 %3867 }
0x292c   :  { %v3872_v15 = vmul.f32 %v6307_v39, %v3868_v49 }
0x292e   :  { %v3876_v40 = vsel %vm339_vm6, %v3872_v15, 0.0  ;;  %v6310_v15 = vld [vmem:[#allocation29_spill] sm:$0xff] }
0x292f   :  { %3877 = vadd.xlane.f32.xlu0 %v3876_v40 }
0x2941   :  { %v3866_v24 = vpop.permute.xlu0 %3865 }
0x2942   :  { %v3871_v27 = vmul.f32 %v6308_v25, %v3866_v24 }
0x2944   :  { %v3873_v29 = vsel %vm339_vm6, %v3871_v27, 0.0 }
0x2945   :  { %3874 = vadd.xlane.f32.xlu1 %v3873_v29 }
0x29a2   :  { %v3878_v30 = vpop.xlane.xlu0 %3877 }
0x29a3   :  { %v3882_v42 = vperm.slane %v3878_v30, %v6309_v28 }
0x29b8   :  { %v3875_v14 = vpop.xlane.xlu1 %3874 }
0x29b9   :  { %v3881_v22 = vperm.slane %v3875_v14, %v6309_v28 }
0x29bb   :  { %v3883_v3 = vsel %vm650_vm12, %v3882_v42, %v3881_v22 }
0x29bc   :  { %v3885_v41 = vsel %vm653_vm13, %v3883_v3, -inf }
0x29bd   :  { %3886 = vmax.xlane.f32.xlu2 %v3885_v41 }
0x2a30   :  { %v3887_v26 = vpop.xlane.xlu2 %3886 }
0x2a31   :  { %v3889_v7 = vperm.slane %v3887_v26, 0  ;;  %v3890_v61 = vperm.slane %v3887_v26, 1 }
0x2a33   :  { %v3893_v37 = vsub.f32 %v3875_v14, %v3889_v7  ;;  %v3894_v62 = vsub.f32 %v3878_v30, %v3890_v61  ;;  %v6311_v30 = vld [vmem:[#allocation28_spill] sm:$0xff] }
0x2a35   :  { %v3895_v58 = vmul.f32 1.442695, %v3893_v37  ;;  %v3897_v4 = vmul.f32 1.442695, %v3894_v62 }
0x2a37   :  { %4691 = vpow2.f32 %v3895_v58 }
0x2a38   :  { %4693 = vpow2.f32 %v3897_v4 }
0x2a3d   :  { %v4692_v5 = vpop.eup %4691 }
0x2a3e   :  { %v4694_v6 = vpop.eup %4693  ;;  %3902 = vperm.xlu1 %4557, %v4692_v5  }
0x2a3f   :  { %3905 = vperm.xlu0 %4558, %v4694_v6  }
0x2a46   :  { %3966 = vrot.lane.b32.xlu1 %v5883_v44, %s4727_s13 }
0x2ab0   :  { %v3903_v9 = vpop.permute.xlu1 %3902 }
0x2ab1   :  { %v3906_v11 = vpop.permute.xlu0 %3905  ;;  %v3907_v12 = vperm.slane %v3903_v9, %v6309_v28 }
0x2ab2   :  { %v3908_v10 = vperm.slane %v3906_v11, %v6309_v28 }
0x2ab4   :  { %v3909_v13 = vsel %vm650_vm12, %v3908_v10, %v3907_v12 }
0x2ab5   :  { %v3911_v17 = vsel %vm653_vm13, %v3909_v13, 0.0 }
0x2ab6   :  { %3912 = vadd.xlane.f32.xlu2 %v3911_v17 }
0x2ab8   :  { %v3967_v4 = vpop.permute.xlu1 %3966 }
0x2b29   :  { %v3913_v32 = vpop.xlane.xlu2 %3912 }
0x2b2a   :  { %4695 = vrcp.f32 %v3913_v32 }
0x2b30   :  { %v4696_v43 = vpop.eup %4695 }
0x2b31   :  { %v3917_v20 = vperm.slane %v4696_v43, 1  ;;  %v3916_v31 = vperm.slane %v4696_v43, 0 }
0x2b33   :  { %v3921_v49 = vmul.f32 %v4694_v6, %v3917_v20  ;;  %v3920_v39 = vmul.f32 %v4692_v5, %v3916_v31 }
0x2b35   :  { %3929 = vperm.xlu0 %4558, %v3921_v49   ;;  %3924 = vperm.xlu2 %4556, %v3920_v39  }
0x2b8f   :  { %v3925_v44 = vpop.permute.xlu2 %3924 }
0x2b90   :  { %v3932_v40 = vmul.f32 %v6310_v15, %v3925_v44 }
0x2b92   :  { %v3934_v24 = vsel %vm72_vm0, %v3932_v40, 0.0 }
0x2b93   :  { %v3935_v25 = vrot.slane %v3934_v24, 4 }
0x2b95   :  { %v3936_v27 = vadd.f32 %v3935_v25, %v3934_v24 }
0x2b97   :  { %v3937_v28 = vrot.slane %v3936_v27, 2 }
0x2b99   :  { %v3938_v3 = vadd.f32 %v3937_v28, %v3936_v27 }
0x2b9b   :  { %v3939_v7 = vrot.slane %v3938_v3, 1 }
0x2b9d   :  { %v3940_v62 = vadd.f32 %v3939_v7, %v3938_v3 }
0x2ba7   :  { %v3930_v29 = vpop.permute.xlu0 %3929 }
0x2ba8   :  { %v3933_v14 = vmul.f32 %v6311_v30, %v3930_v29 }
0x2baa   :  { %v3941_v42 = vsel %vm72_vm0, %v3933_v14, 0.0 }
0x2bab   :  { %v3942_v22 = vrot.slane %v3941_v42, 4 }
0x2bad   :  { %v3943_v41 = vadd.f32 %v3942_v22, %v3941_v42 }
0x2baf   :  { %v3944_v26 = vrot.slane %v3943_v41, 2 }
0x2bb1   :  { %v3945_v61 = vadd.f32 %v3944_v26, %v3943_v41 }
0x2bb3   :  { %v3946_v37 = vrot.slane %v3945_v61, 1 }
0x2bb5   :  { %v3947_v58 = vadd.f32 %v3946_v37, %v3945_v61 }
0x2bb7   :  { %v3964_v5 = vsel %vm650_vm12, %v3947_v58, %v3940_v62 }
0x2bb8   :  { %v3969_v6 = vsel %vm72_vm0, %v3964_v5, %v3967_v4 }
0x2bb9   :  { %v3971_v9 = vsel %vm74_vm1, %v3969_v6, 0 }
0x2bba   :  { %v3995_v11 = vand.u32 4294901760, %v3971_v9 }
0x2bbc   :  { %v3996_v12 = vsub.f32 %v3971_v9, %v3995_v11  ;;  %4051 = vmatmul.f32.vlgmr.msrb.gmra.mxu3 %v3995_v11  ;;  %4153 = vmatmul.f32.vlgmr.msrb.gmra.mxu0 %v3995_v11 }
0x2bbd   :  { %4180 = vmatmul.f32.vlgmr.msrb.gmra.mxu1 %v3995_v11  ;;  %4279 = vmatpush.msrb.mxu3 %v6247_v23 }
0x2bbe   :  { %v3997_v10 = vand.u32 4294901760, %v3996_v12 }
0x2bbf   :  { %4285 = vmatpush.msrb.mxu3 %v6248_v8 }
0x2bc0   :  { %v3998_v13 = vsub.f32 %v3996_v12, %v3997_v10 }
0x2bc1   :  { %4291 = vmatpush.msrb.mxu3 %v6249_v34 }
0x2bc2   :  { %v3999_v17 = vand.u32 4294901760, %v3998_v13 }
0x2bc3   :  { %4297 = vmatpush.msrb.mxu3 %v6250_v36 }
0x2bc4   :  { %4000 = vmatmul.f32.vlgmr.msrb.gmra.mxu2 %v3999_v17  ;;  %4114 = vmatmul.f32.vlgmr.msra.gmra.mxu3 %v3997_v10  ;;  %v6312_v10 = vld [vmem:[#allocation34_spill] sm:$0xff] }
0x2bc5   :  { %4242 = vmatpush.msrb.mxu2 %v4942_v45  ;;  %4303 = vmatpush.msrb.mxu3 %v6251_v55  ;;  %v717_v13 = vpack.c.bf16 %v6312_v10, %v6312_v10 }
0x2bc7   :  { %4244 = vmatpush.msrb.mxu2 %v4944_v46  ;;  %4309 = vmatpush.msrb.mxu3 %v6252_v33  ;;  %v719_v17 = vrot.slane %v717_v13, 3 }
0x2bc9   :  { %4246 = vmatpush.msrb.mxu2 %v4946_v47  ;;  %4315 = vmatpush.msrb.mxu3 %v6253_v38 }
0x2bcb   :  { %4248 = vmatpush.msrb.mxu2 %v4957_v51  ;;  %4321 = vmatpush.msrb.mxu3 %v6254_v19 }
0x2bcc   :  { %4085 = vmatmul.f32.vlgmr.msra.gmra.mxu2 %v3996_v12 }
0x2bcd   :  { %4450 = vmatpush.msra.mxu3 %v4942_v45  ;;  %4250 = vmatpush.msrb.mxu2 %v4959_v52 }
0x2bcf   :  { %4452 = vmatpush.msra.mxu3 %v4944_v46  ;;  %4252 = vmatpush.msrb.mxu2 %v4961_v53 }
0x2bd1   :  { %4454 = vmatpush.msra.mxu3 %v4946_v47  ;;  %4254 = vmatpush.msrb.mxu2 %v4980_v59 }
0x2bd3   :  { %4456 = vmatpush.msra.mxu3 %v4957_v51  ;;  %4256 = vmatpush.msrb.mxu2 %v5002_v2 }
0x2bd5   :  { %4407 = vmatpush.msra.mxu2 %v4992_v63  ;;  %4458 = vmatpush.msra.mxu3 %v4959_v52 }
0x2bd7   :  { %4411 = vmatpush.msra.mxu2 %v4995_v0  ;;  %4460 = vmatpush.msra.mxu3 %v4961_v53 }
0x2bd9   :  { %4415 = vmatpush.msra.mxu2 %v4998_v1  ;;  %4462 = vmatpush.msra.mxu3 %v4980_v59 }
0x2bdb   :  { %4419 = vmatpush.msra.mxu2 %v6269_v48  ;;  %4464 = vmatpush.msra.mxu3 %v5002_v2  ;;  %v4547_v2 = vld [vmem:[%s6071_s0 + $0xe] sm:$0x3] }
0x2bdd   :  { %4423 = vmatpush.msra.mxu2 %v6270_v57 }
0x2bdf   :  { %4427 = vmatpush.msra.mxu2 %v6271_v18 }
0x2be1   :  { %4431 = vmatpush.msra.mxu2 %v6272_v60 }
0x2be3   :  { %4435 = vmatpush.msra.mxu2 %v6273_v50 }
0x2c39   :  { %v4154_v59 = vpop.f32.mrf.mxu0 }
0x2c3a   :  { %v4181_v1 = vpop.f32.mrf.mxu1 }
0x2c3f   :  { %v4052_v45 = vpop.f32.mrf.mxu3 }
0x2c47   :  { %v4001_v46 = vpop.f32.mrf.mxu2  ;;  %v4115_v53 = vpop.f32.mrf.mxu3 }
0x2c48   :  { %v4053_v47 = vadd.f32 %v4052_v45, %v4001_v46  ;;  %v6313_v45 = vld [vmem:[#allocation9_spill] sm:$0xff] }
0x2c49   :  { %v2656_v46 = vpack.c.bf16 %v6313_v45, %v6313_v45 }
0x2c4f   :  { %v4086_v51 = vpop.f32.mrf.mxu2 }
0x2c50   :  { %v4087_v52 = vadd.f32 %v4086_v51, %v4053_v47  ;;  %v2658_v47 = vrot.slane %v2656_v46, 3 }
0x2c52   :  { %v4116_v63 = vadd.f32 %v4115_v53, %v4087_v52 }
0x2c54   :  { %v4155_v0 = vadd.f32 %v4154_v59, %v4116_v63 }
0x2c56   :  { %v4182_v23 = vadd.f32 %v4181_v1, %v4155_v0 }
0x2c58   :  { %v4184_v8 = vadd.f32 %v4547_v2, %v4182_v23 }
0x2c5a   :  { %4697 = vtanh.f32 %v4184_v8  ;;  %v4548_v36 = vmul.f32 -1.442695, %v4184_v8 }
0x2c5c   :  { %4699 = vpow2.f32 %v4548_v36 }
0x2c60   :  { %v4698_v34 = vpop.eup %4697 }
0x2c61   :  { %4207 = vrot.lane.b32.xlu0 %v4698_v34, %s4725_s29 }
0x2c62   :  { %v4700_v55 = vpop.eup %4699 }
0x2c63   :  { %v4188_v33 = vadd.f32 1.0, %v4700_v55 }
0x2c65   :  { %4701 = vrcp.f32 %v4188_v33  ;;  %v4200_v60 = vand.u32 2147483648, %v4188_v33  ;;  %vm4194_vm1 = vweird.f32 %v4188_v33  ;;  %v4198_v50 = vand.u32 2147483647, %v4188_v33 }
0x2c67   :  { %v4201_v43 = vor.u32 1.1754944e-38, %v4200_v60  ;;  %vm4199_vm13 = vcmp.eq.f32.partialorder %v4198_v50, 8.507059e+37 }
0x2c6b   :  { %v4702_v38 = vpop.eup %4701 }
0x2c6c   :  { %v4190_v19 = vmul.f32 %v4702_v38, %v4188_v33  ;;  %vm4195_vm0 = vweird.f32 %v4702_v38 }
0x2c6d   :  { %vm4196_vm12 = vmor %vm4194_vm1, %vm4195_vm0 }
0x2c6e   :  { %v4191_v48 = vsub.f32 1.0, %v4190_v19 }
0x2c70   :  { %v4192_v57 = vmul.f32 %v4702_v38, %v4191_v48  ;;  %v6314_v48 = vld [vmem:[#allocation10_spill] sm:$0xff] }
0x2c72   :  { %v4193_v18 = vadd.f32 %v4702_v38, %v4192_v57  ;;  %v1364_v57 = vpack.c.bf16 %v6314_v48, %v6314_v48 }
0x2c74   :  { %v4197_v32 = vsel %vm4196_vm12, %v4702_v38, %v4193_v18  ;;  %v1366_v18 = vrot.slane %v1364_v57, 3 }
0x2c75   :  { %v4202_v31 = vsel %vm4199_vm13, %v4201_v43, %v4197_v32  ;;  %v3302_v32 = vpack.c.bf16 %v5780_v54, %v5780_v54 }
0x2c76   :  { %v4205_v39 = vmul.f32 %v4202_v31, %v5879_v21 }
0x2c77   :  { %v3304_v43 = vrot.slane %v3302_v32, 3 }
0x2cd3   :  { %v4208_v20 = vpop.permute.xlu0 %4207 }
0x2cd4   :  { %v4210_v49 = vmul.f32 %v4208_v20, %v4202_v31 }
0x2cd6   :  { %4212 = vrot.lane.b32.xlu1 %v4210_v49, %s4724_s25 }
0x2cde   :  { %4226 = vrot.lane.b32.xlu1 %v5937_v35, %s4725_s29 }
0x2d48   :  { %v4213_v44 = vpop.permute.xlu1 %4212 }
0x2d49   :  { %v4215_v15 = vadd.f32 %v4213_v44, %v4205_v39 }
0x2d4b   :  { %4703 = vtanh.f32 %v4215_v15 }
0x2d50   :  { %v4227_v27 = vpop.permute.xlu1 %4226 }
0x2d51   :  { %v4704_v40 = vpop.eup %4703 }
0x2d52   :  { %4218 = vrot.lane.b32.xlu2 %v4704_v40, %s4725_s29  ;;  %v6315_v40 = vld [vmem:[#allocation33_spill] sm:$0xff] }
0x2dac   :  { %v4219_v24 = vpop.permute.xlu2 %4218 }
0x2dad   :  { %v4221_v25 = vmul.f32 %v4219_v24, %v4202_v31  ;;  %v2010_v24 = vpack.c.bf16 %v6315_v40, %v6315_v40 }
0x2daf   :  { %4223 = vrot.lane.b32.xlu0 %v4221_v25, %s4724_s25  ;;  %v2012_v25 = vrot.slane %v2010_v24, 3 }
0x2e21   :  { %v4224_v29 = vpop.permute.xlu0 %4223 }
0x2e22   :  { %v4229_v30 = vsel %vm339_vm6, %v4224_v29, %v4227_v27  ;;  %vm720_vm6 = vcmask 1040384   ;;  %v3948_v29 = vpack.c.bf16 %v5937_v35, %v5937_v35 }
0x2e23   :  { %v4231_v14 = vsel %vm344_vm7, %v4229_v30, 0  ;;  %v2661_v51 = vsel %vm720_vm6, %v2656_v46, %v2658_v47  ;;  %v1369_v50 = vsel %vm720_vm6, %v1364_v57, %v1366_v18  ;;  %v3307_v31 = vsel %vm720_vm6, %v3302_v32, %v3304_v43 }
0x2e24   :  { %v4257_v28 = vand.u32 4294901760, %v4231_v14  ;;  %v3950_v30 = vrot.slane %v3948_v29, 3 }
0x2e26   :  { %v4258_v42 = vsub.f32 %v4231_v14, %v4257_v28  ;;  %4323 = vmatmul.f32.vlgmr.msrb.gmra.mxu3 %v4257_v28  ;;  %v3953_v14 = vsel %vm720_vm6, %v3948_v29, %v3950_v30 }
0x2e28   :  { %4361 = vmatmul.f32.vlgmr.msra.gmra.mxu0 %v4258_v42  ;;  %v4259_v21 = vand.u32 4294901760, %v4258_v42 }
0x2e2a   :  { %4392 = vmatmul.f32.vlgmr.msra.gmra.mxu1 %v4259_v21  ;;  %v4260_v22 = vsub.f32 %v4258_v42, %v4259_v21 }
0x2e2c   :  { %v4261_v3 = vand.u32 4294901760, %v4260_v22 }
0x2e2e   :  { %4262 = vmatmul.f32.vlgmr.msrb.gmra.mxu2 %v4261_v3  ;;  %4466 = vmatmul.f32.vlgmr.msra.gmra.mxu3 %v4257_v28 }
0x2e36   :  { %4437 = vmatmul.f32.vlgmr.msra.gmra.mxu2 %v4257_v28 }
0x2ea5   :  { %v4362_v37 = vpop.f32.mrf.mxu0 }
0x2ea7   :  { %v4393_v58 = vpop.f32.mrf.mxu1 }
0x2ea9   :  { %v4324_v41 = vpop.f32.mrf.mxu3 }
0x2eb1   :  { %v4263_v26 = vpop.f32.mrf.mxu2  ;;  %v4467_v9 = vpop.f32.mrf.mxu3 }
0x2eb2   :  { %v4264_v7 = vadd.f32 %v6305_v56, %v4263_v26  ;;  %v723_v56 = vsel %vm720_vm6, %v717_v13, %v719_v17 }
0x2eb4   :  { %v4325_v61 = vadd.f32 %v4324_v41, %v4264_v7 }
0x2eb6   :  { %v4363_v62 = vadd.f32 %v4362_v37, %v4325_v61 }
0x2eb8   :  { %v4394_v4 = vadd.f32 %v4393_v58, %v4363_v62 }
0x2eb9   :  { %v4438_v5 = vpop.f32.mrf.mxu2 }
0x2eba   :  { %v4439_v6 = vadd.f32 %v4438_v5, %v4394_v4 }
0x2ebc   :  { %v4468_v11 = vadd.f32 %v4467_v9, %v4439_v6 }
0x2ebe   :  { %4705 = vtanh.f32 %v4468_v11  ;;  %v4549_v52 = vmul.f32 -1.442695, %v4468_v11 }
0x2ec0   :  { %4707 = vpow2.f32 %v4549_v52 }
0x2ec4   :  { %v4706_v12 = vpop.eup %4705 }
0x2ec5   :  { %4492 = vrot.lane.b32.xlu2 %v4706_v12, %s4725_s29 }
0x2ec6   :  { %v4708_v53 = vpop.eup %4707 }
0x2ec7   :  { %v4473_v63 = vadd.f32 1.0, %v4708_v53 }
0x2ec9   :  { %4709 = vrcp.f32 %v4473_v63  ;;  %v4485_v8 = vand.u32 2147483648, %v4473_v63  ;;  %vm4479_vm5 = vweird.f32 %v4473_v63  ;;  %v4483_v34 = vand.u32 2147483647, %v4473_v63 }
0x2ecb   :  { %v4486_v55 = vor.u32 1.1754944e-38, %v4485_v8  ;;  %vm4484_vm9 = vcmp.eq.f32.partialorder %v4483_v34, 8.507059e+37 }
0x2ecd   :  { %725 = vrot.lane.b32.xlu2 %v723_v56, %s4724_s25 }
0x2ecf   :  { %v4710_v59 = vpop.eup %4709 }
0x2ed0   :  { %v4475_v0 = vmul.f32 %v4710_v59, %v4473_v63  ;;  %vm4480_vm7 = vweird.f32 %v4710_v59 }
0x2ed1   :  { %vm4481_vm8 = vmor %vm4479_vm5, %vm4480_vm7 }
0x2ed2   :  { %v4476_v1 = vsub.f32 1.0, %v4475_v0 }
0x2ed4   :  { %v4477_v2 = vmul.f32 %v4710_v59, %v4476_v1 }
0x2ed5   :  { %2663 = vrot.lane.b32.xlu2 %v2661_v51, %s4724_s25 }
0x2ed6   :  { %v4478_v23 = vadd.f32 %v4710_v59, %v4477_v2 }
0x2ed8   :  { %v4482_v36 = vsel %vm4481_vm8, %v4710_v59, %v4478_v23 }
0x2ed9   :  { %v4487_v38 = vsel %vm4484_vm9, %v4486_v55, %v4482_v36 }
0x2eda   :  { %v4490_v49 = vmul.f32 %v4487_v38, %v5933_v16  ;;  %v2015_v16 = vsel %vm720_vm6, %v2010_v24, %v2012_v25 }
0x2f1f   :  { %v4493_v33 = vpop.permute.xlu2 %4492 }
0x2f20   :  { %v4495_v19 = vmul.f32 %v4493_v33, %v4487_v38 }
0x2f22   :  { %4497 = vrot.lane.b32.xlu0 %v4495_v19, %s4724_s25 }
0x2f27   :  { %v726_v60 = vpop.permute.xlu2 %725 }
0x2f28   :  { %4526 = vst.msk [vmem:[%s6075_s9 + $0x1] sm:$0x1] %vm64_vm14, %v726_v60 }
0x2f2a   :  { %1371 = vrot.lane.b32.xlu0 %v1369_v50, %s4724_s25 }
0x2f2f   :  { %v2664_v20 = vpop.permute.xlu2 %2663 }
0x2f30   :  { %4538 = vst.msk [vmem:[%s6075_s9 + $0x4] sm:$0x1] %vm64_vm14, %v2664_v20 }
0x2f32   :  { %3309 = vrot.lane.b32.xlu0 %v3307_v31, %s4724_s25 }
0x2f94   :  { %v4498_v39 = vpop.permute.xlu0 %4497 }
0x2f95   :  { %v4500_v44 = vadd.f32 %v4498_v39, %v4490_v49 }
0x2f97   :  { %4711 = vtanh.f32 %v4500_v44 }
0x2f9c   :  { %v1372_v15 = vpop.permute.xlu0 %1371 }
0x2f9d   :  { %v4712_v54 = vpop.eup %4711  ;;  %4530 = vst.msk [vmem:[%s6075_s9 + $0x2] sm:$0x1] %vm64_vm14, %v1372_v15 }
0x2f9e   :  { %4503 = vrot.lane.b32.xlu1 %v4712_v54, %s4725_s29 }
0x2fa4   :  { %v3310_v27 = vpop.permute.xlu0 %3309 }
0x2fa5   :  { %4542 = vst.msk [vmem:[%s6075_s9 + $0x5] sm:$0x1] %vm64_vm14, %v3310_v27 }
0x2fa6   :  { %2017 = vrot.lane.b32.xlu1 %v2015_v16, %s4724_s25 }
0x2fae   :  { %3955 = vrot.lane.b32.xlu1 %v3953_v14, %s4724_s25 }
0x3010   :  { %v4504_v28 = vpop.permute.xlu1 %4503 }
0x3011   :  { %v4506_v42 = vmul.f32 %v4504_v28, %v4487_v38 }
0x3013   :  { %v4507_v21 = vpack.c.bf16 %v4506_v42, %v4506_v42 }
0x3015   :  { %v4509_v22 = vrot.slane %v4507_v21, 3 }
0x3017   :  { %v4512_v3 = vsel %vm720_vm6, %v4507_v21, %v4509_v22 }
0x3018   :  { %4514 = vrot.lane.b32.xlu2 %v4512_v3, %s4724_s25  ;;  %v2018_v41 = vpop.permute.xlu1 %2017 }
0x3019   :  { %4534 = vst.msk [vmem:[%s6075_s9 + $0x3] sm:$0x1] %vm64_vm14, %v2018_v41 }
0x3020   :  { %v3956_v35 = vpop.permute.xlu1 %3955 }
0x3021   :  { %4546 = vst.msk [vmem:[%s6075_s9 + $0x6] sm:$0x1] %vm64_vm14, %v3956_v35 }
0x3072   :  { %v4515_v26 = vpop.permute.xlu2 %4514 }
0x3073   :  { %4550 = vst.msk [vmem:[%s6075_s9 + $0x7] sm:$0x1] %vm64_vm14, %v4515_v26 }

</bundles_post_ra>
